<compile_context>
chip_gen: v6e
topology: v6e:2x2x1
jax: 0.10.0
libtpu: 0.0.40
codegen_flags: <defaults>
</compile_context>

<pallas_src>
import functools

import jax
import jax.numpy as jnp
from jax import lax
from jax.experimental import pallas as pl
from jax.experimental.pallas import tpu as pltpu

# ----------------------- small synthetic ViLT config -----------------------
HIDDEN = 32
NUM_HEADS = 4
HEAD_DIM = HIDDEN // NUM_HEADS
INTERMEDIATE = 64
NUM_LAYERS = 2
VOCAB = 100
MAX_TEXT_POS = 40
TYPE_VOCAB = 2
NUM_LABELS = 12
CHANNELS = 3
IMG = 16
PATCH = 8
N_PATCH_SIDE = IMG // PATCH
N_PATCHES = N_PATCH_SIDE * N_PATCH_SIDE
IMG_SEQ = N_PATCHES + 1          # +1 for image [CLS]
PATCH_DIM = CHANNELS * PATCH * PATCH
LN_EPS = 1e-12


# ----------------------- packed weight-slab row layout ----------------------
def _build_slab_layout():
    """Single lane-dense weight slab; every entry starts on an 8-row boundary."""
    entries = []

    def mat(name, rows, cols):
        entries.append((name, rows, cols))

    def vec(name, cols):
        entries.append((name, 1, cols))

    mat("patch_w", PATCH_DIM, HIDDEN)
    mat("pool_w", HIDDEN, HIDDEN)
    mat("cls1_w", HIDDEN, 2 * HIDDEN)
    mat("cls2_w", 2 * HIDDEN, NUM_LABELS)
    for l in range(NUM_LAYERS):
        mat(f"wqkv{l}", HIDDEN, 3 * HIDDEN)      # fused QKV, head-major lanes
        mat(f"o_w{l}", HIDDEN, HIDDEN)
        mat(f"i_w{l}", HIDDEN, INTERMEDIATE)
        mat(f"fo_w{l}", INTERMEDIATE, HIDDEN)
    vec("text_ln_g", HIDDEN); vec("text_ln_b", HIDDEN); vec("mod0", HIDDEN)
    vec("final_ln_g", HIDDEN); vec("final_ln_b", HIDDEN)
    vec("pool_b", HIDDEN); vec("cls1_b", 2 * HIDDEN)
    vec("cls_ln_g", 2 * HIDDEN); vec("cls_ln_b", 2 * HIDDEN)
    vec("cls2_b", NUM_LABELS)
    for l in range(NUM_LAYERS):
        vec(f"ln1_g{l}", HIDDEN); vec(f"ln1_b{l}", HIDDEN)
        vec(f"bqkv{l}", 3 * HIDDEN); vec(f"o_b{l}", HIDDEN)
        vec(f"ln2_g{l}", HIDDEN); vec(f"ln2_b{l}", HIDDEN)
        vec(f"i_b{l}", INTERMEDIATE); vec(f"fo_b{l}", HIDDEN)

    layout, off = {}, 0
    for name, used, cols in entries:
        layout[name] = (off, used, cols)
        off += ((used + 7) // 8) * 8
    return layout, off


SLAB_LAYOUT, SLAB_ROWS = _build_slab_layout()
SLAB_COLS = 3 * HIDDEN


# ------------------------- in-kernel helper math ----------------------------
def _gelu(y):
    # TODO(synk): HF ViLT uses exact erf-GELU; tanh approximation used since erf
    # lowering is not guaranteed in Mosaic.
    c = 0.7978845608028654  # sqrt(2/pi)
    return 0.5 * y * (1.0 + jnp.tanh(c * (y + 0.044715 * y * y * y)))


def _ln(x, g, b, eps=LN_EPS):
    """One-pass LayerNorm statistics (sum + sum-of-squares): one XLU reduction pair."""
    inv_n = 1.0 / x.shape[-1]
    s1 = jnp.sum(x, axis=-1, keepdims=True)
    s2 = jnp.sum(x * x, axis=-1, keepdims=True)
    mu = s1 * inv_n
    var = jnp.maximum(s2 * inv_n - mu * mu, 0.0)
    return (x - mu) * lax.rsqrt(var + eps) * g + b


# ------------------------- the single fused kernel ---------------------------
def _vilt_fused_kernel(text_ref, patch_ref, imgadd_ref, mask_ref, w_ref,
                       out_ref, x_scr,
                       *, n_text, n_img, r_pad, n_layers, n_heads):
    f32 = jnp.float32
    H = HIDDEN
    Dh = H // n_heads

    def w(name):
        off, used, cols = SLAB_LAYOUT[name]
        return w_ref[off:off + used, 0:cols]

    # ---------------- embeddings (batch-stacked rows) ----------------
    txt = _ln(text_ref[...], w("text_ln_g"), w("text_ln_b")) + w("mod0")   # (B*Lt, H)
    img = jnp.dot(patch_ref[...], w("patch_w"),
                  preferred_element_type=f32) + imgadd_ref[...]            # (B*IMG_SEQ, H)

    # Assemble the padded, batch-stacked activation matrix in VMEM (pad rows = 0,
    # they are fully masked as attention keys and never read back as outputs).
    x_scr[...] = jnp.zeros((r_pad, H), f32)
    x_scr[0:n_text, :] = txt
    x_scr[n_text:n_text + n_img, :] = img
    x = x_scr[...]                                                          # (r_pad, H)

    mask_add = mask_ref[...]                                # (nH*r_pad, nH*r_pad)

    # Per-head lane masks (built once from a 2-D iota): lanes [h*Dh, (h+1)*Dh).
    lane = lax.broadcasted_iota(jnp.int32, (1, H), 1)
    head_lane_masks = [
        jnp.where((lane >= hh * Dh) & (lane < (hh + 1) * Dh), 1.0, 0.0)
        for hh in range(n_heads)]

    for l in range(n_layers):
        # ---------------- attention (all heads & batch in one shot) ----------------
        h = _ln(x, w(f"ln1_g{l}"), w(f"ln1_b{l}"))
        # fused QKV: one (r_pad,32)x(32,96) matmul; 1/sqrt(Dh) folded into Q.
        qkv = jnp.dot(h, w(f"wqkv{l}"), preferred_element_type=f32) + w(f"bqkv{l}")
        q = qkv[:, 0:H]
        k = qkv[:, H:2 * H]
        v = qkv[:, 2 * H:3 * H]
        # Head-stacked (sublane) blocks; the per-head lane masks make the score
        # matmul block-diagonal over heads, and the additive mask enforces the
        # (head, batch, key-padding) grouping exactly.
        qb = jnp.concatenate([q * m for m in head_lane_masks], axis=0)   # (nH*r_pad, H)
        kb = jnp.concatenate([k * m for m in head_lane_masks], axis=0)
        vb = jnp.concatenate([v * m for m in head_lane_masks], axis=0)

        s = lax.dot_general(qb, kb, (((1,), (1,)), ((), ())),
                            preferred_element_type=f32)                  # (nH*r_pad, nH*r_pad)
        s = s + mask_add
        s = s - jnp.max(s, axis=-1, keepdims=True)
        p = jnp.exp(s)
        p = p * pl.reciprocal(jnp.sum(p, axis=-1, keepdims=True), approx=True)

        ctxb = jnp.dot(p, vb, preferred_element_type=f32)                # (nH*r_pad, H)
        # Row-block h holds head-h context in lane-block h (zeros elsewhere), so a
        # sum of the aligned (r_pad, H) row blocks merges heads back onto lanes.
        ctx = ctxb[0:r_pad, :]
        for hh in range(1, n_heads):
            ctx = ctx + ctxb[hh * r_pad:(hh + 1) * r_pad, :]
        x = x + jnp.dot(ctx, w(f"o_w{l}"),
                        preferred_element_type=f32) + w(f"o_b{l}")       # fused residual

        # ---------------- MLP ----------------
        h2 = _ln(x, w(f"ln2_g{l}"), w(f"ln2_b{l}"))
        inter = _gelu(jnp.dot(h2, w(f"i_w{l}"),
                              preferred_element_type=f32) + w(f"i_b{l}"))
        x = x + jnp.dot(inter, w(f"fo_w{l}"),
                        preferred_element_type=f32) + w(f"fo_b{l}")      # fused residual

    # ---------------- head (computed for every row; wrapper picks pooled rows) ----
    xf = _ln(x, w("final_ln_g"), w("final_ln_b"))
    pooled = jnp.tanh(jnp.dot(xf, w("pool_w"),
                              preferred_element_type=f32) + w("pool_b"))
    h1 = jnp.dot(pooled, w("cls1_w"), preferred_element_type=f32) + w("cls1_b")
    h1 = _gelu(_ln(h1, w("cls_ln_g"), w("cls_ln_b")))
    out_ref[...] = jnp.dot(h1, w("cls2_w"),
                           preferred_element_type=f32) + w("cls2_b")     # (r_pad, NUM_LABELS)


# --------------------------- parameters (synthetic) -------------------------
def init_params(key):
    keys = iter(jax.random.split(key, 128))

    def nrm(shape, scale=0.02):
        return scale * jax.random.normal(next(keys), shape, dtype=jnp.float32)

    def zeros(shape):
        return jnp.zeros(shape, jnp.float32)

    def ones(shape):
        return jnp.ones(shape, jnp.float32)

    H, I = HIDDEN, INTERMEDIATE
    params = {
        "word_emb": nrm((VOCAB, H)),
        "text_pos_emb": nrm((MAX_TEXT_POS, H)),
        "text_type_emb": nrm((TYPE_VOCAB, H)),
        "text_ln_g": ones((H,)), "text_ln_b": zeros((H,)),
        "modality_emb": nrm((2, H)),
        "patch_w": nrm((PATCH_DIM, H)),
        "patch_b": zeros((H,)),
        "cls_token": nrm((H,)),
        "img_pos_emb": nrm((IMG_SEQ, H)),
        "final_ln_g": ones((H,)), "final_ln_b": zeros((H,)),
        "pool_w": nrm((H, H)), "pool_b": zeros((H,)),
        "cls1_w": nrm((H, 2 * H)), "cls1_b": zeros((2 * H,)),
        "cls_ln_g": ones((2 * H,)), "cls_ln_b": zeros((2 * H,)),
        "cls2_w": nrm((2 * H, NUM_LABELS)), "cls2_b": zeros((NUM_LABELS,)),
        "layers": [],
    }
    for _ in range(NUM_LAYERS):
        params["layers"].append({
            "ln1_g": ones((H,)), "ln1_b": zeros((H,)),
            "q_w": nrm((H, H)), "q_b": zeros((H,)),
            "k_w": nrm((H, H)), "k_b": zeros((H,)),
            "v_w": nrm((H, H)), "v_b": zeros((H,)),
            "o_w": nrm((H, H)), "o_b": zeros((H,)),
            "ln2_g": ones((H,)), "ln2_b": zeros((H,)),
            "i_w": nrm((H, I)), "i_b": zeros((I,)),
            "fo_w": nrm((I, H)), "fo_b": zeros((H,)),
        })
    return params


def pack_params(params):
    """One-time repack of HF-style params into one lane-dense VMEM weight slab."""
    scale = 1.0 / (HEAD_DIM ** 0.5)
    layers = params["layers"]

    # Pre-combined additive image term: img_pos + modality[1], cls token on row 0,
    # patch projection bias folded into rows 1..N_PATCHES.
    img_add = params["img_pos_emb"] + params["modality_emb"][1][None, :]
    img_add = img_add.at[0].add(params["cls_token"])
    img_add = img_add.at[1:].add(params["patch_b"][None, :])

    entries = {
        "patch_w": params["patch_w"],
        "pool_w": params["pool_w"],
        "cls1_w": params["cls1_w"],
        "cls2_w": params["cls2_w"],
        "text_ln_g": params["text_ln_g"][None, :],
        "text_ln_b": params["text_ln_b"][None, :],
        "mod0": params["modality_emb"][0][None, :],
        "final_ln_g": params["final_ln_g"][None, :],
        "final_ln_b": params["final_ln_b"][None, :],
        "pool_b": params["pool_b"][None, :],
        "cls1_b": params["cls1_b"][None, :],
        "cls_ln_g": params["cls_ln_g"][None, :],
        "cls_ln_b": params["cls_ln_b"][None, :],
        "cls2_b": params["cls2_b"][None, :],
    }
    for l, lp in enumerate(layers):
        # Fused QKV, head-major lane order; attention scale folded into Q.
        entries[f"wqkv{l}"] = jnp.concatenate(
            [lp["q_w"] * scale, lp["k_w"], lp["v_w"]], axis=1)           # (H, 3H)
        entries[f"bqkv{l}"] = jnp.concatenate(
            [lp["q_b"] * scale, lp["k_b"], lp["v_b"]])[None, :]          # (1, 3H)
        entries[f"o_w{l}"] = lp["o_w"]
        entries[f"o_b{l}"] = lp["o_b"][None, :]
        entries[f"i_w{l}"] = lp["i_w"]
        entries[f"i_b{l}"] = lp["i_b"][None, :]
        entries[f"fo_w{l}"] = lp["fo_w"]
        entries[f"fo_b{l}"] = lp["fo_b"][None, :]
        entries[f"ln1_g{l}"] = lp["ln1_g"][None, :]
        entries[f"ln1_b{l}"] = lp["ln1_b"][None, :]
        entries[f"ln2_g{l}"] = lp["ln2_g"][None, :]
        entries[f"ln2_b{l}"] = lp["ln2_b"][None, :]

    slab = jnp.zeros((SLAB_ROWS, SLAB_COLS), jnp.float32)
    for name, val in entries.items():
        off, used, cols = SLAB_LAYOUT[name]
        val = jnp.asarray(val, jnp.float32)
        assert val.shape == (used, cols), (name, val.shape, (used, cols))
        slab = slab.at[off:off + used, 0:cols].set(val)

    return {
        "word_emb": params["word_emb"],
        "text_pos_emb": params["text_pos_emb"],
        "text_type_emb": params["text_type_emb"],
        "img_add": img_add,          # (IMG_SEQ, H)
        "slab": slab,                # (SLAB_ROWS, 96)  -- single weight DMA
    }


# ------------------------------ forward pass --------------------------------
def _full_spec(x):
    nd = x.ndim
    return pl.BlockSpec(x.shape, lambda i, _n=nd: (0,) * _n)


def vilt_forward(packed, input_ids, token_type_ids, attention_mask,
                 pixel_values, pixel_mask):
    B, Lt = input_ids.shape
    S = Lt + IMG_SEQ
    R = B * S
    R_PAD = ((R + 7) // 8) * 8
    NT = B * Lt
    NI = B * IMG_SEQ
    f32 = jnp.float32

    # ---- plain-JAX glue: embedding gathers, patchify, mask arithmetic ----
    we = packed["word_emb"][input_ids]                         # (B, Lt, H)
    pe = packed["text_pos_emb"][:Lt]
    tte = packed["text_type_emb"][token_type_ids]
    text_sum = (we + pe[None, :, :] + tte).reshape(NT, HIDDEN).astype(f32)

    p = PATCH
    patches = pixel_values.reshape(B, CHANNELS, N_PATCH_SIDE, p, N_PATCH_SIDE, p)
    patches = patches.transpose(0, 2, 4, 1, 3, 5).reshape(B, N_PATCHES, PATCH_DIM)
    # prepend an all-zero row so the first image row becomes the image CLS token
    patches = jnp.concatenate([jnp.zeros((B, 1, PATCH_DIM), f32), patches], axis=1)
    patches = patches.reshape(NI, PATCH_DIM)

    img_add = jnp.tile(packed["img_add"], (B, 1))              # (NI, H)

    # patch-level mask (any unmasked pixel in a patch -> keep) + always-keep CLS
    pm = pixel_mask.astype(f32).reshape(B, N_PATCH_SIDE, p, N_PATCH_SIDE, p)
    patch_keep = pm.max(axis=(2, 4)).reshape(B, N_PATCHES)
    img_keep = jnp.concatenate([jnp.ones((B, 1), f32), patch_keep], axis=1)
    # TODO(synk): ViLT's pixel_mask-driven position-embedding interpolation is
    # skipped (pixel_mask is all-ones here); fixed learned positions are used.

    # Additive mask for the (head, batch)-stacked score matrix: rows/cols are
    # ordered (head, global_row); keep only same-head, same-batch, unmasked keys.
    row_batch = jnp.concatenate([
        jnp.repeat(jnp.arange(B, dtype=jnp.int32), Lt),
        jnp.repeat(jnp.arange(B, dtype=jnp.int32), IMG_SEQ),
        jnp.full((R_PAD - R,), -1, jnp.int32)])                # (R_PAD,)
    row_keep = jnp.concatenate([
        attention_mask.astype(f32).reshape(NT),
        img_keep.reshape(NI),
        jnp.zeros((R_PAD - R,), f32)])                         # (R_PAD,)
    head_id = jnp.repeat(jnp.arange(NUM_HEADS, dtype=jnp.int32), R_PAD)
    rb = jnp.tile(row_batch, NUM_HEADS)
    rk = jnp.tile(row_keep, NUM_HEADS)
    same = (head_id[:, None] == head_id[None, :]) \
        & (rb[:, None] == rb[None, :]) & (rb[None, :] >= 0) & (rk[None, :] > 0.5)
    mask_add = jnp.where(same, 0.0, -1e9).astype(f32)          # (nH*R_PAD, nH*R_PAD)

    inputs = [text_sum, patches, img_add, mask_add, packed["slab"]]

    kernel = functools.partial(
        _vilt_fused_kernel, n_text=NT, n_img=NI, r_pad=R_PAD,
        n_layers=NUM_LAYERS, n_heads=NUM_HEADS)

    logits_full = pl.pallas_call(
        kernel,
        out_shape=jax.ShapeDtypeStruct((R_PAD, NUM_LABELS), f32),
        grid=(1,),
        in_specs=[_full_spec(a) for a in inputs],
        out_specs=pl.BlockSpec((R_PAD, NUM_LABELS), lambda i: (0, 0)),
        scratch_shapes=[pltpu.VMEM((R_PAD, HIDDEN), f32)],
        compiler_params=pltpu.CompilerParams(
            dimension_semantics=("arbitrary",)),
    )(*inputs)

    # pooled token = first text token of each batch element (row b*Lt)
    return logits_full[0:B * Lt:Lt]


# --------------------------------- main --------------------------------------
if __name__ == "__main__":
    key = jax.random.PRNGKey(0)
    k_param, k_ids, k_pix = jax.random.split(key, 3)
    params = init_params(k_param)
    packed = pack_params(params)

    B, Lt = 2, 8
    input_ids = jax.random.randint(k_ids, (B, Lt), 0, VOCAB, dtype=jnp.int32)
    token_type_ids = jnp.zeros((B, Lt), jnp.int32)
    attention_mask = jnp.ones((B, Lt), jnp.int32).at[1, 6:].set(0)  # pad 2 tokens
    pixel_values = jax.random.normal(k_pix, (B, CHANNELS, IMG, IMG), jnp.float32)
    pixel_mask = jnp.ones((B, IMG, IMG), jnp.int32)

    forward = jax.jit(vilt_forward)
    logits = forward(packed, input_ids, token_type_ids, attention_mask,
                     pixel_values, pixel_mask)
    logits = jax.block_until_ready(logits)

    assert logits.shape == (B, NUM_LABELS), logits.shape
    assert bool(jnp.all(jnp.isfinite(logits)))
    print("KERNEL_OK")
</pallas_src>

<mosaic_0001>
module attributes {stable_mosaic.version = 11 : i64} {
  func.func @_vilt_fused_kernel(%arg0: i32, %arg1: memref<16x32xf32, #tpu.memory_space<vmem>>, %arg2: memref<10x192xf32, #tpu.memory_space<vmem>>, %arg3: memref<10x32xf32, #tpu.memory_space<vmem>>, %arg4: memref<128x128xf32, #tpu.memory_space<vmem>>, %arg5: memref<848x96xf32, #tpu.memory_space<vmem>>, %arg6: memref<32x12xf32, #tpu.memory_space<vmem>>, %arg7: memref<32x32xf32, #tpu.memory_space<vmem>>) attributes {dimension_semantics = [#tpu.dimension_semantics<arbitrary>], iteration_bounds = array<i64: 1>, scalar_prefetch = 0 : i64, scratch_operands = 1 : i64, tpu.core_type = #tpu.core_type<tc>, window_params = [{pipeline_mode = #tpu.pipeline_mode<synchronous>, transform_indices = @transform_0, window_bounds = array<i64: 16, 32>}, {pipeline_mode = #tpu.pipeline_mode<synchronous>, transform_indices = @transform_1, window_bounds = array<i64: 10, 192>}, {pipeline_mode = #tpu.pipeline_mode<synchronous>, transform_indices = @transform_2, window_bounds = array<i64: 10, 32>}, {pipeline_mode = #tpu.pipeline_mode<synchronous>, transform_indices = @transform_3, window_bounds = array<i64: 128, 128>}, {pipeline_mode = #tpu.pipeline_mode<synchronous>, transform_indices = @transform_4, window_bounds = array<i64: 848, 96>}, {pipeline_mode = #tpu.pipeline_mode<synchronous>, transform_indices = @transform_5, window_bounds = array<i64: 32, 12>}]} {
    %c0 = arith.constant 0 : index
    %c0_0 = arith.constant 0 : index
    %0 = vector.load %arg1[%c0, %c0_0] : memref<16x32xf32, #tpu.memory_space<vmem>>, vector<16x32xf32>
    %c640 = arith.constant 640 : index
    %c0_1 = arith.constant 0 : index
    %1 = vector.load %arg5[%c640, %c0_1] : memref<848x96xf32, #tpu.memory_space<vmem>>, vector<1x32xf32>
    %c648 = arith.constant 648 : index
    %c0_2 = arith.constant 0 : index
    %2 = vector.load %arg5[%c648, %c0_2] : memref<848x96xf32, #tpu.memory_space<vmem>>, vector<1x32xf32>
    %cst = arith.constant dense<0.000000e+00> : vector<16xf32>
    %3 = vector.multi_reduction <add>, %0, %cst [1] : vector<16x32xf32> to vector<16xf32>
    %4 = vector.shape_cast %3 : vector<16xf32> to vector<16x1xf32>
    %5 = arith.mulf %0, %0 : vector<16x32xf32>
    %cst_3 = arith.constant dense<0.000000e+00> : vector<16xf32>
    %6 = vector.multi_reduction <add>, %5, %cst_3 [1] : vector<16x32xf32> to vector<16xf32>
    %7 = vector.shape_cast %6 : vector<16xf32> to vector<16x1xf32>
    %cst_4 = arith.constant 3.125000e-02 : f32
    %8 = vector.broadcast %cst_4 : f32 to vector<16x1xf32>
    %9 = arith.mulf %4, %8 : vector<16x1xf32>
    %cst_5 = arith.constant 3.125000e-02 : f32
    %10 = vector.broadcast %cst_5 : f32 to vector<16x1xf32>
    %11 = arith.mulf %7, %10 : vector<16x1xf32>
    %12 = arith.mulf %9, %9 : vector<16x1xf32>
    %13 = arith.subf %11, %12 : vector<16x1xf32>
    %cst_6 = arith.constant 0.000000e+00 : f32
    %14 = vector.broadcast %cst_6 : f32 to vector<16x1xf32>
    %15 = arith.maximumf %13, %14 : vector<16x1xf32>
    %16 = vector.broadcast %9 : vector<16x1xf32> to vector<16x32xf32>
    %17 = arith.subf %0, %16 : vector<16x32xf32>
    %cst_7 = arith.constant 9.99999996E-13 : f32
    %18 = vector.broadcast %cst_7 : f32 to vector<16x1xf32>
    %19 = arith.addf %15, %18 : vector<16x1xf32>
    %20 = math.rsqrt %19 : vector<16x1xf32>
    %21 = vector.broadcast %20 : vector<16x1xf32> to vector<16x32xf32>
    %22 = arith.mulf %17, %21 : vector<16x32xf32>
    %23 = vector.broadcast %1 : vector<1x32xf32> to vector<16x32xf32>
    %24 = arith.mulf %22, %23 : vector<16x32xf32>
    %25 = vector.broadcast %2 : vector<1x32xf32> to vector<16x32xf32>
    %26 = arith.addf %24, %25 : vector<16x32xf32>
    %c656 = arith.constant 656 : index
    %c0_8 = arith.constant 0 : index
    %27 = vector.load %arg5[%c656, %c0_8] : memref<848x96xf32, #tpu.memory_space<vmem>>, vector<1x32xf32>
    %28 = vector.broadcast %27 : vector<1x32xf32> to vector<16x32xf32>
    %29 = arith.addf %26, %28 : vector<16x32xf32>
    %c0_9 = arith.constant 0 : index
    %c0_10 = arith.constant 0 : index
    %30 = vector.load %arg2[%c0_9, %c0_10] : memref<10x192xf32, #tpu.memory_space<vmem>>, vector<10x192xf32>
    %c0_11 = arith.constant 0 : index
    %c0_12 = arith.constant 0 : index
    %31 = vector.load %arg5[%c0_11, %c0_12] : memref<848x96xf32, #tpu.memory_space<vmem>>, vector<192x32xf32>
    %cst_13 = arith.constant dense<0.000000e+00> : vector<10x32xf32>
    %32 = tpu.matmul %30, %31, %cst_13 {dimension_numbers = #tpu.dot_dimension_numbers<[1], [0], [0], [1], [0, 0, 1, 1], [], []>} : vector<10x192xf32>, vector<192x32xf32>, vector<10x32xf32> -> vector<10x32xf32>
    %c0_14 = arith.constant 0 : index
    %c0_15 = arith.constant 0 : index
    %33 = vector.load %arg3[%c0_14, %c0_15] : memref<10x32xf32, #tpu.memory_space<vmem>>, vector<10x32xf32>
    %34 = arith.addf %32, %33 : vector<10x32xf32>
    %cst_16 = arith.constant 0.000000e+00 : f32
    %35 = vector.broadcast %cst_16 : f32 to vector<32x32xf32>
    %c0_17 = arith.constant 0 : index
    %c0_18 = arith.constant 0 : index
    %36 = vector.load %arg7[%c0_17, %c0_18] : memref<32x32xf32, #tpu.memory_space<vmem>>, vector<32x32xf32>
    tpu.vector_store %arg7[%c0_17, %c0_18], %35 {strides = array<i32>} : memref<32x32xf32, #tpu.memory_space<vmem>>, vector<32x32xf32>,
    %c0_19 = arith.constant 0 : index
    %c0_20 = arith.constant 0 : index
    %37 = vector.load %arg7[%c0_19, %c0_20] : memref<32x32xf32, #tpu.memory_space<vmem>>, vector<16x32xf32>
    tpu.vector_store %arg7[%c0_19, %c0_20], %29 {strides = array<i32>} : memref<32x32xf32, #tpu.memory_space<vmem>>, vector<16x32xf32>,
    %c16 = arith.constant 16 : index
    %c0_21 = arith.constant 0 : index
    %38 = vector.load %arg7[%c16, %c0_21] : memref<32x32xf32, #tpu.memory_space<vmem>>, vector<10x32xf32>
    tpu.vector_store %arg7[%c16, %c0_21], %34 {strides = array<i32>} : memref<32x32xf32, #tpu.memory_space<vmem>>, vector<10x32xf32>,
    %c0_22 = arith.constant 0 : index
    %c0_23 = arith.constant 0 : index
    %39 = vector.load %arg7[%c0_22, %c0_23] : memref<32x32xf32, #tpu.memory_space<vmem>>, vector<32x32xf32>
    %c0_24 = arith.constant 0 : index
    %c0_25 = arith.constant 0 : index
    %40 = vector.load %arg4[%c0_24, %c0_25] : memref<128x128xf32, #tpu.memory_space<vmem>>, vector<128x128xf32>
    %41 = tpu.iota {dimensions = array<i32: 1>} : vector<1x32xi32>
    %c0_i32 = arith.constant 0 : i32
    %42 = vector.broadcast %c0_i32 : i32 to vector<1x32xi32>
    %43 = arith.cmpi sge, %41, %42 : vector<1x32xi32>
    %c8_i32 = arith.constant 8 : i32
    %44 = vector.broadcast %c8_i32 : i32 to vector<1x32xi32>
    %45 = arith.cmpi slt, %41, %44 : vector<1x32xi32>
    %46 = arith.andi %43, %45 : vector<1x32xi1>
    %cst_26 = arith.constant 1.000000e+00 : f32
    %cst_27 = arith.constant 0.000000e+00 : f32
    %47 = vector.broadcast %cst_26 : f32 to vector<1x32xf32>
    %48 = vector.broadcast %cst_27 : f32 to vector<1x32xf32>
    %49 = arith.select %46, %47, %48 : vector<1x32xi1>, vector<1x32xf32>
    %c8_i32_28 = arith.constant 8 : i32
    %50 = vector.broadcast %c8_i32_28 : i32 to vector<1x32xi32>
    %51 = arith.cmpi sge, %41, %50 : vector<1x32xi32>
    %c16_i32 = arith.constant 16 : i32
    %52 = vector.broadcast %c16_i32 : i32 to vector<1x32xi32>
    %53 = arith.cmpi slt, %41, %52 : vector<1x32xi32>
    %54 = arith.andi %51, %53 : vector<1x32xi1>
    %cst_29 = arith.constant 1.000000e+00 : f32
    %cst_30 = arith.constant 0.000000e+00 : f32
    %55 = vector.broadcast %cst_29 : f32 to vector<1x32xf32>
    %56 = vector.broadcast %cst_30 : f32 to vector<1x32xf32>
    %57 = arith.select %54, %55, %56 : vector<1x32xi1>, vector<1x32xf32>
    %c16_i32_31 = arith.constant 16 : i32
    %58 = vector.broadcast %c16_i32_31 : i32 to vector<1x32xi32>
    %59 = arith.cmpi sge, %41, %58 : vector<1x32xi32>
    %c24_i32 = arith.constant 24 : i32
    %60 = vector.broadcast %c24_i32 : i32 to vector<1x32xi32>
    %61 = arith.cmpi slt, %41, %60 : vector<1x32xi32>
    %62 = arith.andi %59, %61 : vector<1x32xi1>
    %cst_32 = arith.constant 1.000000e+00 : f32
    %cst_33 = arith.constant 0.000000e+00 : f32
    %63 = vector.broadcast %cst_32 : f32 to vector<1x32xf32>
    %64 = vector.broadcast %cst_33 : f32 to vector<1x32xf32>
    %65 = arith.select %62, %63, %64 : vector<1x32xi1>, vector<1x32xf32>
    %c24_i32_34 = arith.constant 24 : i32
    %66 = vector.broadcast %c24_i32_34 : i32 to vector<1x32xi32>
    %67 = arith.cmpi sge, %41, %66 : vector<1x32xi32>
    %c32_i32 = arith.constant 32 : i32
    %68 = vector.broadcast %c32_i32 : i32 to vector<1x32xi32>
    %69 = arith.cmpi slt, %41, %68 : vector<1x32xi32>
    %70 = arith.andi %67, %69 : vector<1x32xi1>
    %cst_35 = arith.constant 1.000000e+00 : f32
    %cst_36 = arith.constant 0.000000e+00 : f32
    %71 = vector.broadcast %cst_35 : f32 to vector<1x32xf32>
    %72 = vector.broadcast %cst_36 : f32 to vector<1x32xf32>
    %73 = arith.select %70, %71, %72 : vector<1x32xi1>, vector<1x32xf32>
    %c720 = arith.constant 720 : index
    %c0_37 = arith.constant 0 : index
    %74 = vector.load %arg5[%c720, %c0_37] : memref<848x96xf32, #tpu.memory_space<vmem>>, vector<1x32xf32>
    %c728 = arith.constant 728 : index
    %c0_38 = arith.constant 0 : index
    %75 = vector.load %arg5[%c728, %c0_38] : memref<848x96xf32, #tpu.memory_space<vmem>>, vector<1x32xf32>
    %cst_39 = arith.constant dense<0.000000e+00> : vector<32xf32>
    %76 = vector.multi_reduction <add>, %39, %cst_39 [1] : vector<32x32xf32> to vector<32xf32>
    %77 = vector.shape_cast %76 : vector<32xf32> to vector<32x1xf32>
    %78 = arith.mulf %39, %39 : vector<32x32xf32>
    %cst_40 = arith.constant dense<0.000000e+00> : vector<32xf32>
    %79 = vector.multi_reduction <add>, %78, %cst_40 [1] : vector<32x32xf32> to vector<32xf32>
    %80 = vector.shape_cast %79 : vector<32xf32> to vector<32x1xf32>
    %cst_41 = arith.constant 3.125000e-02 : f32
    %81 = vector.broadcast %cst_41 : f32 to vector<32x1xf32>
    %82 = arith.mulf %77, %81 : vector<32x1xf32>
    %cst_42 = arith.constant 3.125000e-02 : f32
    %83 = vector.broadcast %cst_42 : f32 to vector<32x1xf32>
    %84 = arith.mulf %80, %83 : vector<32x1xf32>
    %85 = arith.mulf %82, %82 : vector<32x1xf32>
    %86 = arith.subf %84, %85 : vector<32x1xf32>
    %cst_43 = arith.constant 0.000000e+00 : f32
    %87 = vector.broadcast %cst_43 : f32 to vector<32x1xf32>
    %88 = arith.maximumf %86, %87 : vector<32x1xf32>
    %89 = vector.broadcast %82 : vector<32x1xf32> to vector<32x32xf32>
    %90 = arith.subf %39, %89 : vector<32x32xf32>
    %cst_44 = arith.constant 9.99999996E-13 : f32
    %91 = vector.broadcast %cst_44 : f32 to vector<32x1xf32>
    %92 = arith.addf %88, %91 : vector<32x1xf32>
    %93 = math.rsqrt %92 : vector<32x1xf32>
    %94 = vector.broadcast %93 : vector<32x1xf32> to vector<32x32xf32>
    %95 = arith.mulf %90, %94 : vector<32x32xf32>
    %96 = vector.broadcast %74 : vector<1x32xf32> to vector<32x32xf32>
    %97 = arith.mulf %95, %96 : vector<32x32xf32>
    %98 = vector.broadcast %75 : vector<1x32xf32> to vector<32x32xf32>
    %99 = arith.addf %97, %98 : vector<32x32xf32>
    %c320 = arith.constant 320 : index
    %c0_45 = arith.constant 0 : index
    %100 = vector.load %arg5[%c320, %c0_45] : memref<848x96xf32, #tpu.memory_space<vmem>>, vector<32x96xf32>
    %cst_46 = arith.constant dense<0.000000e+00> : vector<32x96xf32>
    %101 = tpu.matmul %99, %100, %cst_46 {dimension_numbers = #tpu.dot_dimension_numbers<[1], [0], [0], [1], [0, 0, 1, 1], [], []>} : vector<32x32xf32>, vector<32x96xf32>, vector<32x96xf32> -> vector<32x96xf32>
    %c736 = arith.constant 736 : index
    %c0_47 = arith.constant 0 : index
    %102 = vector.load %arg5[%c736, %c0_47] : memref<848x96xf32, #tpu.memory_space<vmem>>, vector<1x96xf32>
    %103 = vector.broadcast %102 : vector<1x96xf32> to vector<32x96xf32>
    %104 = arith.addf %101, %103 : vector<32x96xf32>
    %105 = vector.extract_strided_slice %104 {offsets = [0, 0], sizes = [32, 32], strides = [1, 1]} : vector<32x96xf32> to vector<32x32xf32>
    %106 = vector.extract_strided_slice %104 {offsets = [0, 32], sizes = [32, 32], strides = [1, 1]} : vector<32x96xf32> to vector<32x32xf32>
    %107 = vector.extract_strided_slice %104 {offsets = [0, 64], sizes = [32, 32], strides = [1, 1]} : vector<32x96xf32> to vector<32x32xf32>
    %108 = vector.broadcast %49 : vector<1x32xf32> to vector<32x32xf32>
    %109 = arith.mulf %105, %108 : vector<32x32xf32>
    %110 = vector.broadcast %57 : vector<1x32xf32> to vector<32x32xf32>
    %111 = arith.mulf %105, %110 : vector<32x32xf32>
    %112 = vector.broadcast %65 : vector<1x32xf32> to vector<32x32xf32>
    %113 = arith.mulf %105, %112 : vector<32x32xf32>
    %114 = vector.broadcast %73 : vector<1x32xf32> to vector<32x32xf32>
    %115 = arith.mulf %105, %114 : vector<32x32xf32>
    %116 = tpu.concatenate %109, %111, %113, %115 in 0 : vector<32x32xf32>, vector<32x32xf32>, vector<32x32xf32>, vector<32x32xf32> -> vector<128x32xf32>
    %117 = vector.broadcast %49 : vector<1x32xf32> to vector<32x32xf32>
    %118 = arith.mulf %106, %117 : vector<32x32xf32>
    %119 = vector.broadcast %57 : vector<1x32xf32> to vector<32x32xf32>
    %120 = arith.mulf %106, %119 : vector<32x32xf32>
    %121 = vector.broadcast %65 : vector<1x32xf32> to vector<32x32xf32>
    %122 = arith.mulf %106, %121 : vector<32x32xf32>
    %123 = vector.broadcast %73 : vector<1x32xf32> to vector<32x32xf32>
    %124 = arith.mulf %106, %123 : vector<32x32xf32>
    %125 = tpu.concatenate %118, %120, %122, %124 in 0 : vector<32x32xf32>, vector<32x32xf32>, vector<32x32xf32>, vector<32x32xf32> -> vector<128x32xf32>
    %126 = vector.broadcast %49 : vector<1x32xf32> to vector<32x32xf32>
    %127 = arith.mulf %107, %126 : vector<32x32xf32>
    %128 = vector.broadcast %57 : vector<1x32xf32> to vector<32x32xf32>
    %129 = arith.mulf %107, %128 : vector<32x32xf32>
    %130 = vector.broadcast %65 : vector<1x32xf32> to vector<32x32xf32>
    %131 = arith.mulf %107, %130 : vector<32x32xf32>
    %132 = vector.broadcast %73 : vector<1x32xf32> to vector<32x32xf32>
    %133 = arith.mulf %107, %132 : vector<32x32xf32>
    %134 = tpu.concatenate %127, %129, %131, %133 in 0 : vector<32x32xf32>, vector<32x32xf32>, vector<32x32xf32>, vector<32x32xf32> -> vector<128x32xf32>
    %cst_48 = arith.constant dense<0.000000e+00> : vector<128x128xf32>
    %135 = tpu.matmul %116, %125, %cst_48 {dimension_numbers = #tpu.dot_dimension_numbers<[1], [1], [0], [0], [0, 0, 1, 0], [], []>} : vector<128x32xf32>, vector<128x32xf32>, vector<128x128xf32> -> vector<128x128xf32>
    %136 = arith.addf %135, %40 : vector<128x128xf32>
    %cst_49 = arith.constant dense<0xFF800000> : vector<128xf32>
    %137 = vector.multi_reduction <maximumf>, %136, %cst_49 [1] : vector<128x128xf32> to vector<128xf32>
    %138 = vector.shape_cast %137 : vector<128xf32> to vector<128x1xf32>
    %139 = vector.broadcast %138 : vector<128x1xf32> to vector<128x128xf32>
    %140 = arith.subf %136, %139 : vector<128x128xf32>
    %141 = math.exp %140 : vector<128x128xf32>
    %cst_50 = arith.constant dense<0.000000e+00> : vector<128xf32>
    %142 = vector.multi_reduction <add>, %141, %cst_50 [1] : vector<128x128xf32> to vector<128xf32>
    %143 = vector.shape_cast %142 : vector<128xf32> to vector<128x1xf32>
    %144 = tpu.reciprocal %143 {approx = true} : vector<128x1xf32> -> vector<128x1xf32>
    %145 = vector.broadcast %144 : vector<128x1xf32> to vector<128x128xf32>
    %146 = arith.mulf %141, %145 : vector<128x128xf32>
    %cst_51 = arith.constant dense<0.000000e+00> : vector<128x32xf32>
    %147 = tpu.matmul %146, %134, %cst_51 {dimension_numbers = #tpu.dot_dimension_numbers<[1], [0], [0], [1], [0, 0, 1, 1], [], []>} : vector<128x128xf32>, vector<128x32xf32>, vector<128x32xf32> -> vector<128x32xf32>
    %148 = vector.extract_strided_slice %147 {offsets = [0, 0], sizes = [32, 32], strides = [1, 1]} : vector<128x32xf32> to vector<32x32xf32>
    %149 = vector.extract_strided_slice %147 {offsets = [32, 0], sizes = [32, 32], strides = [1, 1]} : vector<128x32xf32> to vector<32x32xf32>
    %150 = arith.addf %148, %149 : vector<32x32xf32>
    %151 = vector.extract_strided_slice %147 {offsets = [64, 0], sizes = [32, 32], strides = [1, 1]} : vector<128x32xf32> to vector<32x32xf32>
    %152 = arith.addf %150, %151 : vector<32x32xf32>
    %153 = vector.extract_strided_slice %147 {offsets = [96, 0], sizes = [32, 32], strides = [1, 1]} : vector<128x32xf32> to vector<32x32xf32>
    %154 = arith.addf %152, %153 : vector<32x32xf32>
    %c352 = arith.constant 352 : index
    %c0_52 = arith.constant 0 : index
    %155 = vector.load %arg5[%c352, %c0_52] : memref<848x96xf32, #tpu.memory_space<vmem>>, vector<32x32xf32>
    %cst_53 = arith.constant dense<0.000000e+00> : vector<32x32xf32>
    %156 = tpu.matmul %154, %155, %cst_53 {dimension_numbers = #tpu.dot_dimension_numbers<[1], [0], [0], [1], [0, 0, 1, 1], [], []>} : vector<32x32xf32>, vector<32x32xf32>, vector<32x32xf32> -> vector<32x32xf32>
    %157 = arith.addf %39, %156 : vector<32x32xf32>
    %c744 = arith.constant 744 : index
    %c0_54 = arith.constant 0 : index
    %158 = vector.load %arg5[%c744, %c0_54] : memref<848x96xf32, #tpu.memory_space<vmem>>, vector<1x32xf32>
    %159 = vector.broadcast %158 : vector<1x32xf32> to vector<32x32xf32>
    %160 = arith.addf %157, %159 : vector<32x32xf32>
    %c752 = arith.constant 752 : index
    %c0_55 = arith.constant 0 : index
    %161 = vector.load %arg5[%c752, %c0_55] : memref<848x96xf32, #tpu.memory_space<vmem>>, vector<1x32xf32>
    %c760 = arith.constant 760 : index
    %c0_56 = arith.constant 0 : index
    %162 = vector.load %arg5[%c760, %c0_56] : memref<848x96xf32, #tpu.memory_space<vmem>>, vector<1x32xf32>
    %cst_57 = arith.constant dense<0.000000e+00> : vector<32xf32>
    %163 = vector.multi_reduction <add>, %160, %cst_57 [1] : vector<32x32xf32> to vector<32xf32>
    %164 = vector.shape_cast %163 : vector<32xf32> to vector<32x1xf32>
    %165 = arith.mulf %160, %160 : vector<32x32xf32>
    %cst_58 = arith.constant dense<0.000000e+00> : vector<32xf32>
    %166 = vector.multi_reduction <add>, %165, %cst_58 [1] : vector<32x32xf32> to vector<32xf32>
    %167 = vector.shape_cast %166 : vector<32xf32> to vector<32x1xf32>
    %cst_59 = arith.constant 3.125000e-02 : f32
    %168 = vector.broadcast %cst_59 : f32 to vector<32x1xf32>
    %169 = arith.mulf %164, %168 : vector<32x1xf32>
    %cst_60 = arith.constant 3.125000e-02 : f32
    %170 = vector.broadcast %cst_60 : f32 to vector<32x1xf32>
    %171 = arith.mulf %167, %170 : vector<32x1xf32>
    %172 = arith.mulf %169, %169 : vector<32x1xf32>
    %173 = arith.subf %171, %172 : vector<32x1xf32>
    %cst_61 = arith.constant 0.000000e+00 : f32
    %174 = vector.broadcast %cst_61 : f32 to vector<32x1xf32>
    %175 = arith.maximumf %173, %174 : vector<32x1xf32>
    %176 = vector.broadcast %169 : vector<32x1xf32> to vector<32x32xf32>
    %177 = arith.subf %160, %176 : vector<32x32xf32>
    %cst_62 = arith.constant 9.99999996E-13 : f32
    %178 = vector.broadcast %cst_62 : f32 to vector<32x1xf32>
    %179 = arith.addf %175, %178 : vector<32x1xf32>
    %180 = math.rsqrt %179 : vector<32x1xf32>
    %181 = vector.broadcast %180 : vector<32x1xf32> to vector<32x32xf32>
    %182 = arith.mulf %177, %181 : vector<32x32xf32>
    %183 = vector.broadcast %161 : vector<1x32xf32> to vector<32x32xf32>
    %184 = arith.mulf %182, %183 : vector<32x32xf32>
    %185 = vector.broadcast %162 : vector<1x32xf32> to vector<32x32xf32>
    %186 = arith.addf %184, %185 : vector<32x32xf32>
    %c384 = arith.constant 384 : index
    %c0_63 = arith.constant 0 : index
    %187 = vector.load %arg5[%c384, %c0_63] : memref<848x96xf32, #tpu.memory_space<vmem>>, vector<32x64xf32>
    %cst_64 = arith.constant dense<0.000000e+00> : vector<32x64xf32>
    %188 = tpu.matmul %186, %187, %cst_64 {dimension_numbers = #tpu.dot_dimension_numbers<[1], [0], [0], [1], [0, 0, 1, 1], [], []>} : vector<32x32xf32>, vector<32x64xf32>, vector<32x64xf32> -> vector<32x64xf32>
    %c768 = arith.constant 768 : index
    %c0_65 = arith.constant 0 : index
    %189 = vector.load %arg5[%c768, %c0_65] : memref<848x96xf32, #tpu.memory_space<vmem>>, vector<1x64xf32>
    %190 = vector.broadcast %189 : vector<1x64xf32> to vector<32x64xf32>
    %191 = arith.addf %188, %190 : vector<32x64xf32>
    %cst_66 = arith.constant 5.000000e-01 : f32
    %192 = vector.broadcast %cst_66 : f32 to vector<32x64xf32>
    %193 = arith.mulf %192, %191 : vector<32x64xf32>
    %cst_67 = arith.constant 4.471500e-02 : f32
    %194 = vector.broadcast %cst_67 : f32 to vector<32x64xf32>
    %195 = arith.mulf %194, %191 : vector<32x64xf32>
    %196 = arith.mulf %195, %191 : vector<32x64xf32>
    %197 = arith.mulf %196, %191 : vector<32x64xf32>
    %198 = arith.addf %191, %197 : vector<32x64xf32>
    %cst_68 = arith.constant 0.797884583 : f32
    %199 = vector.broadcast %cst_68 : f32 to vector<32x64xf32>
    %200 = arith.mulf %199, %198 : vector<32x64xf32>
    %201 = math.tanh %200 : vector<32x64xf32>
    %cst_69 = arith.constant 1.000000e+00 : f32
    %202 = vector.broadcast %cst_69 : f32 to vector<32x64xf32>
    %203 = arith.addf %202, %201 : vector<32x64xf32>
    %204 = arith.mulf %193, %203 : vector<32x64xf32>
    %c416 = arith.constant 416 : index
    %c0_70 = arith.constant 0 : index
    %205 = vector.load %arg5[%c416, %c0_70] : memref<848x96xf32, #tpu.memory_space<vmem>>, vector<64x32xf32>
    %cst_71 = arith.constant dense<0.000000e+00> : vector<32x32xf32>
    %206 = tpu.matmul %204, %205, %cst_71 {dimension_numbers = #tpu.dot_dimension_numbers<[1], [0], [0], [1], [0, 0, 1, 1], [], []>} : vector<32x64xf32>, vector<64x32xf32>, vector<32x32xf32> -> vector<32x32xf32>
    %207 = arith.addf %160, %206 : vector<32x32xf32>
    %c776 = arith.constant 776 : index
    %c0_72 = arith.constant 0 : index
    %208 = vector.load %arg5[%c776, %c0_72] : memref<848x96xf32, #tpu.memory_space<vmem>>, vector<1x32xf32>
    %209 = vector.broadcast %208 : vector<1x32xf32> to vector<32x32xf32>
    %210 = arith.addf %207, %209 : vector<32x32xf32>
    %c784 = arith.constant 784 : index
    %c0_73 = arith.constant 0 : index
    %211 = vector.load %arg5[%c784, %c0_73] : memref<848x96xf32, #tpu.memory_space<vmem>>, vector<1x32xf32>
    %c792 = arith.constant 792 : index
    %c0_74 = arith.constant 0 : index
    %212 = vector.load %arg5[%c792, %c0_74] : memref<848x96xf32, #tpu.memory_space<vmem>>, vector<1x32xf32>
    %cst_75 = arith.constant dense<0.000000e+00> : vector<32xf32>
    %213 = vector.multi_reduction <add>, %210, %cst_75 [1] : vector<32x32xf32> to vector<32xf32>
    %214 = vector.shape_cast %213 : vector<32xf32> to vector<32x1xf32>
    %215 = arith.mulf %210, %210 : vector<32x32xf32>
    %cst_76 = arith.constant dense<0.000000e+00> : vector<32xf32>
    %216 = vector.multi_reduction <add>, %215, %cst_76 [1] : vector<32x32xf32> to vector<32xf32>
    %217 = vector.shape_cast %216 : vector<32xf32> to vector<32x1xf32>
    %cst_77 = arith.constant 3.125000e-02 : f32
    %218 = vector.broadcast %cst_77 : f32 to vector<32x1xf32>
    %219 = arith.mulf %214, %218 : vector<32x1xf32>
    %cst_78 = arith.constant 3.125000e-02 : f32
    %220 = vector.broadcast %cst_78 : f32 to vector<32x1xf32>
    %221 = arith.mulf %217, %220 : vector<32x1xf32>
    %222 = arith.mulf %219, %219 : vector<32x1xf32>
    %223 = arith.subf %221, %222 : vector<32x1xf32>
    %cst_79 = arith.constant 0.000000e+00 : f32
    %224 = vector.broadcast %cst_79 : f32 to vector<32x1xf32>
    %225 = arith.maximumf %223, %224 : vector<32x1xf32>
    %226 = vector.broadcast %219 : vector<32x1xf32> to vector<32x32xf32>
    %227 = arith.subf %210, %226 : vector<32x32xf32>
    %cst_80 = arith.constant 9.99999996E-13 : f32
    %228 = vector.broadcast %cst_80 : f32 to vector<32x1xf32>
    %229 = arith.addf %225, %228 : vector<32x1xf32>
    %230 = math.rsqrt %229 : vector<32x1xf32>
    %231 = vector.broadcast %230 : vector<32x1xf32> to vector<32x32xf32>
    %232 = arith.mulf %227, %231 : vector<32x32xf32>
    %233 = vector.broadcast %211 : vector<1x32xf32> to vector<32x32xf32>
    %234 = arith.mulf %232, %233 : vector<32x32xf32>
    %235 = vector.broadcast %212 : vector<1x32xf32> to vector<32x32xf32>
    %236 = arith.addf %234, %235 : vector<32x32xf32>
    %c480 = arith.constant 480 : index
    %c0_81 = arith.constant 0 : index
    %237 = vector.load %arg5[%c480, %c0_81] : memref<848x96xf32, #tpu.memory_space<vmem>>, vector<32x96xf32>
    %cst_82 = arith.constant dense<0.000000e+00> : vector<32x96xf32>
    %238 = tpu.matmul %236, %237, %cst_82 {dimension_numbers = #tpu.dot_dimension_numbers<[1], [0], [0], [1], [0, 0, 1, 1], [], []>} : vector<32x32xf32>, vector<32x96xf32>, vector<32x96xf32> -> vector<32x96xf32>
    %c800 = arith.constant 800 : index
    %c0_83 = arith.constant 0 : index
    %239 = vector.load %arg5[%c800, %c0_83] : memref<848x96xf32, #tpu.memory_space<vmem>>, vector<1x96xf32>
    %240 = vector.broadcast %239 : vector<1x96xf32> to vector<32x96xf32>
    %241 = arith.addf %238, %240 : vector<32x96xf32>
    %242 = vector.extract_strided_slice %241 {offsets = [0, 0], sizes = [32, 32], strides = [1, 1]} : vector<32x96xf32> to vector<32x32xf32>
    %243 = vector.extract_strided_slice %241 {offsets = [0, 32], sizes = [32, 32], strides = [1, 1]} : vector<32x96xf32> to vector<32x32xf32>
    %244 = vector.extract_strided_slice %241 {offsets = [0, 64], sizes = [32, 32], strides = [1, 1]} : vector<32x96xf32> to vector<32x32xf32>
    %245 = vector.broadcast %49 : vector<1x32xf32> to vector<32x32xf32>
    %246 = arith.mulf %242, %245 : vector<32x32xf32>
    %247 = vector.broadcast %57 : vector<1x32xf32> to vector<32x32xf32>
    %248 = arith.mulf %242, %247 : vector<32x32xf32>
    %249 = vector.broadcast %65 : vector<1x32xf32> to vector<32x32xf32>
    %250 = arith.mulf %242, %249 : vector<32x32xf32>
    %251 = vector.broadcast %73 : vector<1x32xf32> to vector<32x32xf32>
    %252 = arith.mulf %242, %251 : vector<32x32xf32>
    %253 = tpu.concatenate %246, %248, %250, %252 in 0 : vector<32x32xf32>, vector<32x32xf32>, vector<32x32xf32>, vector<32x32xf32> -> vector<128x32xf32>
    %254 = vector.broadcast %49 : vector<1x32xf32> to vector<32x32xf32>
    %255 = arith.mulf %243, %254 : vector<32x32xf32>
    %256 = vector.broadcast %57 : vector<1x32xf32> to vector<32x32xf32>
    %257 = arith.mulf %243, %256 : vector<32x32xf32>
    %258 = vector.broadcast %65 : vector<1x32xf32> to vector<32x32xf32>
    %259 = arith.mulf %243, %258 : vector<32x32xf32>
    %260 = vector.broadcast %73 : vector<1x32xf32> to vector<32x32xf32>
    %261 = arith.mulf %243, %260 : vector<32x32xf32>
    %262 = tpu.concatenate %255, %257, %259, %261 in 0 : vector<32x32xf32>, vector<32x32xf32>, vector<32x32xf32>, vector<32x32xf32> -> vector<128x32xf32>
    %263 = vector.broadcast %49 : vector<1x32xf32> to vector<32x32xf32>
    %264 = arith.mulf %244, %263 : vector<32x32xf32>
    %265 = vector.broadcast %57 : vector<1x32xf32> to vector<32x32xf32>
    %266 = arith.mulf %244, %265 : vector<32x32xf32>
    %267 = vector.broadcast %65 : vector<1x32xf32> to vector<32x32xf32>
    %268 = arith.mulf %244, %267 : vector<32x32xf32>
    %269 = vector.broadcast %73 : vector<1x32xf32> to vector<32x32xf32>
    %270 = arith.mulf %244, %269 : vector<32x32xf32>
    %271 = tpu.concatenate %264, %266, %268, %270 in 0 : vector<32x32xf32>, vector<32x32xf32>, vector<32x32xf32>, vector<32x32xf32> -> vector<128x32xf32>
    %cst_84 = arith.constant dense<0.000000e+00> : vector<128x128xf32>
    %272 = tpu.matmul %253, %262, %cst_84 {dimension_numbers = #tpu.dot_dimension_numbers<[1], [1], [0], [0], [0, 0, 1, 0], [], []>} : vector<128x32xf32>, vector<128x32xf32>, vector<128x128xf32> -> vector<128x128xf32>
    %273 = arith.addf %272, %40 : vector<128x128xf32>
    %cst_85 = arith.constant dense<0xFF800000> : vector<128xf32>
    %274 = vector.multi_reduction <maximumf>, %273, %cst_85 [1] : vector<128x128xf32> to vector<128xf32>
    %275 = vector.shape_cast %274 : vector<128xf32> to vector<128x1xf32>
    %276 = vector.broadcast %275 : vector<128x1xf32> to vector<128x128xf32>
    %277 = arith.subf %273, %276 : vector<128x128xf32>
    %278 = math.exp %277 : vector<128x128xf32>
    %cst_86 = arith.constant dense<0.000000e+00> : vector<128xf32>
    %279 = vector.multi_reduction <add>, %278, %cst_86 [1] : vector<128x128xf32> to vector<128xf32>
    %280 = vector.shape_cast %279 : vector<128xf32> to vector<128x1xf32>
    %281 = tpu.reciprocal %280 {approx = true} : vector<128x1xf32> -> vector<128x1xf32>
    %282 = vector.broadcast %281 : vector<128x1xf32> to vector<128x128xf32>
    %283 = arith.mulf %278, %282 : vector<128x128xf32>
    %cst_87 = arith.constant dense<0.000000e+00> : vector<128x32xf32>
    %284 = tpu.matmul %283, %271, %cst_87 {dimension_numbers = #tpu.dot_dimension_numbers<[1], [0], [0], [1], [0, 0, 1, 1], [], []>} : vector<128x128xf32>, vector<128x32xf32>, vector<128x32xf32> -> vector<128x32xf32>
    %285 = vector.extract_strided_slice %284 {offsets = [0, 0], sizes = [32, 32], strides = [1, 1]} : vector<128x32xf32> to vector<32x32xf32>
    %286 = vector.extract_strided_slice %284 {offsets = [32, 0], sizes = [32, 32], strides = [1, 1]} : vector<128x32xf32> to vector<32x32xf32>
    %287 = arith.addf %285, %286 : vector<32x32xf32>
    %288 = vector.extract_strided_slice %284 {offsets = [64, 0], sizes = [32, 32], strides = [1, 1]} : vector<128x32xf32> to vector<32x32xf32>
    %289 = arith.addf %287, %288 : vector<32x32xf32>
    %290 = vector.extract_strided_slice %284 {offsets = [96, 0], sizes = [32, 32], strides = [1, 1]} : vector<128x32xf32> to vector<32x32xf32>
    %291 = arith.addf %289, %290 : vector<32x32xf32>
    %c512 = arith.constant 512 : index
    %c0_88 = arith.constant 0 : index
    %292 = vector.load %arg5[%c512, %c0_88] : memref<848x96xf32, #tpu.memory_space<vmem>>, vector<32x32xf32>
    %cst_89 = arith.constant dense<0.000000e+00> : vector<32x32xf32>
    %293 = tpu.matmul %291, %292, %cst_89 {dimension_numbers = #tpu.dot_dimension_numbers<[1], [0], [0], [1], [0, 0, 1, 1], [], []>} : vector<32x32xf32>, vector<32x32xf32>, vector<32x32xf32> -> vector<32x32xf32>
    %294 = arith.addf %210, %293 : vector<32x32xf32>
    %c808 = arith.constant 808 : index
    %c0_90 = arith.constant 0 : index
    %295 = vector.load %arg5[%c808, %c0_90] : memref<848x96xf32, #tpu.memory_space<vmem>>, vector<1x32xf32>
    %296 = vector.broadcast %295 : vector<1x32xf32> to vector<32x32xf32>
    %297 = arith.addf %294, %296 : vector<32x32xf32>
    %c816 = arith.constant 816 : index
    %c0_91 = arith.constant 0 : index
    %298 = vector.load %arg5[%c816, %c0_91] : memref<848x96xf32, #tpu.memory_space<vmem>>, vector<1x32xf32>
    %c824 = arith.constant 824 : index
    %c0_92 = arith.constant 0 : index
    %299 = vector.load %arg5[%c824, %c0_92] : memref<848x96xf32, #tpu.memory_space<vmem>>, vector<1x32xf32>
    %cst_93 = arith.constant dense<0.000000e+00> : vector<32xf32>
    %300 = vector.multi_reduction <add>, %297, %cst_93 [1] : vector<32x32xf32> to vector<32xf32>
    %301 = vector.shape_cast %300 : vector<32xf32> to vector<32x1xf32>
    %302 = arith.mulf %297, %297 : vector<32x32xf32>
    %cst_94 = arith.constant dense<0.000000e+00> : vector<32xf32>
    %303 = vector.multi_reduction <add>, %302, %cst_94 [1] : vector<32x32xf32> to vector<32xf32>
    %304 = vector.shape_cast %303 : vector<32xf32> to vector<32x1xf32>
    %cst_95 = arith.constant 3.125000e-02 : f32
    %305 = vector.broadcast %cst_95 : f32 to vector<32x1xf32>
    %306 = arith.mulf %301, %305 : vector<32x1xf32>
    %cst_96 = arith.constant 3.125000e-02 : f32
    %307 = vector.broadcast %cst_96 : f32 to vector<32x1xf32>
    %308 = arith.mulf %304, %307 : vector<32x1xf32>
    %309 = arith.mulf %306, %306 : vector<32x1xf32>
    %310 = arith.subf %308, %309 : vector<32x1xf32>
    %cst_97 = arith.constant 0.000000e+00 : f32
    %311 = vector.broadcast %cst_97 : f32 to vector<32x1xf32>
    %312 = arith.maximumf %310, %311 : vector<32x1xf32>
    %313 = vector.broadcast %306 : vector<32x1xf32> to vector<32x32xf32>
    %314 = arith.subf %297, %313 : vector<32x32xf32>
    %cst_98 = arith.constant 9.99999996E-13 : f32
    %315 = vector.broadcast %cst_98 : f32 to vector<32x1xf32>
    %316 = arith.addf %312, %315 : vector<32x1xf32>
    %317 = math.rsqrt %316 : vector<32x1xf32>
    %318 = vector.broadcast %317 : vector<32x1xf32> to vector<32x32xf32>
    %319 = arith.mulf %314, %318 : vector<32x32xf32>
    %320 = vector.broadcast %298 : vector<1x32xf32> to vector<32x32xf32>
    %321 = arith.mulf %319, %320 : vector<32x32xf32>
    %322 = vector.broadcast %299 : vector<1x32xf32> to vector<32x32xf32>
    %323 = arith.addf %321, %322 : vector<32x32xf32>
    %c544 = arith.constant 544 : index
    %c0_99 = arith.constant 0 : index
    %324 = vector.load %arg5[%c544, %c0_99] : memref<848x96xf32, #tpu.memory_space<vmem>>, vector<32x64xf32>
    %cst_100 = arith.constant dense<0.000000e+00> : vector<32x64xf32>
    %325 = tpu.matmul %323, %324, %cst_100 {dimension_numbers = #tpu.dot_dimension_numbers<[1], [0], [0], [1], [0, 0, 1, 1], [], []>} : vector<32x32xf32>, vector<32x64xf32>, vector<32x64xf32> -> vector<32x64xf32>
    %c832 = arith.constant 832 : index
    %c0_101 = arith.constant 0 : index
    %326 = vector.load %arg5[%c832, %c0_101] : memref<848x96xf32, #tpu.memory_space<vmem>>, vector<1x64xf32>
    %327 = vector.broadcast %326 : vector<1x64xf32> to vector<32x64xf32>
    %328 = arith.addf %325, %327 : vector<32x64xf32>
    %cst_102 = arith.constant 5.000000e-01 : f32
    %329 = vector.broadcast %cst_102 : f32 to vector<32x64xf32>
    %330 = arith.mulf %329, %328 : vector<32x64xf32>
    %cst_103 = arith.constant 4.471500e-02 : f32
    %331 = vector.broadcast %cst_103 : f32 to vector<32x64xf32>
    %332 = arith.mulf %331, %328 : vector<32x64xf32>
    %333 = arith.mulf %332, %328 : vector<32x64xf32>
    %334 = arith.mulf %333, %328 : vector<32x64xf32>
    %335 = arith.addf %328, %334 : vector<32x64xf32>
    %cst_104 = arith.constant 0.797884583 : f32
    %336 = vector.broadcast %cst_104 : f32 to vector<32x64xf32>
    %337 = arith.mulf %336, %335 : vector<32x64xf32>
    %338 = math.tanh %337 : vector<32x64xf32>
    %cst_105 = arith.constant 1.000000e+00 : f32
    %339 = vector.broadcast %cst_105 : f32 to vector<32x64xf32>
    %340 = arith.addf %339, %338 : vector<32x64xf32>
    %341 = arith.mulf %330, %340 : vector<32x64xf32>
    %c576 = arith.constant 576 : index
    %c0_106 = arith.constant 0 : index
    %342 = vector.load %arg5[%c576, %c0_106] : memref<848x96xf32, #tpu.memory_space<vmem>>, vector<64x32xf32>
    %cst_107 = arith.constant dense<0.000000e+00> : vector<32x32xf32>
    %343 = tpu.matmul %341, %342, %cst_107 {dimension_numbers = #tpu.dot_dimension_numbers<[1], [0], [0], [1], [0, 0, 1, 1], [], []>} : vector<32x64xf32>, vector<64x32xf32>, vector<32x32xf32> -> vector<32x32xf32>
    %344 = arith.addf %297, %343 : vector<32x32xf32>
    %c840 = arith.constant 840 : index
    %c0_108 = arith.constant 0 : index
    %345 = vector.load %arg5[%c840, %c0_108] : memref<848x96xf32, #tpu.memory_space<vmem>>, vector<1x32xf32>
    %346 = vector.broadcast %345 : vector<1x32xf32> to vector<32x32xf32>
    %347 = arith.addf %344, %346 : vector<32x32xf32>
    %c664 = arith.constant 664 : index
    %c0_109 = arith.constant 0 : index
    %348 = vector.load %arg5[%c664, %c0_109] : memref<848x96xf32, #tpu.memory_space<vmem>>, vector<1x32xf32>
    %c672 = arith.constant 672 : index
    %c0_110 = arith.constant 0 : index
    %349 = vector.load %arg5[%c672, %c0_110] : memref<848x96xf32, #tpu.memory_space<vmem>>, vector<1x32xf32>
    %cst_111 = arith.constant dense<0.000000e+00> : vector<32xf32>
    %350 = vector.multi_reduction <add>, %347, %cst_111 [1] : vector<32x32xf32> to vector<32xf32>
    %351 = vector.shape_cast %350 : vector<32xf32> to vector<32x1xf32>
    %352 = arith.mulf %347, %347 : vector<32x32xf32>
    %cst_112 = arith.constant dense<0.000000e+00> : vector<32xf32>
    %353 = vector.multi_reduction <add>, %352, %cst_112 [1] : vector<32x32xf32> to vector<32xf32>
    %354 = vector.shape_cast %353 : vector<32xf32> to vector<32x1xf32>
    %cst_113 = arith.constant 3.125000e-02 : f32
    %355 = vector.broadcast %cst_113 : f32 to vector<32x1xf32>
    %356 = arith.mulf %351, %355 : vector<32x1xf32>
    %cst_114 = arith.constant 3.125000e-02 : f32
    %357 = vector.broadcast %cst_114 : f32 to vector<32x1xf32>
    %358 = arith.mulf %354, %357 : vector<32x1xf32>
    %359 = arith.mulf %356, %356 : vector<32x1xf32>
    %360 = arith.subf %358, %359 : vector<32x1xf32>
    %cst_115 = arith.constant 0.000000e+00 : f32
    %361 = vector.broadcast %cst_115 : f32 to vector<32x1xf32>
    %362 = arith.maximumf %360, %361 : vector<32x1xf32>
    %363 = vector.broadcast %356 : vector<32x1xf32> to vector<32x32xf32>
    %364 = arith.subf %347, %363 : vector<32x32xf32>
    %cst_116 = arith.constant 9.99999996E-13 : f32
    %365 = vector.broadcast %cst_116 : f32 to vector<32x1xf32>
    %366 = arith.addf %362, %365 : vector<32x1xf32>
    %367 = math.rsqrt %366 : vector<32x1xf32>
    %368 = vector.broadcast %367 : vector<32x1xf32> to vector<32x32xf32>
    %369 = arith.mulf %364, %368 : vector<32x32xf32>
    %370 = vector.broadcast %348 : vector<1x32xf32> to vector<32x32xf32>
    %371 = arith.mulf %369, %370 : vector<32x32xf32>
    %372 = vector.broadcast %349 : vector<1x32xf32> to vector<32x32xf32>
    %373 = arith.addf %371, %372 : vector<32x32xf32>
    %c192 = arith.constant 192 : index
    %c0_117 = arith.constant 0 : index
    %374 = vector.load %arg5[%c192, %c0_117] : memref<848x96xf32, #tpu.memory_space<vmem>>, vector<32x32xf32>
    %cst_118 = arith.constant dense<0.000000e+00> : vector<32x32xf32>
    %375 = tpu.matmul %373, %374, %cst_118 {dimension_numbers = #tpu.dot_dimension_numbers<[1], [0], [0], [1], [0, 0, 1, 1], [], []>} : vector<32x32xf32>, vector<32x32xf32>, vector<32x32xf32> -> vector<32x32xf32>
    %c680 = arith.constant 680 : index
    %c0_119 = arith.constant 0 : index
    %376 = vector.load %arg5[%c680, %c0_119] : memref<848x96xf32, #tpu.memory_space<vmem>>, vector<1x32xf32>
    %377 = vector.broadcast %376 : vector<1x32xf32> to vector<32x32xf32>
    %378 = arith.addf %375, %377 : vector<32x32xf32>
    %379 = math.tanh %378 : vector<32x32xf32>
    %c224 = arith.constant 224 : index
    %c0_120 = arith.constant 0 : index
    %380 = vector.load %arg5[%c224, %c0_120] : memref<848x96xf32, #tpu.memory_space<vmem>>, vector<32x64xf32>
    %cst_121 = arith.constant dense<0.000000e+00> : vector<32x64xf32>
    %381 = tpu.matmul %379, %380, %cst_121 {dimension_numbers = #tpu.dot_dimension_numbers<[1], [0], [0], [1], [0, 0, 1, 1], [], []>} : vector<32x32xf32>, vector<32x64xf32>, vector<32x64xf32> -> vector<32x64xf32>
    %c688 = arith.constant 688 : index
    %c0_122 = arith.constant 0 : index
    %382 = vector.load %arg5[%c688, %c0_122] : memref<848x96xf32, #tpu.memory_space<vmem>>, vector<1x64xf32>
    %383 = vector.broadcast %382 : vector<1x64xf32> to vector<32x64xf32>
    %384 = arith.addf %381, %383 : vector<32x64xf32>
    %c696 = arith.constant 696 : index
    %c0_123 = arith.constant 0 : index
    %385 = vector.load %arg5[%c696, %c0_123] : memref<848x96xf32, #tpu.memory_space<vmem>>, vector<1x64xf32>
    %c704 = arith.constant 704 : index
    %c0_124 = arith.constant 0 : index
    %386 = vector.load %arg5[%c704, %c0_124] : memref<848x96xf32, #tpu.memory_space<vmem>>, vector<1x64xf32>
    %cst_125 = arith.constant dense<0.000000e+00> : vector<32xf32>
    %387 = vector.multi_reduction <add>, %384, %cst_125 [1] : vector<32x64xf32> to vector<32xf32>
    %388 = vector.shape_cast %387 : vector<32xf32> to vector<32x1xf32>
    %389 = arith.mulf %384, %384 : vector<32x64xf32>
    %cst_126 = arith.constant dense<0.000000e+00> : vector<32xf32>
    %390 = vector.multi_reduction <add>, %389, %cst_126 [1] : vector<32x64xf32> to vector<32xf32>
    %391 = vector.shape_cast %390 : vector<32xf32> to vector<32x1xf32>
    %cst_127 = arith.constant 1.562500e-02 : f32
    %392 = vector.broadcast %cst_127 : f32 to vector<32x1xf32>
    %393 = arith.mulf %388, %392 : vector<32x1xf32>
    %cst_128 = arith.constant 1.562500e-02 : f32
    %394 = vector.broadcast %cst_128 : f32 to vector<32x1xf32>
    %395 = arith.mulf %391, %394 : vector<32x1xf32>
    %396 = arith.mulf %393, %393 : vector<32x1xf32>
    %397 = arith.subf %395, %396 : vector<32x1xf32>
    %cst_129 = arith.constant 0.000000e+00 : f32
    %398 = vector.broadcast %cst_129 : f32 to vector<32x1xf32>
    %399 = arith.maximumf %397, %398 : vector<32x1xf32>
    %400 = vector.broadcast %393 : vector<32x1xf32> to vector<32x64xf32>
    %401 = arith.subf %384, %400 : vector<32x64xf32>
    %cst_130 = arith.constant 9.99999996E-13 : f32
    %402 = vector.broadcast %cst_130 : f32 to vector<32x1xf32>
    %403 = arith.addf %399, %402 : vector<32x1xf32>
    %404 = math.rsqrt %403 : vector<32x1xf32>
    %405 = vector.broadcast %404 : vector<32x1xf32> to vector<32x64xf32>
    %406 = arith.mulf %401, %405 : vector<32x64xf32>
    %407 = vector.broadcast %385 : vector<1x64xf32> to vector<32x64xf32>
    %408 = arith.mulf %406, %407 : vector<32x64xf32>
    %409 = vector.broadcast %386 : vector<1x64xf32> to vector<32x64xf32>
    %410 = arith.addf %408, %409 : vector<32x64xf32>
    %cst_131 = arith.constant 5.000000e-01 : f32
    %411 = vector.broadcast %cst_131 : f32 to vector<32x64xf32>
    %412 = arith.mulf %411, %410 : vector<32x64xf32>
    %cst_132 = arith.constant 4.471500e-02 : f32
    %413 = vector.broadcast %cst_132 : f32 to vector<32x64xf32>
    %414 = arith.mulf %413, %410 : vector<32x64xf32>
    %415 = arith.mulf %414, %410 : vector<32x64xf32>
    %416 = arith.mulf %415, %410 : vector<32x64xf32>
    %417 = arith.addf %410, %416 : vector<32x64xf32>
    %cst_133 = arith.constant 0.797884583 : f32
    %418 = vector.broadcast %cst_133 : f32 to vector<32x64xf32>
    %419 = arith.mulf %418, %417 : vector<32x64xf32>
    %420 = math.tanh %419 : vector<32x64xf32>
    %cst_134 = arith.constant 1.000000e+00 : f32
    %421 = vector.broadcast %cst_134 : f32 to vector<32x64xf32>
    %422 = arith.addf %421, %420 : vector<32x64xf32>
    %423 = arith.mulf %412, %422 : vector<32x64xf32>
    %c256 = arith.constant 256 : index
    %c0_135 = arith.constant 0 : index
    %424 = vector.load %arg5[%c256, %c0_135] : memref<848x96xf32, #tpu.memory_space<vmem>>, vector<64x12xf32>
    %cst_136 = arith.constant dense<0.000000e+00> : vector<32x12xf32>
    %425 = tpu.matmul %423, %424, %cst_136 {dimension_numbers = #tpu.dot_dimension_numbers<[1], [0], [0], [1], [0, 0, 1, 1], [], []>} : vector<32x64xf32>, vector<64x12xf32>, vector<32x12xf32> -> vector<32x12xf32>
    %c712 = arith.constant 712 : index
    %c0_137 = arith.constant 0 : index
    %426 = vector.load %arg5[%c712, %c0_137] : memref<848x96xf32, #tpu.memory_space<vmem>>, vector<1x12xf32>
    %427 = vector.broadcast %426 : vector<1x12xf32> to vector<32x12xf32>
    %428 = arith.addf %425, %427 : vector<32x12xf32>
    %c0_138 = arith.constant 0 : index
    %c0_139 = arith.constant 0 : index
    %429 = vector.load %arg6[%c0_138, %c0_139] : memref<32x12xf32, #tpu.memory_space<vmem>>, vector<32x12xf32>
    tpu.vector_store %arg6[%c0_138, %c0_139], %428 {strides = array<i32>} : memref<32x12xf32, #tpu.memory_space<vmem>>, vector<32x12xf32>,
    return
  }
  func.func @transform_0(%arg0: i32) -> (i32, i32) {
    %c0_i32 = arith.constant 0 : i32
    %c0_i32_0 = arith.constant 0 : i32
    %c0_i32_1 = arith.constant 0 : i32
    return %c0_i32, %c0_i32_0 : i32, i32
  }
  func.func @transform_1(%arg0: i32) -> (i32, i32) {
    %c0_i32 = arith.constant 0 : i32
    %c0_i32_0 = arith.constant 0 : i32
    %c0_i32_1 = arith.constant 0 : i32
    return %c0_i32, %c0_i32_0 : i32, i32
  }
  func.func @transform_2(%arg0: i32) -> (i32, i32) {
    %c0_i32 = arith.constant 0 : i32
    %c0_i32_0 = arith.constant 0 : i32
    %c0_i32_1 = arith.constant 0 : i32
    return %c0_i32, %c0_i32_0 : i32, i32
  }
  func.func @transform_3(%arg0: i32) -> (i32, i32) {
    %c0_i32 = arith.constant 0 : i32
    %c0_i32_0 = arith.constant 0 : i32
    %c0_i32_1 = arith.constant 0 : i32
    return %c0_i32, %c0_i32_0 : i32, i32
  }
  func.func @transform_4(%arg0: i32) -> (i32, i32) {
    %c0_i32 = arith.constant 0 : i32
    %c0_i32_0 = arith.constant 0 : i32
    %c0_i32_1 = arith.constant 0 : i32
    return %c0_i32, %c0_i32_0 : i32, i32
  }
  func.func @transform_5(%arg0: i32) -> (i32, i32) {
    %c0_i32 = arith.constant 0 : i32
    %c0_i32_0 = arith.constant 0 : i32
    %c0_i32_1 = arith.constant 0 : i32
    return %c0_i32, %c0_i32_0 : i32, i32
  }
}

</mosaic_0001>

<bundles_post_ra>
// kernel: tile.25
= control target key start
LH: loop header
LB: loop body
LE: loop exit
PB: predicated region body
PF: predicated region fallthrough
CT: control target
= control target key end

     0   :  { %s22_s0 = inlined_call_operand.vmem [shape: s32[32], index: 0, kind: input, shape index: {}]   ;;  %s23_s1 = inlined_call_operand.vmem [shape: s32[4,32], index: 1, kind: output, shape index: {}]  }
   0x1   :  { %v4_v0 = vld [vmem:[%s22_s0] ss:$0 sm:$0xff] }
   0x2   :  { %5 = vst [vmem:[%s23_s1] sm:$0xf] %v4_v0 }

// kernel: eq.22
= control target key start
LH: loop header
LB: loop body
LE: loop exit
PB: predicated region body
PF: predicated region fallthrough
CT: control target
= control target key end

     0   :  { %vm8_vm0 = vcmask 261120   ;;  %s40_s8 = smov 32   ;;  %s41_s9 = smov 64   ;;  %vm14_vm1 = vcmask 1048320   ;;  %vm20_vm2 = vcmask 785920   ;;  %vm26_vm3 = vcmask 523520   ;;  %s58_s0 = inlined_call_operand.vmem [shape: s32[4,32], index: 0, kind: input, shape index: {}]   ;;  %s59_s1 = inlined_call_operand.vmem [shape: s32[128], index: 1, kind: output, shape index: {}]  }
   0x1   :  { %v5_v0 = vld [vmem:[%s58_s0] sm:$0xf]  ;;  %s39_s0 = smov 96  }
   0x2   :  { %6 = vst [vmem:[#allocation1] sm:$0xf] %v5_v0 }
   0x9   :  { %v11_v1 = vld [vmem:[#allocation1 + $0x3] sm:$0x1]   ;;  %v23_v2 = vld [vmem:[#allocation1 + $0x1] sm:$0x1]   ;;  %v7_v3 = vld [vmem:[#allocation1] sm:$0x1]  }
   0xa   :  { %12 = vrot.lane.b32.xlu0 %v11_v1, %s39_s0  ;;  %24 = vrot.lane.b32.xlu1 %v23_v2, %s40_s8  ;;  %v17_v4 = vld [vmem:[#allocation1 + $0x2] sm:$0x1]   ;;  %9 = vst.msk [vmem:[#allocation0] sm:$0x1] %vm8_vm0, %v7_v3  }
   0xe   :  { %18 = vrot.lane.b32.xlu0 %v17_v4, %s41_s9 }
  0x7c   :  { %v13_v5 = vpop.permute.xlu0 %12   ;;  %v25_v6 = vpop.permute.xlu1 %24  }
  0x7d   :  { %15 = vst.msk [vmem:[#allocation0] sm:$0x1] %vm14_vm1, %v13_v5  }
  0x80   :  { %v19_v7 = vpop.permute.xlu0 %18  }
  0x81   :  { %21 = vst.msk [vmem:[#allocation0] sm:$0x1] %vm20_vm2, %v19_v7  }
  0x82   :  { %27 = vst.msk [vmem:[#allocation0] sm:$0x1] %vm26_vm3, %v25_v6  }
  0x89   :  { %v32_v8 = vld [vmem:[#allocation0] sm:$0x1] }
  0x8a   :  { %35 = vst [vmem:[%s59_s1] sm:$0x1] %v32_v8 }

// kernel: tile.21
= control target key start
LH: loop header
LB: loop body
LE: loop exit
PB: predicated region body
PF: predicated region fallthrough
CT: control target
= control target key end

     0   :  { %vm3_vm0 = vcmask 261120   ;;  %s34_s0 = inlined_call_operand.vmem [shape: f32[2,5,32], index: 0, kind: input, shape index: {}]   ;;  %s35_s1 = inlined_call_operand.vmem [shape: f32[10,32], index: 1, kind: output, shape index: {}]  }
   0x1   :  { %v2_v0 = vld [vmem:[%s34_s0] sm:$0x1f]   ;;  %v10_v1 = vld [vmem:[%s34_s0 + $0x8] sm:$0x1f]  }
   0x2   :  { %4 = vst.msk [vmem:[%s35_s1] sm:$0x1f] %vm3_vm0, %v2_v0   ;;  %11 = vst.msk [vmem:[%s35_s1 + $0x5] sm:$0x1f] %vm3_vm0, %v10_v1  }

// kernel: vilt_forward.1
= control target key start
LH: loop header
LB: loop body
LE: loop exit
PB: predicated region body
PF: predicated region fallthrough
CT: control target
= control target key end

     0   :  { %vm24_vm0 = vcmask 261120   ;;  %v4502_v0 = vmov 0.0   ;;  %vm106_vm1 = vcmask 523264   ;;  %vm195_vm2 = vcmask 254976   ;;  %s4504_s23 = smov 96   ;;  %s4505_s24 = smov 64   ;;  %s5949_s4 = inlined_call_operand.vmem [shape: f32[848,96], index: 4, kind: input, shape index: {}]   ;;  %s5950_s0 = inlined_call_operand.vmem [shape: f32[16,32], index: 0, kind: input, shape index: {}]   ;;  %s5951_s1 = inlined_call_operand.vmem [shape: f32[10,192], index: 1, kind: input, shape index: {}]   ;;  %s5952_s2 = inlined_call_operand.vmem [shape: f32[10,32], index: 2, kind: input, shape index: {}]   ;;  %s5953_s3 = inlined_call_operand.vmem [shape: f32[128,128], index: 3, kind: input, shape index: {}]   ;;  %s5954_s5 = inlined_call_operand.vmem [shape: f32[32,12], index: 5, kind: output, shape index: {}]  }
   0x1   :  { %113 = vmatprep.subr.mxu0 %v4502_v0  ;;  %v95_v1 = vld [vmem:[%s5949_s4 + $0x78] sm:$0xff]  ;;  %v4543_v2 = vld [vmem:[%s5950_s0] sm:$0xff]  ;;  %188 = vst.msk [vmem:[#allocation2] sm:$0xff] %vm24_vm0, %v4502_v0  ;;  %189 = vst.msk [vmem:[#allocation2 + $0x8] sm:$0xff] %vm24_vm0, %v4502_v0  ;;  %vm3449_vm13 = vcmask 97280  }
   0x2   :  { %190 = vst.msk [vmem:[#allocation2 + $0x10] sm:$0xff] %vm24_vm0, %v4502_v0  ;;  %191 = vst.msk [vmem:[#allocation2 + $0x18] sm:$0xff] %vm24_vm0, %v4502_v0  ;;  %v94_v3 = vld [vmem:[%s5949_s4 + $0x70] sm:$0xff]  ;;  %114 = vmatpush1.msra.mxu0 %v95_v1  ;;  %v25_v4 = vsel %vm24_vm0, %v4543_v2, 0.0  ;;  %v31_v5 = vmul.f32 %v4543_v2, %v4543_v2  ;;  %v4563_v6 = vld [vmem:[%s5950_s0 + $0x8] sm:$0xff] }
   0x3   :  { %115 = vmatprep.subr.mxu0 %v4502_v0  ;;  %26 = vadd.xlane.f32.xlu0 %v25_v4  ;;  %v93_v7 = vld [vmem:[%s5949_s4 + $0x68] sm:$0xff]  ;;  %v32_v8 = vmul.f32 %v4563_v6, %v4563_v6  ;;  %v28_v10 = vsel %vm24_vm0, %v4563_v6, 0.0  ;;  %v92_v11 = vld [vmem:[%s5949_s4 + $0x60] sm:$0xff]  ;;  %v91_v13 = vld [vmem:[%s5949_s4 + $0x58] sm:$0xff] }
   0x4   :  { %116 = vmatpush1.msra.mxu0 %v94_v3  ;;  %v33_v9 = vsel %vm24_vm0, %v31_v5, 0.0  ;;  %v90_v14 = vld [vmem:[%s5949_s4 + $0x50] sm:$0xff]  ;;  %v77_v15 = vld [vmem:[%s5951_s1 + $0x8] sm:$0xff]  ;;  %v88_v17 = vld [vmem:[%s5949_s4 + $0x40] sm:$0xff] }
   0x5   :  { %117 = vmatprep.subr.mxu0 %v4502_v0  ;;  %34 = vadd.xlane.f32.xlu1 %v33_v9  ;;  %v36_v12 = vsel %vm24_vm0, %v32_v8, 0.0  ;;  %v89_v16 = vld [vmem:[%s5949_s4 + $0x48] sm:$0xff]  ;;  %v87_v18 = vld [vmem:[%s5949_s4 + $0x38] sm:$0xff]  ;;  %v86_v19 = vld [vmem:[%s5949_s4 + $0x30] sm:$0xff] }
   0x6   :  { %118 = vmatpush1.msra.mxu0 %v93_v7  ;;  %3461 = vmatprep.mubr.msk.f32.mxu0 %vm106_vm1, %v77_v15  ;;  %v85_v20 = vld [vmem:[%s5949_s4 + $0x28] sm:$0xff]  ;;  %v84_v21 = vld [vmem:[%s5949_s4 + $0x20] sm:$0xff]  ;;  %v83_v22 = vld [vmem:[%s5949_s4 + $0x18] sm:$0xff] }
   0x7   :  { %119 = vmatprep.subr.mxu0 %v4502_v0  ;;  %29 = vadd.xlane.f32.xlu0 %v28_v10  ;;  %v82_v23 = vld [vmem:[%s5949_s4 + $0x10] sm:$0xff]  ;;  %v81_v24 = vld [vmem:[%s5949_s4 + $0x8] sm:$0xff]  ;;  %v80_v25 = vld [vmem:[%s5949_s4] sm:$0xff] }
   0x8   :  { %120 = vmatpush1.msra.mxu0 %v92_v11  ;;  %v103_v26 = vld [vmem:[%s5949_s4 + $0xb8] sm:$0xff]  ;;  %v102_v27 = vld [vmem:[%s5949_s4 + $0xb0] sm:$0xff]  ;;  %v101_v28 = vld [vmem:[%s5949_s4 + $0xa8] sm:$0xff] }
   0x9   :  { %121 = vmatprep.subr.mxu0 %v4502_v0  ;;  %37 = vadd.xlane.f32.xlu1 %v36_v12  ;;  %v100_v29 = vld [vmem:[%s5949_s4 + $0xa0] sm:$0xff]  ;;  %v99_v30 = vld [vmem:[%s5949_s4 + $0x98] sm:$0xff]  ;;  %v98_v31 = vld [vmem:[%s5949_s4 + $0x90] sm:$0xff] }
   0xa   :  { %122 = vmatpush1.msra.mxu0 %v91_v13  ;;  %v97_v32 = vld [vmem:[%s5949_s4 + $0x88] sm:$0xff]  ;;  %v96_v33 = vld [vmem:[%s5949_s4 + $0x80] sm:$0xff]  ;;  %v79_v35 = vld [vmem:[%s5951_s1 + $0x18] sm:$0x3] }
   0xb   :  { %123 = vmatprep.subr.mxu0 %v4502_v0  ;;  %v76_v34 = vld [vmem:[%s5951_s1] sm:$0xff]  ;;  %v78_v36 = vld [vmem:[%s5951_s1 + $0x10] sm:$0x3]  ;;  %v3459_v58 = vld [vmem:[%s5949_s4 + $0x288] ss:$0 sm:$0xff] }
   0xc   :  { %124 = vmatpush1.msra.mxu0 %v90_v14  ;;  %v3458_v55 = vld [vmem:[%s5949_s4 + $0x280] ss:$0 sm:$0xff]  ;;  %v3460_v61 = vld [vmem:[%s5949_s4 + $0x290] ss:$0 sm:$0xff]  ;;  %v320_v13 = vld [vmem:[%s5949_s4 + $0x158] sm:$0xff] }
   0xd   :  { %125 = vmatprep.subr.mxu0 %v4502_v0  ;;  %v319_v14 = vld [vmem:[%s5949_s4 + $0x150] sm:$0xff]  ;;  %3822 = vmatprep.subr.mxu1 %v320_v13  ;;  %v318_v15 = vld [vmem:[%s5949_s4 + $0x148] sm:$0xff] }
   0xe   :  { %126 = vmatpush1.msra.mxu0 %v89_v16  ;;  %3823 = vmatpush3.msra.mxu1 %v320_v13  ;;  %v317_v16 = vld [vmem:[%s5949_s4 + $0x140] sm:$0xff] }
   0xf   :  { %127 = vmatprep.subr.mxu0 %v4502_v0  ;;  %3824 = vmatprep.subr.mxu1 %v319_v14 }
  0x10   :  { %128 = vmatpush1.msra.mxu0 %v88_v17  ;;  %3825 = vmatpush3.msra.mxu1 %v319_v14  ;;  %v104_v17 = vld [vmem:[%s5952_s2] sm:$0xff] }
  0x11   :  { %129 = vmatprep.subr.mxu0 %v4502_v0  ;;  %3826 = vmatprep.subr.mxu1 %v318_v15 }
  0x12   :  { %130 = vmatpush1.msra.mxu0 %v87_v18  ;;  %3827 = vmatpush3.msra.mxu1 %v318_v15 }
  0x13   :  { %131 = vmatprep.subr.mxu0 %v4502_v0  ;;  %3828 = vmatprep.subr.mxu1 %v317_v16 }
  0x14   :  { %132 = vmatpush1.msra.mxu0 %v86_v19  ;;  %3829 = vmatpush3.msra.mxu1 %v317_v16 }
  0x15   :  { %133 = vmatprep.subr.mxu0 %v4502_v0 }
  0x16   :  { %134 = vmatpush1.msra.mxu0 %v85_v20 }
  0x17   :  { %135 = vmatprep.subr.mxu0 %v4502_v0 }
  0x18   :  { %136 = vmatpush1.msra.mxu0 %v84_v21  ;;  %v105_v21 = vld [vmem:[%s5952_s2 + $0x8] sm:$0x3]  ;;  %s4503_s2 = smov 32  }
  0x19   :  { %137 = vmatprep.subr.mxu0 %v4502_v0 }
  0x1a   :  { %138 = vmatpush1.msra.mxu0 %v83_v22 }
  0x1b   :  { %139 = vmatprep.subr.mxu0 %v4502_v0 }
  0x1c   :  { %140 = vmatpush1.msra.mxu0 %v82_v23 }
  0x1d   :  { %141 = vmatprep.subr.mxu0 %v4502_v0 }
  0x1e   :  { %142 = vmatpush1.msra.mxu0 %v81_v24 }
  0x1f   :  { %143 = vmatprep.subr.mxu0 %v4502_v0 }
  0x20   :  { %144 = vmatpush1.msra.mxu0 %v80_v25 }
  0x21   :  { %161 = vmatprep.subr.mxu0 %v4502_v0 }
  0x22   :  { %162 = vmatpush2.msra.mxu0 %v103_v26 }
  0x23   :  { %163 = vmatprep.subr.mxu0 %v4502_v0 }
  0x24   :  { %164 = vmatpush2.msra.mxu0 %v102_v27 }
  0x25   :  { %165 = vmatprep.subr.mxu0 %v4502_v0 }
  0x26   :  { %166 = vmatpush2.msra.mxu0 %v101_v28 }
  0x27   :  { %167 = vmatprep.subr.mxu0 %v4502_v0 }
  0x28   :  { %168 = vmatpush2.msra.mxu0 %v100_v29 }
  0x29   :  { %169 = vmatprep.subr.mxu0 %v4502_v0 }
  0x2a   :  { %170 = vmatpush2.msra.mxu0 %v99_v30 }
  0x2b   :  { %171 = vmatprep.subr.mxu0 %v4502_v0 }
  0x2c   :  { %172 = vmatpush2.msra.mxu0 %v98_v31 }
  0x2d   :  { %173 = vmatprep.subr.mxu0 %v4502_v0 }
  0x2e   :  { %174 = vmatpush2.msra.mxu0 %v97_v32 }
  0x2f   :  { %175 = vmatprep.subr.mxu0 %v4502_v0 }
  0x30   :  { %176 = vmatpush2.msra.mxu0 %v96_v33  ;;  %v217_v33 = vlaneseq }
  0x31   :  { %178 = vmatmul.mubr.f32.vlgmr.msra.gmra.mxu0 %v76_v34 }
  0x32   :  { %3462 = vmatprep.mubr.msk.f32.mxu0 %vm106_vm1, %v79_v35  ;;  %v218_v34 = vand.u32 127, %v217_v33 }
  0x34   :  { %vm227_vm3 = vcmp.ge.s32.totalorder %v218_v34, 16  ;;  %vm228_vm4 = vcmp.lt.s32.totalorder %v218_v34, 24  ;;  %vm223_vm6 = vcmp.ge.s32.totalorder %v218_v34, 8  ;;  %vm224_vm7 = vcmp.lt.s32.totalorder %v218_v34, 16 }
  0x35   :  { %183 = vmatmul.mubr.f32.gmra.mxu0 %v78_v36  ;;  %vm229_vm5 = vmand %vm227_vm3, %vm228_vm4  ;;  %vm231_vm8 = vcmp.ge.s32.totalorder %v218_v34, 24  ;;  %vm232_vm10 = vcmp.lt.s32.totalorder %v218_v34, 32  ;;  %vm220_vm12 = vcmp.lt.s32.totalorder %v218_v34, 8 }
  0x36   :  { %v4735_v35 = vsel %vm229_vm5, 1.0, %v4502_v0  ;;  %vm225_vm9 = vmand %vm223_vm6, %vm224_vm7 }
  0x37   :  { %v4739_v36 = vsel %vm225_vm9, 1.0, %v4502_v0  ;;  %vm233_vm11 = vmand %vm231_vm8, %vm232_vm10 }
  0x8c   :  { %v27_v37 = vpop.xlane.xlu0 %26 }
  0x8d   :  { %v39_v38 = vmul.f32 0.03125, %v27_v37  ;;  %v4742_v37 = vsel %vm233_vm11, 1.0, %v4502_v0 }
  0x8e   :  { %v35_v39 = vpop.xlane.xlu1 %34 }
  0x8f   :  { %v43_v40 = vmul.f32 %v39_v38, %v39_v38  ;;  %v41_v41 = vmul.f32 0.03125, %v35_v39  ;;  %v49_v53 = vsub.f32 %v4543_v2, %v39_v38  ;;  %v4747_v38 = vsel %vm220_vm12, 1.0, %v4502_v0 }
  0x90   :  { %v30_v42 = vpop.xlane.xlu0 %29 }
  0x91   :  { %v45_v43 = vsub.f32 %v41_v41, %v43_v40  ;;  %v40_v44 = vmul.f32 0.03125, %v30_v42 }
  0x92   :  { %v38_v45 = vpop.xlane.xlu1 %37 }
  0x93   :  { %v47_v46 = vmax.f32 %v45_v43, 0.0  ;;  %v44_v47 = vmul.f32 %v40_v44, %v40_v44  ;;  %v42_v48 = vmul.f32 0.03125, %v38_v45  ;;  %v50_v57 = vsub.f32 %v4563_v6, %v40_v44 }
  0x95   :  { %v51_v49 = vadd.f32 1e-12, %v47_v46  ;;  %v46_v50 = vsub.f32 %v42_v48, %v44_v47 }
  0x97   :  { %4270 = vrsqrt.f32 %v51_v49  ;;  %v48_v51 = vmax.f32 %v46_v50, 0.0 }
  0x99   :  { %v52_v52 = vadd.f32 1e-12, %v48_v51 }
  0x9b   :  { %4272 = vrsqrt.f32 %v52_v52 }
  0xa4   :  { %v4271_v54 = vpop.eup %4270 }
  0xa5   :  { %v55_v56 = vmul.f32 %v4271_v54, %v49_v53 }
  0xa7   :  { %v61_v59 = vmul.f32 %v3458_v55, %v55_v56  ;;  %v3463_v56 = vld [vmem:[%s5949_s4 + $0x2d0] ss:$0 sm:$0xff] }
  0xa8   :  { %v4273_v60 = vpop.eup %4272 }
  0xa9   :  { %v67_v62 = vadd.f32 %v3459_v58, %v61_v59  ;;  %v56_v63 = vmul.f32 %v4273_v60, %v50_v57 }
  0xab   :  { %v74_v1 = vadd.f32 %v3460_v61, %v67_v62  ;;  %v62_v2 = vmul.f32 %v3458_v55, %v56_v63 }
  0xad   :  { %192 = vst.msk [vmem:[#allocation2] sm:$0xff] %vm24_vm0, %v74_v1  ;;  %v68_v3 = vadd.f32 %v3459_v58, %v62_v2  ;;  %v3464_v58 = vld [vmem:[%s5949_s4 + $0x2d8] ss:$0 sm:$0xff] }
  0xaf   :  { %v75_v4 = vadd.f32 %v3460_v61, %v68_v3 }
  0xb1   :  { %193 = vst.msk [vmem:[#allocation2 + $0x8] sm:$0xff] %vm24_vm0, %v75_v4 }
  0xb4   :  { %v4687_v5 = vld [vmem:[#allocation2] sm:$0xff] }
  0xb5   :  { %v237_v6 = vsel %vm24_vm0, %v4687_v5, 0.0  ;;  %v249_v7 = vmul.f32 %v4687_v5, %v4687_v5 }
  0xb6   :  { %238 = vadd.xlane.f32.xlu0 %v237_v6 }
  0xb7   :  { %v253_v8 = vsel %vm24_vm0, %v249_v7, 0.0 }
  0xb8   :  { %v4694_v9 = vld [vmem:[#allocation2 + $0x8] sm:$0xff] }
  0xb9   :  { %v240_v10 = vsel %vm24_vm0, %v4694_v9, 0.0  ;;  %v250_v11 = vmul.f32 %v4694_v9, %v4694_v9 }
  0xba   :  { %254 = vadd.xlane.f32.xlu0 %v253_v8  ;;  %241 = vadd.xlane.f32.xlu1 %v240_v10 }
  0xbb   :  { %v256_v12 = vsel %vm24_vm0, %v250_v11, 0.0 }
  0xbe   :  { %257 = vadd.xlane.f32.xlu1 %v256_v12 }
  0xf1   :  { %v179_v18 = vpop.f32.mrf.mxu0 }
  0xf2   :  { %v180_v19 = vadd.f32 %v179_v18, %v104_v17 }
  0xf3   :  { %v181_v20 = vpop.f32.mrf.mxu0 }
  0xf4   :  { %194 = vst.msk [vmem:[#allocation2 + $0x10] sm:$0xff] %vm24_vm0, %v180_v19 }
  0xf5   :  { %v184_v22 = vpop.f32.mrf.mxu0 }
  0xf6   :  { %v185_v23 = vadd.f32 %v184_v22, %v105_v21 }
  0xf7   :  { %v186_v24 = vpop.f32.mrf.mxu0 }
  0xf8   :  { %196 = vst.msk [vmem:[#allocation2 + $0x18] sm:$0x3] %vm195_vm2, %v185_v23 }
  0xfb   :  { %v4720_v25 = vld [vmem:[#allocation2 + $0x10] sm:$0xff] }
  0xfc   :  { %v243_v26 = vsel %vm24_vm0, %v4720_v25, 0.0  ;;  %v251_v27 = vmul.f32 %v4720_v25, %v4720_v25 }
  0xfd   :  { %244 = vadd.xlane.f32.xlu0 %v243_v26 }
  0xfe   :  { %v259_v29 = vsel %vm24_vm0, %v251_v27, 0.0 }
  0xff   :  { %v4726_v28 = vld [vmem:[#allocation2 + $0x18] sm:$0xff] }
 0x100   :  { %v246_v30 = vsel %vm24_vm0, %v4726_v28, 0.0  ;;  %v252_v31 = vmul.f32 %v4726_v28, %v4726_v28 }
 0x101   :  { %260 = vadd.xlane.f32.xlu0 %v259_v29  ;;  %247 = vadd.xlane.f32.xlu1 %v246_v30 }
 0x102   :  { %v262_v32 = vsel %vm24_vm0, %v252_v31, 0.0 }
 0x105   :  { %263 = vadd.xlane.f32.xlu1 %v262_v32  ;;  %v3465_v32 = vld [vmem:[%s5949_s4 + $0x2e0] ss:$0 sm:$0xff] }
 0x116   :  { %456 = vrot.lane.b32.xlu1 %v4735_v35, %s4503_s2 }
 0x117   :  { %464 = vrot.lane.b32.xlu0 %v4742_v37, %s4503_s2 }
 0x11a   :  { %448 = vrot.lane.b32.xlu1 %v4739_v36, %s4503_s2 }
 0x11e   :  { %440 = vrot.lane.b32.xlu1 %v4747_v38, %s4503_s2 }
 0x13f   :  { %v239_v39 = vpop.xlane.xlu0 %238 }
 0x140   :  { %v265_v40 = vmul.f32 0.03125, %v239_v39 }
 0x142   :  { %v273_v41 = vmul.f32 %v265_v40, %v265_v40  ;;  %v285_v54 = vsub.f32 %v4687_v5, %v265_v40 }
 0x143   :  { %v242_v42 = vpop.xlane.xlu1 %241  ;;  %v255_v43 = vpop.xlane.xlu0 %254 }
 0x144   :  { %v266_v44 = vmul.f32 0.03125, %v242_v42  ;;  %v269_v45 = vmul.f32 0.03125, %v255_v43 }
 0x146   :  { %v274_v46 = vmul.f32 %v266_v44, %v266_v44  ;;  %v277_v47 = vsub.f32 %v269_v45, %v273_v41  ;;  %v286_v59 = vsub.f32 %v4694_v9, %v266_v44 }
 0x147   :  { %v258_v48 = vpop.xlane.xlu1 %257 }
 0x148   :  { %v281_v49 = vmax.f32 %v277_v47, 0.0  ;;  %v270_v50 = vmul.f32 0.03125, %v258_v48 }
 0x14a   :  { %v289_v51 = vadd.f32 1e-12, %v281_v49  ;;  %v278_v52 = vsub.f32 %v270_v50, %v274_v46 }
 0x14c   :  { %4274 = vrsqrt.f32 %v289_v51  ;;  %v282_v53 = vmax.f32 %v278_v52, 0.0 }
 0x14e   :  { %v290_v0 = vadd.f32 1e-12, %v282_v53 }
 0x150   :  { %4276 = vrsqrt.f32 %v290_v0 }
 0x159   :  { %v4275_v55 = vpop.eup %4274 }
 0x15a   :  { %v297_v57 = vmul.f32 %v4275_v55, %v285_v54 }
 0x15c   :  { %v305_v60 = vmul.f32 %v3463_v56, %v297_v57 }
 0x15d   :  { %v4277_v61 = vpop.eup %4276 }
 0x15e   :  { %v313_v62 = vadd.f32 %v3464_v58, %v305_v60  ;;  %v298_v63 = vmul.f32 %v4277_v61, %v286_v59 }
 0x160   :  { %3830 = vmatprep.mubr.msk.f32.mxu1 %vm24_vm0, %v313_v62  ;;  %v306_v1 = vmul.f32 %v3463_v56, %v298_v63  ;;  %v4260_v62 = vpack.i.bf16 %v4735_v35, %v4742_v37  ;;  %v4265_v63 = vpack.i.bf16 %v4747_v38, %v4739_v36 }
 0x162   :  { %v314_v2 = vadd.f32 %v3464_v58, %v306_v1 }
 0x164   :  { %3831 = vmatmul.mubr.msk.f32.vlgmr.msra.gmra.mxu1 %vm24_vm0, %v314_v2 }
 0x186   :  { %v245_v3 = vpop.xlane.xlu0 %244 }
 0x187   :  { %v267_v4 = vmul.f32 0.03125, %v245_v3 }
 0x189   :  { %v275_v7 = vmul.f32 %v267_v4, %v267_v4  ;;  %v287_v19 = vsub.f32 %v4720_v25, %v267_v4 }
 0x18a   :  { %v248_v5 = vpop.xlane.xlu1 %247  ;;  %v261_v6 = vpop.xlane.xlu0 %260 }
 0x18b   :  { %v268_v8 = vmul.f32 0.03125, %v248_v5  ;;  %v271_v10 = vmul.f32 0.03125, %v261_v6 }
 0x18d   :  { %v279_v11 = vsub.f32 %v271_v10, %v275_v7  ;;  %v276_v9 = vmul.f32 %v268_v8, %v268_v8  ;;  %v288_v22 = vsub.f32 %v4726_v28, %v268_v8 }
 0x18e   :  { %v264_v12 = vpop.xlane.xlu1 %263  ;;  %v4774_v40 = vpop.permute.xlu0 %464 }
 0x18f   :  { %v283_v13 = vmax.f32 %v279_v11, 0.0  ;;  %v272_v14 = vmul.f32 0.03125, %v264_v12 }
 0x191   :  { %v291_v15 = vadd.f32 1e-12, %v283_v13  ;;  %v280_v16 = vsub.f32 %v272_v14, %v276_v9 }
 0x192   :  { %v4791_v48 = vpop.permute.xlu1 %456 }
 0x193   :  { %4278 = vrsqrt.f32 %v291_v15  ;;  %v284_v17 = vmax.f32 %v280_v16, 0.0 }
 0x195   :  { %v292_v18 = vadd.f32 1e-12, %v284_v17 }
 0x196   :  { %v4805_v53 = vpop.permute.xlu1 %448 }
 0x197   :  { %4280 = vrsqrt.f32 %v292_v18 }
 0x19a   :  { %v4819_v57 = vpop.permute.xlu1 %440 }
 0x1a0   :  { %v4279_v20 = vpop.eup %4278 }
 0x1a1   :  { %v299_v21 = vmul.f32 %v4279_v20, %v287_v19 }
 0x1a3   :  { %v307_v23 = vmul.f32 %v3463_v56, %v299_v21 }
 0x1a4   :  { %v4281_v24 = vpop.eup %4280 }
 0x1a5   :  { %v315_v26 = vadd.f32 %v3464_v58, %v307_v23  ;;  %v300_v27 = vmul.f32 %v4281_v24, %v288_v22 }
 0x1a7   :  { %3833 = vmatprep.mubr.msk.f32.mxu1 %vm24_vm0, %v315_v26  ;;  %v308_v29 = vmul.f32 %v3463_v56, %v300_v27 }
 0x1a9   :  { %v316_v30 = vadd.f32 %v3464_v58, %v308_v29 }
 0x1ab   :  { %3834 = vmatmul.mubr.msk.f32.gmra.mxu1 %vm24_vm0, %v316_v30 }
 0x224   :  { %v3832_v31 = vpop.f32.mrf.mxu1 }
 0x225   :  { %v4776_v42 = vadd.f32 %v3832_v31, %v3465_v32 }
 0x226   :  { %v404_v25 = vpop.f32.mrf.mxu1 }
 0x227   :  { %v4767_v33 = vadd.f32 %v3465_v32, %v404_v25  ;;  %v468_v46 = vmul.f32 %v4774_v40, %v4776_v42  ;;  %v460_v51 = vmul.f32 %v4791_v48, %v4776_v42  ;;  %v452_v55 = vmul.f32 %v4805_v53, %v4776_v42 }
 0x228   :  { %v444_v60 = vmul.f32 %v4819_v57, %v4776_v42 }
 0x229   :  { %v423_v28 = vmul.f32 %v4767_v33, %v4747_v38  ;;  %v467_v47 = vmul.f32 %v4774_v40, %v4767_v33  ;;  %v459_v52 = vmul.f32 %v4791_v48, %v4767_v33  ;;  %v451_v56 = vmul.f32 %v4805_v53, %v4767_v33 }
 0x22a   :  { %v443_v61 = vmul.f32 %v4819_v57, %v4767_v33 }
 0x22b   :  { %3868 = vmatprep.mubr.msk.f32.mxu1 %vm24_vm0, %v423_v28 }
 0x26b   :  { %v3835_v34 = vpop.f32.mrf.mxu1 }
 0x26c   :  { %v4772_v39 = vadd.f32 %v3835_v34, %v3465_v32  ;;  %v424_v34 = vmul.f32 %v4776_v42, %v4747_v38 }
 0x26d   :  { %v414_v41 = vpop.f32.mrf.mxu1 }
 0x26e   :  { %v4778_v43 = vadd.f32 %v3465_v32, %v414_v41  ;;  %v470_v44 = vmul.f32 %v4774_v40, %v4772_v39  ;;  %v462_v49 = vmul.f32 %v4791_v48, %v4772_v39  ;;  %v454_v0 = vmul.f32 %v4805_v53, %v4772_v39 }
 0x26f   :  { %v446_v58 = vmul.f32 %v4819_v57, %v4772_v39 }
 0x270   :  { %545 = vrot.lane.b32.xlu0 %v470_v44, %s4504_s23  ;;  %v469_v45 = vmul.f32 %v4774_v40, %v4778_v43  ;;  %v461_v50 = vmul.f32 %v4791_v48, %v4778_v43  ;;  %v453_v54 = vmul.f32 %v4805_v53, %v4778_v43  ;;  %v445_v59 = vmul.f32 %v4819_v57, %v4778_v43 }
 0x271   :  { %v425_v41 = vmul.f32 %v4778_v43, %v4747_v38  ;;  %v426_v44 = vmul.f32 %v4772_v39, %v4747_v38 }
 0x272   :  { %543 = vrot.lane.b32.xlu1 %v469_v45, %s4504_s23  ;;  %v427_v45 = vmul.f32 %v4767_v33, %v4739_v36 }
 0x274   :  { %541 = vrot.lane.b32.xlu0 %v468_v46, %s4504_s23  ;;  %v428_v46 = vmul.f32 %v4776_v42, %v4739_v36 }
 0x276   :  { %539 = vrot.lane.b32.xlu1 %v467_v47, %s4504_s23  ;;  %v429_v47 = vmul.f32 %v4778_v43, %v4739_v36 }
 0x278   :  { %537 = vrot.lane.b32.xlu0 %v462_v49, %s4504_s23  ;;  %v430_v49 = vmul.f32 %v4772_v39, %v4739_v36 }
 0x27a   :  { %535 = vrot.lane.b32.xlu1 %v461_v50, %s4504_s23  ;;  %v431_v50 = vmul.f32 %v4767_v33, %v4735_v35 }
 0x27c   :  { %533 = vrot.lane.b32.xlu0 %v460_v51, %s4504_s23  ;;  %v432_v51 = vmul.f32 %v4776_v42, %v4735_v35 }
 0x27e   :  { %531 = vrot.lane.b32.xlu1 %v459_v52, %s4504_s23  ;;  %v433_v52 = vmul.f32 %v4778_v43, %v4735_v35 }
 0x280   :  { %529 = vrot.lane.b32.xlu0 %v454_v0, %s4504_s23  ;;  %v434_v0 = vmul.f32 %v4772_v39, %v4735_v35 }
 0x282   :  { %527 = vrot.lane.b32.xlu1 %v453_v54, %s4504_s23  ;;  %v435_v54 = vmul.f32 %v4767_v33, %v4742_v37 }
 0x284   :  { %525 = vrot.lane.b32.xlu0 %v452_v55, %s4504_s23  ;;  %v436_v55 = vmul.f32 %v4776_v42, %v4742_v37 }
 0x286   :  { %523 = vrot.lane.b32.xlu1 %v451_v56, %s4504_s23  ;;  %v437_v56 = vmul.f32 %v4778_v43, %v4742_v37 }
 0x288   :  { %521 = vrot.lane.b32.xlu0 %v446_v58, %s4504_s23  ;;  %v438_v58 = vmul.f32 %v4772_v39, %v4742_v37 }
 0x28a   :  { %519 = vrot.lane.b32.xlu1 %v445_v59, %s4504_s23 }
 0x28c   :  { %517 = vrot.lane.b32.xlu0 %v444_v60, %s4504_s23 }
 0x28e   :  { %515 = vrot.lane.b32.xlu1 %v443_v61, %s4504_s23 }
 0x290   :  { %4261 = vrot.lane.b32.xlu0 %v4260_v62, %s4505_s24 }
 0x292   :  { %4266 = vrot.lane.b32.xlu1 %v4265_v63, %s4505_s24 }
 0x2e2   :  { %v546_v1 = vpop.permute.xlu0 %545 }
 0x2e3   :  { %3836 = vmatprep.subr.msk.mxu1 %vm24_vm0, %v546_v1 }
 0x2e4   :  { %3837 = vmatpush3.xpose.msk.msra.mxu1 %vm24_vm0, %v546_v1  ;;  %v544_v2 = vpop.permute.xlu1 %543 }
 0x2e5   :  { %3838 = vmatprep.subr.msk.mxu1 %vm24_vm0, %v544_v2 }
 0x2e6   :  { %v542_v3 = vpop.permute.xlu0 %541 }
 0x2e8   :  { %3839 = vmatpush3.xpose.msk.msra.mxu1 %vm24_vm0, %v544_v2  ;;  %v540_v4 = vpop.permute.xlu1 %539 }
 0x2e9   :  { %3840 = vmatprep.subr.msk.mxu1 %vm24_vm0, %v542_v3 }
 0x2ea   :  { %v538_v5 = vpop.permute.xlu0 %537 }
 0x2ec   :  { %3841 = vmatpush3.xpose.msk.msra.mxu1 %vm24_vm0, %v542_v3  ;;  %v536_v6 = vpop.permute.xlu1 %535 }
 0x2ed   :  { %3842 = vmatprep.subr.msk.mxu1 %vm24_vm0, %v540_v4 }
 0x2ee   :  { %v534_v7 = vpop.permute.xlu0 %533 }
 0x2f0   :  { %3843 = vmatpush3.xpose.msk.msra.mxu1 %vm24_vm0, %v540_v4  ;;  %v532_v8 = vpop.permute.xlu1 %531 }
 0x2f1   :  { %3844 = vmatprep.subr.msk.mxu1 %vm24_vm0, %v538_v5 }
 0x2f2   :  { %v530_v10 = vpop.permute.xlu0 %529 }
 0x2f4   :  { %3845 = vmatpush3.xpose.msk.msra.mxu1 %vm24_vm0, %v538_v5  ;;  %v528_v11 = vpop.permute.xlu1 %527 }
 0x2f5   :  { %3846 = vmatprep.subr.msk.mxu1 %vm24_vm0, %v536_v6 }
 0x2f6   :  { %v526_v12 = vpop.permute.xlu0 %525 }
 0x2f8   :  { %3847 = vmatpush3.xpose.msk.msra.mxu1 %vm24_vm0, %v536_v6  ;;  %v524_v9 = vpop.permute.xlu1 %523 }
 0x2f9   :  { %3848 = vmatprep.subr.msk.mxu1 %vm24_vm0, %v534_v7 }
 0x2fa   :  { %v522_v13 = vpop.permute.xlu0 %521 }
 0x2fc   :  { %3849 = vmatpush3.xpose.msk.msra.mxu1 %vm24_vm0, %v534_v7  ;;  %v520_v14 = vpop.permute.xlu1 %519  ;;  %v202_v7 = vld [vmem:[%s5953_s3 + $0x8] sm:$0xff] }
 0x2fd   :  { %3850 = vmatprep.subr.msk.mxu1 %vm24_vm0, %v532_v8 }
 0x2fe   :  { %v518_v15 = vpop.permute.xlu0 %517 }
 0x300   :  { %3851 = vmatpush3.xpose.msk.msra.mxu1 %vm24_vm0, %v532_v8  ;;  %v516_v18 = vpop.permute.xlu1 %515 }
 0x301   :  { %3852 = vmatprep.subr.msk.mxu1 %vm24_vm0, %v530_v10 }
 0x302   :  { %v4262_v16 = vpop.permute.xlu0 %4261 }
 0x303   :  { %v4857_v17 = vunpack.i.l.bf16 %v4262_v16  ;;  %v4860_v19 = vunpack.i.h.bf16 %v4262_v16  ;;  %v206_v16 = vld [vmem:[%s5953_s3 + $0x28] sm:$0xff] }
 0x304   :  { %3853 = vmatpush3.xpose.msk.msra.mxu1 %vm24_vm0, %v530_v10  ;;  %v4875_v24 = vpop.permute.xlu1 %4266  ;;  %v201_v10 = vld [vmem:[%s5953_s3] sm:$0xff] }
 0x305   :  { %3854 = vmatprep.subr.msk.mxu1 %vm24_vm0, %v528_v11  ;;  %v496_v20 = vmul.f32 %v4857_v17, %v4776_v42  ;;  %v498_v21 = vmul.f32 %v4857_v17, %v4772_v39  ;;  %v491_v22 = vmul.f32 %v4860_v19, %v4772_v39  ;;  %v495_v23 = vmul.f32 %v4857_v17, %v4767_v33 }
 0x306   :  { %v4881_v26 = vunpack.i.l.bf16 %v4875_v24  ;;  %v489_v27 = vmul.f32 %v4860_v19, %v4776_v42  ;;  %v488_v29 = vmul.f32 %v4860_v19, %v4767_v33  ;;  %v497_v30 = vmul.f32 %v4857_v17, %v4778_v43 }
 0x307   :  { %958 = vrot.lane.b32.xlu0 %v496_v20, %s4505_s24  ;;  %962 = vrot.lane.b32.xlu1 %v498_v21, %s4505_s24  ;;  %v490_v32 = vmul.f32 %v4860_v19, %v4778_v43  ;;  %v203_v20 = vld [vmem:[%s5953_s3 + $0x10] sm:$0xff] }
 0x308   :  { %3855 = vmatpush3.xpose.msk.msra.mxu1 %vm24_vm0, %v528_v11  ;;  %v484_v31 = vmul.f32 %v4881_v26, %v4772_v39  ;;  %v482_v25 = vmul.f32 %v4881_v26, %v4776_v42  ;;  %v483_v28 = vmul.f32 %v4881_v26, %v4778_v43 }
 0x309   :  { %3856 = vmatprep.subr.msk.mxu1 %vm24_vm0, %v526_v12 }
 0x30b   :  { %954 = vrot.lane.b32.xlu0 %v491_v22, %s4505_s24  ;;  %956 = vrot.lane.b32.xlu1 %v495_v23, %s4505_s24 }
 0x30c   :  { %3857 = vmatpush3.xpose.msk.msra.mxu1 %vm24_vm0, %v526_v12 }
 0x30d   :  { %3858 = vmatprep.subr.msk.mxu1 %vm24_vm0, %v524_v9 }
 0x30f   :  { %950 = vrot.lane.b32.xlu0 %v489_v27, %s4505_s24  ;;  %948 = vrot.lane.b32.xlu1 %v488_v29, %s4505_s24  ;;  %v208_v27 = vld [vmem:[%s5953_s3 + $0x38] sm:$0xff] }
 0x310   :  { %3859 = vmatpush3.xpose.msk.msra.mxu1 %vm24_vm0, %v524_v9 }
 0x311   :  { %3860 = vmatprep.subr.msk.mxu1 %vm24_vm0, %v522_v13 }
 0x313   :  { %960 = vrot.lane.b32.xlu1 %v497_v30, %s4505_s24  ;;  %946 = vrot.lane.b32.xlu0 %v484_v31, %s4505_s24  ;;  %v205_v30 = vld [vmem:[%s5953_s3 + $0x20] sm:$0xff] }
 0x314   :  { %3861 = vmatpush3.xpose.msk.msra.mxu1 %vm24_vm0, %v522_v13  ;;  %v204_v13 = vld [vmem:[%s5953_s3 + $0x18] sm:$0xff] }
 0x315   :  { %3862 = vmatprep.subr.msk.mxu1 %vm24_vm0, %v520_v14 }
 0x317   :  { %952 = vrot.lane.b32.xlu1 %v490_v32, %s4505_s24  ;;  %942 = vrot.lane.b32.xlu0 %v482_v25, %s4505_s24 }
 0x318   :  { %3863 = vmatpush3.xpose.msk.msra.mxu1 %vm24_vm0, %v520_v14 }
 0x319   :  { %3864 = vmatprep.subr.msk.mxu1 %vm24_vm0, %v518_v15 }
 0x31b   :  { %944 = vrot.lane.b32.xlu1 %v483_v28, %s4505_s24  ;;  %v210_v28 = vld [vmem:[%s5953_s3 + $0x48] sm:$0xff] }
 0x31c   :  { %3865 = vmatpush3.xpose.msk.msra.mxu1 %vm24_vm0, %v518_v15 }
 0x31d   :  { %3866 = vmatprep.subr.msk.mxu1 %vm24_vm0, %v516_v18 }
 0x320   :  { %3867 = vmatpush3.xpose.msk.msra.mxu1 %vm24_vm0, %v516_v18 }
 0x323   :  { %3869 = vmatmul.mubr.msk.f32.vlgmr.msra.gmra.mxu1 %vm24_vm0, %v424_v34 }
 0x324   :  { %3871 = vmatprep.mubr.msk.f32.mxu1 %vm24_vm0, %v425_v41  ;;  %v207_v41 = vld [vmem:[%s5953_s3 + $0x30] sm:$0xff] }
 0x327   :  { %3872 = vmatmul.mubr.msk.f32.gmra.mxu1 %vm24_vm0, %v426_v44 }
 0x328   :  { %3874 = vmatprep.mubr.msk.f32.mxu1 %vm24_vm0, %v427_v45 }
 0x32b   :  { %3875 = vmatmul.mubr.msk.f32.gmra.mxu1 %vm24_vm0, %v428_v46 }
 0x32c   :  { %3877 = vmatprep.mubr.msk.f32.mxu1 %vm24_vm0, %v429_v47  ;;  %v212_v47 = vld [vmem:[%s5953_s3 + $0x58] sm:$0xff] }
 0x32f   :  { %3878 = vmatmul.mubr.msk.f32.gmra.mxu1 %vm24_vm0, %v430_v49 }
 0x330   :  { %3880 = vmatprep.mubr.msk.f32.mxu1 %vm24_vm0, %v431_v50  ;;  %v209_v50 = vld [vmem:[%s5953_s3 + $0x40] sm:$0xff] }
 0x333   :  { %3881 = vmatmul.mubr.msk.f32.gmra.mxu1 %vm24_vm0, %v432_v51 }
 0x334   :  { %3883 = vmatprep.mubr.msk.f32.mxu1 %vm24_vm0, %v433_v52 }
 0x337   :  { %3884 = vmatmul.mubr.msk.f32.gmra.mxu1 %vm24_vm0, %v434_v0 }
 0x338   :  { %3886 = vmatprep.mubr.msk.f32.mxu1 %vm24_vm0, %v435_v54  ;;  %v214_v54 = vld [vmem:[%s5953_s3 + $0x68] sm:$0xff] }
 0x33b   :  { %3887 = vmatmul.mubr.msk.f32.gmra.mxu1 %vm24_vm0, %v436_v55 }
 0x33c   :  { %3889 = vmatprep.mubr.msk.f32.mxu1 %vm24_vm0, %v437_v56  ;;  %v211_v56 = vld [vmem:[%s5953_s3 + $0x50] sm:$0xff] }
 0x33f   :  { %3890 = vmatmul.mubr.msk.f32.gmra.mxu1 %vm24_vm0, %v438_v58 }
 0x379   :  { %v963_v59 = vpop.permute.xlu1 %962  ;;  %v959_v61 = vpop.permute.xlu0 %958 }
 0x37a   :  { %3892 = vmatprep.subr.mxu0 %v963_v59  ;;  %4224 = vmatprep.subr.mxu1 %v963_v59 }
 0x37b   :  { %3893 = vmatpush3.msra.mxu0 %v963_v59  ;;  %4240 = vmatpush3.msra.mxu1 %v963_v59 }
 0x37d   :  { %v957_v60 = vpop.permute.xlu1 %956  ;;  %v955_v63 = vpop.permute.xlu0 %954 }
 0x381   :  { %v949_v62 = vpop.permute.xlu1 %948  ;;  %v951_v2 = vpop.permute.xlu0 %950 }
 0x385   :  { %v961_v1 = vpop.permute.xlu1 %960  ;;  %v947_v4 = vpop.permute.xlu0 %946 }
 0x386   :  { %3894 = vmatprep.subr.mxu0 %v961_v1  ;;  %4225 = vmatprep.subr.mxu1 %v961_v1 }
 0x387   :  { %3895 = vmatpush3.msra.mxu0 %v961_v1  ;;  %4241 = vmatpush3.msra.mxu1 %v961_v1 }
 0x388   :  { %3896 = vmatprep.subr.mxu0 %v959_v61  ;;  %4226 = vmatprep.subr.mxu1 %v959_v61 }
 0x389   :  { %3897 = vmatpush3.msra.mxu0 %v959_v61  ;;  %4242 = vmatpush3.msra.mxu1 %v959_v61  ;;  %v953_v3 = vpop.permute.xlu1 %952  ;;  %v943_v6 = vpop.permute.xlu0 %942  ;;  %v216_v61 = vld [vmem:[%s5953_s3 + $0x78] sm:$0xff] }
 0x38a   :  { %3898 = vmatprep.subr.mxu0 %v957_v60  ;;  %4227 = vmatprep.subr.mxu1 %v957_v60 }
 0x38b   :  { %3899 = vmatpush3.msra.mxu0 %v957_v60  ;;  %4243 = vmatpush3.msra.mxu1 %v957_v60 }
 0x38c   :  { %3900 = vmatprep.subr.mxu0 %v955_v63  ;;  %4228 = vmatprep.subr.mxu1 %v955_v63 }
 0x38d   :  { %3901 = vmatpush3.msra.mxu0 %v955_v63  ;;  %4244 = vmatpush3.msra.mxu1 %v955_v63  ;;  %v945_v5 = vpop.permute.xlu1 %944  ;;  %v213_v63 = vld [vmem:[%s5953_s3 + $0x60] sm:$0xff] }
 0x38e   :  { %3902 = vmatprep.subr.mxu0 %v953_v3  ;;  %4229 = vmatprep.subr.mxu1 %v953_v3 }
 0x38f   :  { %3903 = vmatpush3.msra.mxu0 %v953_v3  ;;  %4245 = vmatpush3.msra.mxu1 %v953_v3 }
 0x390   :  { %3904 = vmatprep.subr.mxu0 %v951_v2  ;;  %4230 = vmatprep.subr.mxu1 %v951_v2 }
 0x391   :  { %3905 = vmatpush3.msra.mxu0 %v951_v2  ;;  %4246 = vmatpush3.msra.mxu1 %v951_v2 }
 0x392   :  { %3906 = vmatprep.subr.mxu0 %v949_v62  ;;  %4231 = vmatprep.subr.mxu1 %v949_v62 }
 0x393   :  { %3907 = vmatpush3.msra.mxu0 %v949_v62  ;;  %4247 = vmatpush3.msra.mxu1 %v949_v62 }
 0x394   :  { %3908 = vmatprep.subr.mxu0 %v947_v4  ;;  %4232 = vmatprep.subr.mxu1 %v947_v4 }
 0x395   :  { %3909 = vmatpush3.msra.mxu0 %v947_v4  ;;  %4248 = vmatpush3.msra.mxu1 %v947_v4  ;;  %v481_v4 = vmul.f32 %v4881_v26, %v4767_v33 }
 0x396   :  { %3910 = vmatprep.subr.mxu0 %v945_v5  ;;  %4233 = vmatprep.subr.mxu1 %v945_v5 }
 0x397   :  { %3911 = vmatpush3.msra.mxu0 %v945_v5  ;;  %4249 = vmatpush3.msra.mxu1 %v945_v5  ;;  %v5053_v5 = vunpack.i.h.bf16 %v4875_v24 }
 0x398   :  { %3912 = vmatprep.subr.mxu0 %v943_v6  ;;  %4234 = vmatprep.subr.mxu1 %v943_v6 }
 0x399   :  { %3913 = vmatpush3.msra.mxu0 %v943_v6  ;;  %4250 = vmatpush3.msra.mxu1 %v943_v6  ;;  %v477_v6 = vmul.f32 %v5053_v5, %v4772_v39 }
 0x3e3   :  { %v3870_v8 = vpop.f32.mrf.mxu1 }
 0x3e4   :  { %v4965_v11 = vadd.f32 %v3870_v8, %v202_v7  ;;  %v215_v8 = vld [vmem:[%s5953_s3 + $0x70] sm:$0xff] }
 0x3e5   :  { %v693_v12 = vpop.f32.mrf.mxu1 }
 0x3e6   :  { %v4967_v9 = vadd.f32 %v693_v12, %v201_v10  ;;  %774 = vmax.xlane.f32.xlu1 %v4965_v11  ;;  %v476_v12 = vmul.f32 %v5053_v5, %v4778_v43 }
 0x3e7   :  { %v3873_v14 = vpop.f32.mrf.mxu1 }
 0x3e8   :  { %772 = vmax.xlane.f32.xlu0 %v4967_v9  ;;  %v4977_v18 = vadd.f32 %v3873_v14, %v204_v13 }
 0x3e9   :  { %v703_v15 = vpop.f32.mrf.mxu1 }
 0x3ea   :  { %v4988_v29 = vadd.f32 %v703_v15, %v203_v20 }
 0x3eb   :  { %v3876_v21 = vpop.f32.mrf.mxu1 }
 0x3ec   :  { %v4982_v22 = vadd.f32 %v3876_v21, %v206_v16  ;;  %778 = vmax.xlane.f32.xlu0 %v4977_v18 }
 0x3ed   :  { %v713_v23 = vpop.f32.mrf.mxu1 }
 0x3ee   :  { %782 = vmax.xlane.f32.xlu1 %v4982_v22  ;;  %v5000_v34 = vadd.f32 %v713_v23, %v205_v30 }
 0x3ef   :  { %v3879_v31 = vpop.f32.mrf.mxu1 }
 0x3f0   :  { %v4994_v32 = vadd.f32 %v3879_v31, %v208_v27  ;;  %776 = vmax.xlane.f32.xlu0 %v4988_v29 }
 0x3f1   :  { %v723_v25 = vpop.f32.mrf.mxu1 }
 0x3f2   :  { %786 = vmax.xlane.f32.xlu1 %v4994_v32  ;;  %v5012_v49 = vadd.f32 %v723_v25, %v207_v41 }
 0x3f3   :  { %v3882_v44 = vpop.f32.mrf.mxu1 }
 0x3f4   :  { %v5006_v45 = vadd.f32 %v3882_v44, %v210_v28  ;;  %780 = vmax.xlane.f32.xlu0 %v5000_v34 }
 0x3f5   :  { %v733_v46 = vpop.f32.mrf.mxu1 }
 0x3f6   :  { %790 = vmax.xlane.f32.xlu1 %v5006_v45  ;;  %v5024_v55 = vadd.f32 %v733_v46, %v209_v50 }
 0x3f7   :  { %v3885_v51 = vpop.f32.mrf.mxu1 }
 0x3f8   :  { %v5018_v52 = vadd.f32 %v3885_v51, %v212_v47  ;;  %784 = vmax.xlane.f32.xlu0 %v5012_v49 }
 0x3f9   :  { %v743_v0 = vpop.f32.mrf.mxu1 }
 0x3fa   :  { %794 = vmax.xlane.f32.xlu1 %v5018_v52  ;;  %v5036_v62 = vadd.f32 %v743_v0, %v211_v56 }
 0x3fb   :  { %v3888_v58 = vpop.f32.mrf.mxu1 }
 0x3fc   :  { %v5030_v59 = vadd.f32 %v3888_v58, %v214_v54  ;;  %788 = vmax.xlane.f32.xlu0 %v5024_v55 }
 0x3fd   :  { %v753_v60 = vpop.f32.mrf.mxu1 }
 0x3fe   :  { %798 = vmax.xlane.f32.xlu1 %v5030_v59  ;;  %v5045_v3 = vadd.f32 %v753_v60, %v213_v63 }
 0x3ff   :  { %v3891_v1 = vpop.f32.mrf.mxu1 }
 0x400   :  { %v5042_v2 = vadd.f32 %v3891_v1, %v216_v61  ;;  %792 = vmax.xlane.f32.xlu0 %v5036_v62 }
 0x401   :  { %v763_v7 = vpop.f32.mrf.mxu1 }
 0x402   :  { %802 = vmax.xlane.f32.xlu1 %v5042_v2  ;;  %v5061_v10 = vadd.f32 %v763_v7, %v215_v8 }
 0x404   :  { %796 = vmax.xlane.f32.xlu0 %v5045_v3 }
 0x413   :  { %940 = vrot.lane.b32.xlu1 %v481_v4, %s4505_s24 }
 0x41a   :  { %938 = vrot.lane.b32.xlu0 %v477_v6, %s4505_s24 }
 0x439   :  { %800 = vmax.xlane.f32.xlu0 %v5061_v10 }
 0x44f   :  { %936 = vrot.lane.b32.xlu0 %v476_v12, %s4505_s24 }
 0x46f   :  { %v775_v24 = vpop.xlane.xlu1 %774 }
 0x470   :  { %v805_v13 = vsub.f32 %v4965_v11, %v775_v24 }
 0x471   :  { %v773_v39 = vpop.xlane.xlu0 %772 }
 0x472   :  { %v822_v14 = vmul.f32 1.442695, %v805_v13  ;;  %v804_v15 = vsub.f32 %v4967_v9, %v773_v39 }
 0x474   :  { %4282 = vpow2.f32 %v822_v14  ;;  %v820_v16 = vmul.f32 1.442695, %v804_v15 }
 0x475   :  { %v779_v20 = vpop.xlane.xlu0 %778 }
 0x476   :  { %4284 = vpow2.f32 %v820_v16  ;;  %v807_v21 = vsub.f32 %v4977_v18, %v779_v20 }
 0x477   :  { %v783_v23 = vpop.xlane.xlu1 %782 }
 0x478   :  { %v826_v27 = vmul.f32 1.442695, %v807_v21  ;;  %v809_v30 = vsub.f32 %v4982_v22, %v783_v23 }
 0x479   :  { %v777_v43 = vpop.xlane.xlu0 %776 }
 0x47a   :  { %4286 = vpow2.f32 %v826_v27  ;;  %v830_v31 = vmul.f32 1.442695, %v809_v30  ;;  %v806_v25 = vsub.f32 %v4988_v29, %v777_v43 }
 0x47b   :  { %v787_v11 = vpop.xlane.xlu1 %786 }
 0x47c   :  { %v824_v28 = vmul.f32 1.442695, %v806_v25  ;;  %v811_v41 = vsub.f32 %v4994_v32, %v787_v11  ;;  %4288 = vpow2.f32 %v830_v31  ;;  %v474_v25 = vmul.f32 %v5053_v5, %v4767_v33 }
 0x47d   :  { %v781_v9 = vpop.xlane.xlu0 %780 }
 0x47e   :  { %4290 = vpow2.f32 %v824_v28  ;;  %v834_v44 = vmul.f32 1.442695, %v811_v41  ;;  %v808_v46 = vsub.f32 %v5000_v34, %v781_v9 }
 0x47f   :  { %v791_v18 = vpop.xlane.xlu1 %790 }
 0x480   :  { %v828_v47 = vmul.f32 1.442695, %v808_v46  ;;  %v813_v50 = vsub.f32 %v5006_v45, %v791_v18  ;;  %4292 = vpow2.f32 %v834_v44  ;;  %v475_v46 = vmul.f32 %v5053_v5, %v4776_v42 }
 0x481   :  { %v5075_v22 = vpop.eup %4282  ;;  %v785_v51 = vpop.xlane.xlu0 %784 }
 0x482   :  { %4294 = vpow2.f32 %v828_v47  ;;  %v810_v29 = vsub.f32 %v5012_v49, %v785_v51  ;;  %854 = vadd.xlane.f32.xlu1 %v5075_v22  ;;  %v838_v0 = vmul.f32 1.442695, %v813_v50 }
 0x483   :  { %v5079_v32 = vpop.eup %4284  ;;  %v795_v54 = vpop.xlane.xlu1 %794 }
 0x484   :  { %v832_v56 = vmul.f32 1.442695, %v810_v29  ;;  %v815_v34 = vsub.f32 %v5018_v52, %v795_v54  ;;  %852 = vadd.xlane.f32.xlu0 %v5079_v32 }
 0x485   :  { %v789_v58 = vpop.xlane.xlu0 %788 }
 0x486   :  { %4296 = vpow2.f32 %v832_v56  ;;  %v812_v45 = vsub.f32 %v5024_v55, %v789_v58  ;;  %v842_v61 = vmul.f32 1.442695, %v815_v34 }
 0x487   :  { %v5084_v60 = vpop.eup %4286  ;;  %4298 = vpow2.f32 %v838_v0  ;;  %v799_v49 = vpop.xlane.xlu1 %798 }
 0x488   :  { %v836_v63 = vmul.f32 1.442695, %v812_v45  ;;  %v817_v1 = vsub.f32 %v5030_v59, %v799_v49  ;;  %858 = vadd.xlane.f32.xlu1 %v5084_v60 }
 0x489   :  { %v793_v4 = vpop.xlane.xlu0 %792  ;;  %v5088_v6 = vpop.eup %4288 }
 0x48a   :  { %4300 = vpow2.f32 %v836_v63  ;;  %v814_v52 = vsub.f32 %v5036_v62, %v793_v4  ;;  %v846_v55 = vmul.f32 1.442695, %v817_v1 }
 0x48b   :  { %v5091_v7 = vpop.eup %4290  ;;  %4302 = vpow2.f32 %v842_v61  ;;  %v803_v8 = vpop.xlane.xlu1 %802 }
 0x48c   :  { %v840_v12 = vmul.f32 1.442695, %v814_v52  ;;  %856 = vadd.xlane.f32.xlu0 %v5091_v7  ;;  %862 = vadd.xlane.f32.xlu1 %v5088_v6  ;;  %v819_v62 = vsub.f32 %v5042_v2, %v803_v8 }
 0x48d   :  { %v797_v24 = vpop.xlane.xlu0 %796  ;;  %v5095_v59 = vpop.eup %4292 }
 0x48e   :  { %4304 = vpow2.f32 %v840_v12  ;;  %v816_v13 = vsub.f32 %v5045_v3, %v797_v24  ;;  %v850_v3 = vmul.f32 1.442695, %v819_v62 }
 0x48f   :  { %v5098_v39 = vpop.eup %4294  ;;  %4306 = vpow2.f32 %v846_v55  ;;  %v941_v14 = vpop.permute.xlu1 %940 }
 0x490   :  { %v844_v15 = vmul.f32 1.442695, %v816_v13  ;;  %860 = vadd.xlane.f32.xlu0 %v5098_v39  ;;  %866 = vadd.xlane.f32.xlu1 %v5095_v59 }
 0x491   :  { %3914 = vmatprep.subr.mxu0 %v941_v14  ;;  %4235 = vmatprep.subr.mxu1 %v941_v14  ;;  %v939_v16 = vpop.permute.xlu0 %938 }
 0x492   :  { %4308 = vpow2.f32 %v844_v15  ;;  %3915 = vmatpush3.msra.mxu0 %v941_v14  ;;  %4251 = vmatpush3.msra.mxu1 %v941_v14 }
 0x493   :  { %v5103_v20 = vpop.eup %4296  ;;  %3916 = vmatprep.subr.mxu0 %v939_v16  ;;  %4236 = vmatprep.subr.mxu1 %v939_v16  ;;  %4310 = vpow2.f32 %v850_v3 }
 0x494   :  { %v5105_v21 = vpop.eup %4298  ;;  %3917 = vmatpush3.msra.mxu0 %v939_v16  ;;  %4252 = vmatpush3.msra.mxu1 %v939_v16 }
 0x495   :  { %864 = vadd.xlane.f32.xlu0 %v5103_v20  ;;  %870 = vadd.xlane.f32.xlu1 %v5105_v21 }
 0x497   :  { %v5109_v2 = vpop.eup %4300 }
 0x498   :  { %v5111_v23 = vpop.eup %4302 }
 0x499   :  { %868 = vadd.xlane.f32.xlu0 %v5109_v2  ;;  %874 = vadd.xlane.f32.xlu1 %v5111_v23 }
 0x49b   :  { %v5115_v27 = vpop.eup %4304 }
 0x49c   :  { %v5117_v30 = vpop.eup %4306 }
 0x49d   :  { %872 = vadd.xlane.f32.xlu0 %v5115_v27  ;;  %878 = vadd.xlane.f32.xlu1 %v5117_v30 }
 0x49f   :  { %v4309_v43 = vpop.eup %4308 }
 0x4a0   :  { %v5121_v31 = vpop.eup %4310 }
 0x4a1   :  { %876 = vadd.xlane.f32.xlu1 %v4309_v43 }
 0x4a5   :  { %882 = vadd.xlane.f32.xlu1 %v5121_v31 }
 0x4b3   :  { %932 = vrot.lane.b32.xlu0 %v474_v25, %s4505_s24 }
 0x4c2   :  { %v801_v11 = vpop.xlane.xlu0 %800 }
 0x4c3   :  { %v818_v28 = vsub.f32 %v5061_v10, %v801_v11 }
 0x4c5   :  { %v848_v41 = vmul.f32 1.442695, %v818_v28 }
 0x4c6   :  { %v937_v9 = vpop.permute.xlu0 %936 }
 0x4c7   :  { %4312 = vpow2.f32 %v848_v41  ;;  %3918 = vmatprep.subr.mxu0 %v937_v9  ;;  %4237 = vmatprep.subr.mxu1 %v937_v9 }
 0x4c8   :  { %3919 = vmatpush3.msra.mxu0 %v937_v9  ;;  %4253 = vmatpush3.msra.mxu1 %v937_v9 }
 0x4d4   :  { %v5128_v44 = vpop.eup %4312 }
 0x4d5   :  { %880 = vadd.xlane.f32.xlu1 %v5128_v44 }
 0x4e6   :  { %934 = vrot.lane.b32.xlu1 %v475_v46, %s4505_s24 }
 0x50b   :  { %v855_v33 = vpop.xlane.xlu1 %854 }
 0x50d   :  { %v853_v18 = vpop.xlane.xlu0 %852 }
 0x50e   :  { %4314 = vrcp.f32 %v853_v18 }
 0x511   :  { %v859_v10 = vpop.xlane.xlu1 %858 }
 0x515   :  { %v863_v47 = vpop.xlane.xlu1 %862  ;;  %v857_v42 = vpop.xlane.xlu0 %856 }
 0x519   :  { %v867_v50 = vpop.xlane.xlu1 %866  ;;  %v861_v61 = vpop.xlane.xlu0 %860 }
 0x51b   :  { %v4315_v51 = vpop.eup %4314 }
 0x51c   :  { %v900_v29 = vmul.f32 %v4315_v51, %v5079_v32 }
 0x51e   :  { %v871_v0 = vpop.xlane.xlu1 %870  ;;  %3924 = vmatprep.mubr.f32.mxu0 %v900_v29  ;;  %v865_v49 = vpop.xlane.xlu0 %864 }
 0x522   :  { %v875_v54 = vpop.xlane.xlu1 %874  ;;  %v869_v63 = vpop.xlane.xlu0 %868 }
 0x526   :  { %v879_v56 = vpop.xlane.xlu1 %878  ;;  %v873_v32 = vpop.xlane.xlu0 %872 }
 0x52a   :  { %v877_v34 = vpop.xlane.xlu1 %876  ;;  %v933_v24 = vpop.permute.xlu0 %932 }
 0x52b   :  { %4316 = vrcp.f32 %v877_v34 }
 0x52c   :  { %4318 = vrcp.f32 %v855_v33 }
 0x52d   :  { %4320 = vrcp.f32 %v879_v56 }
 0x52e   :  { %4322 = vrcp.f32 %v857_v42  ;;  %v883_v1 = vpop.xlane.xlu1 %882 }
 0x52f   :  { %4324 = vrcp.f32 %v859_v10 }
 0x530   :  { %4326 = vrcp.f32 %v861_v61 }
 0x531   :  { %4328 = vrcp.f32 %v863_v47 }
 0x532   :  { %4330 = vrcp.f32 %v865_v49 }
 0x533   :  { %4332 = vrcp.f32 %v883_v1 }
 0x538   :  { %v4317_v58 = vpop.eup %4316 }
 0x539   :  { %v912_v45 = vmul.f32 %v4317_v58, %v4309_v43  ;;  %v4319_v52 = vpop.eup %4318 }
 0x53a   :  { %v4321_v55 = vpop.eup %4320  ;;  %v901_v13 = vmul.f32 %v4319_v52, %v5075_v22 }
 0x53b   :  { %3942 = vmatprep.mubr.f32.mxu1 %v912_v45  ;;  %v4323_v12 = vpop.eup %4322  ;;  %v913_v62 = vmul.f32 %v4321_v55, %v5117_v30 }
 0x53c   :  { %v4325_v14 = vpop.eup %4324  ;;  %v902_v15 = vmul.f32 %v4323_v12, %v5091_v7 }
 0x53d   :  { %v4327_v16 = vpop.eup %4326  ;;  %v903_v43 = vmul.f32 %v4325_v14, %v5084_v60 }
 0x53e   :  { %v4329_v3 = vpop.eup %4328  ;;  %v904_v11 = vmul.f32 %v4327_v16, %v5098_v39 }
 0x53f   :  { %v4331_v25 = vpop.eup %4330  ;;  %v905_v28 = vmul.f32 %v4329_v3, %v5088_v6 }
 0x540   :  { %v4333_v22 = vpop.eup %4332  ;;  %v906_v9 = vmul.f32 %v4331_v25, %v5103_v20  ;;  %v4482_v25 = vld [vmem:[#allocation2 + $0x8] sm:$0xff] }
 0x541   :  { %v915_v46 = vmul.f32 %v4333_v22, %v5121_v31 }
 0x55e   :  { %v881_v4 = vpop.xlane.xlu1 %880 }
 0x55f   :  { %4334 = vrcp.f32 %v881_v4 }
 0x560   :  { %4336 = vrcp.f32 %v867_v50 }
 0x561   :  { %4338 = vrcp.f32 %v869_v63 }
 0x562   :  { %v935_v8 = vpop.permute.xlu1 %934  ;;  %4340 = vrcp.f32 %v871_v0 }
 0x563   :  { %3920 = vmatprep.subr.mxu0 %v935_v8  ;;  %4238 = vmatprep.subr.mxu1 %v935_v8  ;;  %4342 = vrcp.f32 %v873_v32 }
 0x564   :  { %3921 = vmatpush3.msra.mxu0 %v935_v8  ;;  %4254 = vmatpush3.msra.mxu1 %v935_v8  ;;  %4344 = vrcp.f32 %v875_v54 }
 0x565   :  { %3922 = vmatprep.subr.mxu0 %v933_v24  ;;  %4239 = vmatprep.subr.mxu1 %v933_v24 }
 0x566   :  { %3923 = vmatpush3.msra.mxu0 %v933_v24  ;;  %4255 = vmatpush3.msra.mxu1 %v933_v24 }
 0x567   :  { %3925 = vmatmul.mubr.f32.vlgmr.msra.gmra.mxu0 %v901_v13  ;;  %3943 = vmatmul.mubr.f32.vlgmr.msra.gmra.mxu1 %v913_v62 }
 0x568   :  { %3927 = vmatprep.mubr.f32.mxu0 %v902_v15 }
 0x56b   :  { %3928 = vmatmul.mubr.f32.gmra.mxu0 %v903_v43  ;;  %v3506_v43 = vld [vmem:[%s5949_s4 + $0x2e8] ss:$0 sm:$0xff] }
 0x56c   :  { %v4335_v30 = vpop.eup %4334  ;;  %3930 = vmatprep.mubr.f32.mxu0 %v904_v11 }
 0x56d   :  { %v914_v41 = vmul.f32 %v4335_v30, %v5128_v44  ;;  %v4337_v7 = vpop.eup %4336 }
 0x56e   :  { %v4339_v33 = vpop.eup %4338  ;;  %v907_v60 = vmul.f32 %v4337_v7, %v5095_v59  ;;  %v1140_v59 = vld [vmem:[%s5949_s4 + $0x178] sm:$0xff] }
 0x56f   :  { %3931 = vmatmul.mubr.f32.gmra.mxu0 %v905_v28  ;;  %3945 = vmatprep.mubr.f32.mxu1 %v914_v41  ;;  %v4341_v39 = vpop.eup %4340  ;;  %v908_v18 = vmul.f32 %v4339_v33, %v5109_v2  ;;  %v1139_v2 = vld [vmem:[%s5949_s4 + $0x170] sm:$0xff]  ;;  %v4483_v28 = vld [vmem:[#allocation2] sm:$0xff] }
 0x570   :  { %3933 = vmatprep.mubr.f32.mxu0 %v906_v9  ;;  %3946 = vmatmul.mubr.f32.gmra.mxu1 %v915_v46  ;;  %v4343_v10 = vpop.eup %4342  ;;  %v909_v6 = vmul.f32 %v4341_v39, %v5105_v21  ;;  %v1138_v21 = vld [vmem:[%s5949_s4 + $0x168] sm:$0xff]  ;;  %v4484_v46 = vld [vmem:[#allocation2 + $0x18] sm:$0xff] }
 0x571   :  { %v4345_v44 = vpop.eup %4344  ;;  %v910_v20 = vmul.f32 %v4343_v10, %v5115_v27  ;;  %3948 = vmatprep.subr.mxu1 %v1140_v59 }
 0x572   :  { %v911_v31 = vmul.f32 %v4345_v44, %v5111_v23  ;;  %3949 = vmatpush3.msra.mxu1 %v1140_v59  ;;  %v1137_v23 = vld [vmem:[%s5949_s4 + $0x160] sm:$0xff] }
 0x573   :  { %3934 = vmatmul.mubr.f32.gmra.mxu0 %v907_v60  ;;  %3950 = vmatprep.subr.mxu1 %v1139_v2 }
 0x574   :  { %3936 = vmatprep.mubr.f32.mxu0 %v908_v18  ;;  %3951 = vmatpush3.msra.mxu1 %v1139_v2  ;;  %v4485_v2 = vld [vmem:[#allocation2 + $0x10] sm:$0xff] }
 0x575   :  { %3952 = vmatprep.subr.mxu1 %v1138_v21 }
 0x576   :  { %3953 = vmatpush3.msra.mxu1 %v1138_v21 }
 0x577   :  { %3937 = vmatmul.mubr.f32.gmra.mxu0 %v909_v6  ;;  %3954 = vmatprep.subr.mxu1 %v1137_v23 }
 0x578   :  { %3939 = vmatprep.mubr.f32.mxu0 %v910_v20  ;;  %3955 = vmatpush3.msra.mxu1 %v1137_v23 }
 0x57b   :  { %3940 = vmatmul.mubr.f32.gmra.mxu0 %v911_v31 }
 0x627   :  { %v3926_v27 = vpop.f32.mrf.mxu0  ;;  %v3944_v56 = vpop.f32.mrf.mxu1 }
 0x629   :  { %v1046_v47 = vpop.f32.mrf.mxu0  ;;  %v1106_v61 = vpop.f32.mrf.mxu1 }
 0x62b   :  { %v3929_v50 = vpop.f32.mrf.mxu0 }
 0x62d   :  { %v1056_v51 = vpop.f32.mrf.mxu0 }
 0x62f   :  { %v3932_v29 = vpop.f32.mrf.mxu0 }
 0x630   :  { %v1126_v58 = vadd.f32 %v3932_v29, %v3926_v27  ;;  %v3947_v32 = vpop.f32.mrf.mxu1 }
 0x631   :  { %v1066_v0 = vpop.f32.mrf.mxu0 }
 0x632   :  { %v1125_v42 = vadd.f32 %v1066_v0, %v1046_v47  ;;  %v1116_v14 = vpop.f32.mrf.mxu1  ;;  %v1336_v0 = vld [vmem:[%s5949_s4 + $0x198] sm:$0xff] }
 0x633   :  { %v3935_v54 = vpop.f32.mrf.mxu0  ;;  %3962 = vmatprep.subr.mxu0 %v1336_v0 }
 0x634   :  { %v1128_v4 = vadd.f32 %v3935_v54, %v3929_v50  ;;  %3963 = vmatpush3.msra.mxu0 %v1336_v0  ;;  %v1335_v54 = vld [vmem:[%s5949_s4 + $0x190] sm:$0xff] }
 0x635   :  { %v1076_v34 = vpop.f32.mrf.mxu0  ;;  %3964 = vmatprep.subr.mxu0 %v1335_v54 }
 0x636   :  { %v1127_v55 = vadd.f32 %v1076_v34, %v1056_v51  ;;  %3965 = vmatpush3.msra.mxu0 %v1335_v54  ;;  %v1333_v34 = vld [vmem:[%s5949_s4 + $0x180] sm:$0xff] }
 0x637   :  { %v3938_v45 = vpop.f32.mrf.mxu0 }
 0x638   :  { %v1130_v49 = vadd.f32 %v3938_v45, %v1126_v58 }
 0x639   :  { %v1086_v63 = vpop.f32.mrf.mxu0 }
 0x63a   :  { %v1129_v1 = vadd.f32 %v1125_v42, %v1086_v63  ;;  %v1134_v12 = vadd.f32 %v3944_v56, %v1130_v49  ;;  %v1334_v56 = vld [vmem:[%s5949_s4 + $0x188] sm:$0xff] }
 0x63b   :  { %v3941_v52 = vpop.f32.mrf.mxu0  ;;  %3966 = vmatprep.subr.mxu0 %v1334_v56 }
 0x63c   :  { %v1133_v8 = vadd.f32 %v1129_v1, %v1106_v61  ;;  %v1132_v24 = vadd.f32 %v3941_v52, %v1128_v4  ;;  %3967 = vmatpush3.msra.mxu0 %v1334_v56 }
 0x63d   :  { %v1096_v13 = vpop.f32.mrf.mxu0  ;;  %3968 = vmatprep.subr.mxu0 %v1333_v34 }
 0x63e   :  { %v1131_v62 = vadd.f32 %v1127_v55, %v1096_v13  ;;  %3956 = vmatprep.mubr.msk.f32.mxu1 %vm24_vm0, %v1133_v8  ;;  %v1136_v16 = vadd.f32 %v3947_v32, %v1132_v24  ;;  %3969 = vmatpush3.msra.mxu0 %v1333_v34 }
 0x63f   :  { %3957 = vmatmul.mubr.msk.f32.vlgmr.msra.gmra.mxu1 %vm24_vm0, %v1134_v12 }
 0x640   :  { %v1135_v15 = vadd.f32 %v1131_v62, %v1116_v14 }
 0x642   :  { %3959 = vmatprep.mubr.msk.f32.mxu1 %vm24_vm0, %v1135_v15 }
 0x643   :  { %3960 = vmatmul.mubr.msk.f32.gmra.mxu1 %vm24_vm0, %v1136_v16 }
 0x6ff   :  { %v3958_v3 = vpop.f32.mrf.mxu1 }
 0x700   :  { %v1239_v11 = vadd.f32 %v4482_v25, %v3958_v3 }
 0x701   :  { %v1219_v22 = vpop.f32.mrf.mxu1 }
 0x702   :  { %v5168_v30 = vadd.f32 %v3506_v43, %v1239_v11  ;;  %v1238_v41 = vadd.f32 %v4483_v28, %v1219_v22 }
 0x703   :  { %v3961_v7 = vpop.f32.mrf.mxu1 }
 0x704   :  { %v5170_v9 = vadd.f32 %v3506_v43, %v1238_v41  ;;  %v1241_v33 = vadd.f32 %v4484_v46, %v3961_v7  ;;  %v1256_v60 = vsel %vm24_vm0, %v5168_v30, 0.0  ;;  %v1266_v10 = vmul.f32 %v5168_v30, %v5168_v30 }
 0x705   :  { %1257 = vadd.xlane.f32.xlu1 %v1256_v60  ;;  %v1229_v59 = vpop.f32.mrf.mxu1 }
 0x706   :  { %v5174_v39 = vadd.f32 %v3506_v43, %v1241_v33  ;;  %v1253_v18 = vsel %vm24_vm0, %v5170_v9, 0.0  ;;  %v1272_v44 = vsel %vm24_vm0, %v1266_v10, 0.0  ;;  %v1265_v31 = vmul.f32 %v5170_v9, %v5170_v9 }
 0x707   :  { %1254 = vadd.xlane.f32.xlu0 %v1253_v18  ;;  %v1240_v21 = vadd.f32 %v4485_v2, %v1229_v59  ;;  %v3507_v59 = vld [vmem:[%s5949_s4 + $0x2f0] ss:$0 sm:$0xff] }
 0x708   :  { %v1268_v6 = vmul.f32 %v5174_v39, %v5174_v39  ;;  %v1269_v23 = vsel %vm24_vm0, %v1265_v31, 0.0  ;;  %v1262_v47 = vsel %vm24_vm0, %v5174_v39, 0.0 }
 0x709   :  { %v5187_v27 = vadd.f32 %v3506_v43, %v1240_v21 }
 0x70a   :  { %v1278_v20 = vsel %vm24_vm0, %v1268_v6, 0.0 }
 0x70b   :  { %1273 = vadd.xlane.f32.xlu0 %v1272_v44  ;;  %1279 = vadd.xlane.f32.xlu1 %v1278_v20  ;;  %v1259_v50 = vsel %vm24_vm0, %v5187_v27, 0.0  ;;  %v1267_v51 = vmul.f32 %v5187_v27, %v5187_v27 }
 0x70d   :  { %v1275_v29 = vsel %vm24_vm0, %v1267_v51, 0.0 }
 0x70f   :  { %1270 = vadd.xlane.f32.xlu0 %v1269_v23 }
 0x713   :  { %1263 = vadd.xlane.f32.xlu0 %v1262_v47  ;;  %v3508_v47 = vld [vmem:[%s5949_s4 + $0x2f8] ss:$0 sm:$0xff] }
 0x717   :  { %1260 = vadd.xlane.f32.xlu0 %v1259_v50 }
 0x71b   :  { %1276 = vadd.xlane.f32.xlu0 %v1275_v29 }
 0x78e   :  { %v1258_v58 = vpop.xlane.xlu1 %1257 }
 0x78f   :  { %v1282_v42 = vmul.f32 0.03125, %v1258_v58 }
 0x790   :  { %v1255_v45 = vpop.xlane.xlu0 %1254 }
 0x791   :  { %v1290_v49 = vmul.f32 %v1282_v42, %v1282_v42  ;;  %v1281_v63 = vmul.f32 0.03125, %v1255_v45  ;;  %v1302_v6 = vsub.f32 %v5168_v30, %v1282_v42 }
 0x793   :  { %v1289_v52 = vmul.f32 %v1281_v63, %v1281_v63  ;;  %v1301_v31 = vsub.f32 %v5170_v9, %v1281_v63 }
 0x794   :  { %v1274_v61 = vpop.xlane.xlu0 %1273  ;;  %v1280_v13 = vpop.xlane.xlu1 %1279 }
 0x795   :  { %v1286_v1 = vmul.f32 0.03125, %v1274_v61  ;;  %v1288_v16 = vmul.f32 0.03125, %v1280_v13  ;;  %v3509_v13 = vld [vmem:[%s5949_s4 + $0x300] ss:$0 sm:$0xff] }
 0x797   :  { %v1294_v32 = vsub.f32 %v1286_v1, %v1290_v49  ;;  %v1482_v1 = vld [vmem:[%s5949_s4 + $0x1d8] sm:$0xff] }
 0x798   :  { %v1271_v4 = vpop.xlane.xlu0 %1270  ;;  %3976 = vmatprep.subr.mxu1 %v1482_v1 }
 0x799   :  { %v1298_v55 = vmax.f32 %v1294_v32, 0.0  ;;  %v1285_v8 = vmul.f32 0.03125, %v1271_v4  ;;  %3977 = vmatpush3.msra.mxu1 %v1482_v1  ;;  %v1481_v32 = vld [vmem:[%s5949_s4 + $0x1d0] sm:$0xff]  ;;  %v1480_v4 = vld [vmem:[%s5949_s4 + $0x1c8] sm:$0xff] }
 0x79a   :  { %3978 = vmatprep.subr.mxu1 %v1481_v32 }
 0x79b   :  { %v1306_v12 = vadd.f32 1e-12, %v1298_v55  ;;  %v1293_v24 = vsub.f32 %v1285_v8, %v1289_v52  ;;  %3979 = vmatpush3.msra.mxu1 %v1481_v32  ;;  %v1479_v52 = vld [vmem:[%s5949_s4 + $0x1c0] sm:$0xff]  ;;  %v1478_v55 = vld [vmem:[%s5949_s4 + $0x1b8] sm:$0xff]  ;;  %v1477_v8 = vld [vmem:[%s5949_s4 + $0x1b0] sm:$0xff] }
 0x79c   :  { %v1264_v62 = vpop.xlane.xlu0 %1263  ;;  %3980 = vmatprep.subr.mxu1 %v1480_v4 }
 0x79d   :  { %4346 = vrsqrt.f32 %v1306_v12  ;;  %v1297_v14 = vmax.f32 %v1293_v24, 0.0  ;;  %v1284_v15 = vmul.f32 0.03125, %v1264_v62  ;;  %3981 = vmatpush3.msra.mxu1 %v1480_v4  ;;  %v1476_v12 = vld [vmem:[%s5949_s4 + $0x1a8] sm:$0xff]  ;;  %v1475_v24 = vld [vmem:[%s5949_s4 + $0x1a0] sm:$0xff] }
 0x79e   :  { %3982 = vmatprep.subr.mxu1 %v1479_v52 }
 0x79f   :  { %v1305_v3 = vadd.f32 1e-12, %v1297_v14  ;;  %v1292_v43 = vmul.f32 %v1284_v15, %v1284_v15  ;;  %v1304_v54 = vsub.f32 %v5174_v39, %v1284_v15  ;;  %3983 = vmatpush3.msra.mxu1 %v1479_v52 }
 0x7a0   :  { %v1261_v25 = vpop.xlane.xlu0 %1260  ;;  %3984 = vmatprep.subr.mxu1 %v1478_v55 }
 0x7a1   :  { %4348 = vrsqrt.f32 %v1305_v3  ;;  %v1296_v11 = vsub.f32 %v1288_v16, %v1292_v43  ;;  %v1283_v22 = vmul.f32 0.03125, %v1261_v25  ;;  %3985 = vmatpush3.msra.mxu1 %v1478_v55 }
 0x7a2   :  { %3986 = vmatprep.subr.mxu1 %v1477_v8 }
 0x7a3   :  { %v1300_v28 = vmax.f32 %v1296_v11, 0.0  ;;  %v1291_v46 = vmul.f32 %v1283_v22, %v1283_v22  ;;  %v1303_v34 = vsub.f32 %v5187_v27, %v1283_v22  ;;  %3987 = vmatpush3.msra.mxu1 %v1477_v8 }
 0x7a4   :  { %v1277_v41 = vpop.xlane.xlu0 %1276  ;;  %3988 = vmatprep.subr.mxu1 %v1476_v12 }
 0x7a5   :  { %v1308_v7 = vadd.f32 1e-12, %v1300_v28  ;;  %v1287_v33 = vmul.f32 0.03125, %v1277_v41  ;;  %3989 = vmatpush3.msra.mxu1 %v1476_v12  ;;  %v3518_v12 = vld [vmem:[%s5949_s4 + $0x308] ss:$0 sm:$0xff] }
 0x7a6   :  { %3990 = vmatprep.subr.mxu1 %v1475_v24 }
 0x7a7   :  { %v1295_v60 = vsub.f32 %v1287_v33, %v1291_v46  ;;  %4350 = vrsqrt.f32 %v1308_v7  ;;  %3991 = vmatpush3.msra.mxu1 %v1475_v24 }
 0x7a9   :  { %v1299_v18 = vmax.f32 %v1295_v60, 0.0 }
 0x7aa   :  { %v4347_v10 = vpop.eup %4346 }
 0x7ab   :  { %v1307_v44 = vadd.f32 1e-12, %v1299_v18  ;;  %v1314_v20 = vmul.f32 %v4347_v10, %v1302_v6 }
 0x7ad   :  { %4352 = vrsqrt.f32 %v1307_v44  ;;  %v1322_v23 = vmul.f32 %v3507_v59, %v1314_v20 }
 0x7ae   :  { %v4349_v2 = vpop.eup %4348 }
 0x7af   :  { %v1313_v21 = vmul.f32 %v4349_v2, %v1301_v31  ;;  %v1330_v29 = vadd.f32 %v3508_v47, %v1322_v23 }
 0x7b1   :  { %v1321_v50 = vmul.f32 %v3507_v59, %v1313_v21 }
 0x7b3   :  { %v1329_v51 = vadd.f32 %v3508_v47, %v1321_v50 }
 0x7b4   :  { %v4351_v0 = vpop.eup %4350 }
 0x7b5   :  { %3970 = vmatprep.mubr.msk.f32.mxu0 %vm24_vm0, %v1329_v51  ;;  %v1316_v56 = vmul.f32 %v4351_v0, %v1304_v54 }
 0x7b6   :  { %3971 = vmatmul.mubr.msk.f32.vlgmr.msra.gmra.mxu0 %vm24_vm0, %v1330_v29 }
 0x7b7   :  { %v1324_v42 = vmul.f32 %v3507_v59, %v1316_v56 }
 0x7b9   :  { %v1332_v63 = vadd.f32 %v3508_v47, %v1324_v42 }
 0x7ba   :  { %v4353_v58 = vpop.eup %4352 }
 0x7bb   :  { %v1315_v45 = vmul.f32 %v4353_v58, %v1303_v34 }
 0x7bd   :  { %v1323_v61 = vmul.f32 %v3507_v59, %v1315_v45 }
 0x7bf   :  { %v1331_v49 = vadd.f32 %v3508_v47, %v1323_v61 }
 0x7c1   :  { %3973 = vmatprep.mubr.msk.f32.mxu0 %vm24_vm0, %v1331_v49 }
 0x7c2   :  { %3974 = vmatmul.mubr.msk.f32.gmra.mxu0 %vm24_vm0, %v1332_v63 }
 0x876   :  { %v3972_v62 = vpop.f32.mrf.mxu0 }
 0x877   :  { %v1426_v14 = vadd.f32 %v3972_v62, %v3509_v13 }
 0x878   :  { %v1420_v15 = vpop.f32.mrf.mxu0 }
 0x879   :  { %v1444_v16 = vmul.f32 0.044715, %v1426_v14  ;;  %v1421_v3 = vadd.f32 %v3509_v13, %v1420_v15  ;;  %v1440_v58 = vmul.f32 0.5, %v1426_v14 }
 0x87b   :  { %v1448_v43 = vmul.f32 %v1444_v16, %v1426_v14  ;;  %v1443_v25 = vmul.f32 0.044715, %v1421_v3  ;;  %v1439_v56 = vmul.f32 0.5, %v1421_v3 }
 0x87d   :  { %v1452_v11 = vmul.f32 %v1448_v43, %v1426_v14  ;;  %v1447_v22 = vmul.f32 %v1443_v25, %v1421_v3 }
 0x87f   :  { %v1456_v28 = vadd.f32 %v1452_v11, %v1426_v14  ;;  %v1451_v41 = vmul.f32 %v1447_v22, %v1421_v3 }
 0x881   :  { %v1460_v7 = vmul.f32 0.7978846, %v1456_v28  ;;  %v1455_v46 = vadd.f32 %v1451_v41, %v1421_v3 }
 0x882   :  { %v3975_v33 = vpop.f32.mrf.mxu0 }
 0x883   :  { %4354 = vtanh.f32 %v1460_v7  ;;  %v1436_v60 = vadd.f32 %v3975_v33, %v3509_v13  ;;  %v1459_v18 = vmul.f32 0.7978846, %v1455_v46 }
 0x884   :  { %v1430_v10 = vpop.f32.mrf.mxu0 }
 0x885   :  { %v1446_v6 = vmul.f32 0.044715, %v1436_v60  ;;  %v1431_v44 = vadd.f32 %v3509_v13, %v1430_v10  ;;  %4356 = vtanh.f32 %v1459_v18  ;;  %v1442_v4 = vmul.f32 0.5, %v1436_v60 }
 0x887   :  { %v1450_v20 = vmul.f32 %v1446_v6, %v1436_v60  ;;  %v1445_v31 = vmul.f32 0.044715, %v1431_v44  ;;  %v1441_v1 = vmul.f32 0.5, %v1431_v44  ;;  %v1678_v6 = vld [vmem:[%s5949_s4 + $0x1f8] sm:$0xff] }
 0x888   :  { %3998 = vmatprep.subr.mxu0 %v1678_v6 }
 0x889   :  { %v1454_v59 = vmul.f32 %v1450_v20, %v1436_v60  ;;  %v1449_v2 = vmul.f32 %v1445_v31, %v1431_v44  ;;  %3999 = vmatpush3.msra.mxu0 %v1678_v6  ;;  %v1676_v20 = vld [vmem:[%s5949_s4 + $0x1e8] sm:$0xff]  ;;  %v1675_v31 = vld [vmem:[%s5949_s4 + $0x1e0] sm:$0xff] }
 0x88b   :  { %v1458_v21 = vadd.f32 %v1454_v59, %v1436_v60  ;;  %v1453_v23 = vmul.f32 %v1449_v2, %v1431_v44 }
 0x88d   :  { %v1457_v47 = vadd.f32 %v1453_v23, %v1431_v44  ;;  %v1462_v50 = vmul.f32 0.7978846, %v1458_v21  ;;  %v1677_v44 = vld [vmem:[%s5949_s4 + $0x1f0] sm:$0xff] }
 0x88e   :  { %4000 = vmatprep.subr.mxu0 %v1677_v44 }
 0x88f   :  { %v1461_v51 = vmul.f32 0.7978846, %v1457_v47  ;;  %4358 = vtanh.f32 %v1462_v50  ;;  %4001 = vmatpush3.msra.mxu0 %v1677_v44 }
 0x890   :  { %v4355_v29 = vpop.eup %4354  ;;  %4002 = vmatprep.subr.mxu0 %v1676_v20 }
 0x891   :  { %4360 = vtanh.f32 %v1461_v51  ;;  %v1468_v54 = vadd.f32 1.0, %v4355_v29  ;;  %4003 = vmatpush3.msra.mxu0 %v1676_v20 }
 0x892   :  { %v4357_v0 = vpop.eup %4356  ;;  %4004 = vmatprep.subr.mxu0 %v1675_v31 }
 0x893   :  { %v1467_v34 = vadd.f32 1.0, %v4357_v0  ;;  %v1472_v42 = vmul.f32 %v1468_v54, %v1440_v58  ;;  %4005 = vmatpush3.msra.mxu0 %v1675_v31 }
 0x895   :  { %v1471_v45 = vmul.f32 %v1467_v34, %v1439_v56 }
 0x897   :  { %3992 = vmatprep.mubr.msk.f32.mxu1 %vm106_vm1, %v1471_v45 }
 0x898   :  { %3993 = vmatmul.mubr.msk.f32.vlgmr.msra.gmra.mxu1 %vm106_vm1, %v1472_v42 }
 0x89c   :  { %v4359_v61 = vpop.eup %4358 }
 0x89d   :  { %v1470_v63 = vadd.f32 1.0, %v4359_v61 }
 0x89e   :  { %v4361_v49 = vpop.eup %4360 }
 0x89f   :  { %v1469_v32 = vadd.f32 1.0, %v4361_v49  ;;  %v1474_v55 = vmul.f32 %v1470_v63, %v1442_v4 }
 0x8a1   :  { %v1473_v52 = vmul.f32 %v1469_v32, %v1441_v1 }
 0x8a3   :  { %3995 = vmatprep.mubr.msk.f32.mxu1 %vm106_vm1, %v1473_v52 }
 0x8a4   :  { %3996 = vmatmul.mubr.msk.f32.gmra.mxu1 %vm106_vm1, %v1474_v55 }
 0x958   :  { %v3994_v8 = vpop.f32.mrf.mxu1 }
 0x959   :  { %v1581_v24 = vadd.f32 %v3994_v8, %v5168_v30 }
 0x95a   :  { %v1561_v13 = vpop.f32.mrf.mxu1 }
 0x95b   :  { %v5257_v62 = vadd.f32 %v3518_v12, %v1581_v24  ;;  %v1580_v14 = vadd.f32 %v1561_v13, %v5170_v9 }
 0x95d   :  { %v5260_v15 = vadd.f32 %v3518_v12, %v1580_v14  ;;  %v1598_v16 = vsel %vm24_vm0, %v5257_v62, 0.0  ;;  %v1608_v3 = vmul.f32 %v5257_v62, %v5257_v62 }
 0x95e   :  { %1599 = vadd.xlane.f32.xlu1 %v1598_v16 }
 0x95f   :  { %v1595_v43 = vsel %vm24_vm0, %v5260_v15, 0.0  ;;  %v1607_v30 = vmul.f32 %v5260_v15, %v5260_v15  ;;  %v1614_v25 = vsel %vm24_vm0, %v1608_v3, 0.0 }
 0x960   :  { %1596 = vadd.xlane.f32.xlu0 %v1595_v43 }
 0x961   :  { %v1611_v9 = vsel %vm24_vm0, %v1607_v30, 0.0 }
 0x962   :  { %1615 = vadd.xlane.f32.xlu1 %v1614_v25 }
 0x964   :  { %1612 = vadd.xlane.f32.xlu0 %v1611_v9  ;;  %v3997_v11 = vpop.f32.mrf.mxu1 }
 0x965   :  { %v1583_v22 = vadd.f32 %v3997_v11, %v5174_v39 }
 0x966   :  { %v1571_v28 = vpop.f32.mrf.mxu1 }
 0x967   :  { %v5273_v41 = vadd.f32 %v3518_v12, %v1583_v22  ;;  %v1582_v7 = vadd.f32 %v1571_v28, %v5187_v27  ;;  %v3519_v28 = vld [vmem:[%s5949_s4 + $0x310] ss:$0 sm:$0xff] }
 0x969   :  { %v5276_v46 = vadd.f32 %v3518_v12, %v1582_v7  ;;  %v1604_v33 = vsel %vm24_vm0, %v5273_v41, 0.0  ;;  %v1610_v60 = vmul.f32 %v5273_v41, %v5273_v41 }
 0x96a   :  { %1605 = vadd.xlane.f32.xlu1 %v1604_v33 }
 0x96b   :  { %v1601_v18 = vsel %vm24_vm0, %v5276_v46, 0.0  ;;  %v1609_v39 = vmul.f32 %v5276_v46, %v5276_v46  ;;  %v1620_v10 = vsel %vm24_vm0, %v1610_v60, 0.0 }
 0x96c   :  { %1602 = vadd.xlane.f32.xlu0 %v1601_v18  ;;  %v3520_v18 = vld [vmem:[%s5949_s4 + $0x318] ss:$0 sm:$0xff] }
 0x96d   :  { %v1617_v27 = vsel %vm24_vm0, %v1609_v39, 0.0 }
 0x96e   :  { %1621 = vadd.xlane.f32.xlu1 %v1620_v10 }
 0x970   :  { %1618 = vadd.xlane.f32.xlu0 %v1617_v27 }
 0x9e7   :  { %v1600_v59 = vpop.xlane.xlu1 %1599 }
 0x9e8   :  { %v1624_v2 = vmul.f32 0.03125, %v1600_v59 }
 0x9e9   :  { %v1597_v21 = vpop.xlane.xlu0 %1596 }
 0x9ea   :  { %v1623_v23 = vmul.f32 0.03125, %v1597_v21  ;;  %v1632_v50 = vmul.f32 %v1624_v2, %v1624_v2  ;;  %v1644_v30 = vsub.f32 %v5257_v62, %v1624_v2 }
 0x9eb   :  { %v1616_v47 = vpop.xlane.xlu1 %1615 }
 0x9ec   :  { %v1628_v51 = vmul.f32 0.03125, %v1616_v47  ;;  %v1631_v0 = vmul.f32 %v1623_v23, %v1623_v23  ;;  %v1643_v11 = vsub.f32 %v5260_v15, %v1623_v23 }
 0x9ed   :  { %v1613_v29 = vpop.xlane.xlu0 %1612 }
 0x9ee   :  { %v1636_v54 = vsub.f32 %v1628_v51, %v1632_v50  ;;  %v1627_v56 = vmul.f32 0.03125, %v1613_v29  ;;  %v3521_v29 = vld [vmem:[%s5949_s4 + $0x320] ss:$0 sm:$0xff] }
 0x9f0   :  { %v1640_v34 = vmax.f32 %v1636_v54, 0.0  ;;  %v1635_v58 = vsub.f32 %v1627_v56, %v1631_v0 }
 0x9f2   :  { %v1648_v45 = vadd.f32 1e-12, %v1640_v34  ;;  %v1639_v42 = vmax.f32 %v1635_v58, 0.0 }
 0x9f3   :  { %v1606_v61 = vpop.xlane.xlu1 %1605 }
 0x9f4   :  { %4362 = vrsqrt.f32 %v1648_v45  ;;  %v1647_v49 = vadd.f32 1e-12, %v1639_v42  ;;  %v1626_v63 = vmul.f32 0.03125, %v1606_v61 }
 0x9f5   :  { %v1603_v1 = vpop.xlane.xlu0 %1602 }
 0x9f6   :  { %4364 = vrsqrt.f32 %v1647_v49  ;;  %v1625_v32 = vmul.f32 0.03125, %v1603_v1  ;;  %v1634_v52 = vmul.f32 %v1626_v63, %v1626_v63  ;;  %v1646_v6 = vsub.f32 %v5273_v41, %v1626_v63 }
 0x9f7   :  { %v1622_v4 = vpop.xlane.xlu1 %1621 }
 0x9f8   :  { %v1630_v55 = vmul.f32 0.03125, %v1622_v4  ;;  %v1633_v12 = vmul.f32 %v1625_v32, %v1625_v32  ;;  %v1645_v20 = vsub.f32 %v5276_v46, %v1625_v32 }
 0x9f9   :  { %v1619_v8 = vpop.xlane.xlu0 %1618 }
 0x9fa   :  { %v1638_v24 = vsub.f32 %v1630_v55, %v1634_v52  ;;  %v1629_v13 = vmul.f32 0.03125, %v1619_v8 }
 0x9fc   :  { %v1642_v14 = vmax.f32 %v1638_v24, 0.0  ;;  %v1637_v16 = vsub.f32 %v1629_v13, %v1633_v12 }
 0x9fe   :  { %v1650_v3 = vadd.f32 1e-12, %v1642_v14  ;;  %v1641_v43 = vmax.f32 %v1637_v16, 0.0 }
 0xa00   :  { %4366 = vrsqrt.f32 %v1650_v3  ;;  %v1649_v25 = vadd.f32 1e-12, %v1641_v43 }
 0xa01   :  { %v4363_v9 = vpop.eup %4362 }
 0xa02   :  { %v1656_v22 = vmul.f32 %v4363_v9, %v1644_v30  ;;  %4368 = vrsqrt.f32 %v1649_v25 }
 0xa03   :  { %v4365_v7 = vpop.eup %4364 }
 0xa04   :  { %v1655_v33 = vmul.f32 %v4365_v7, %v1643_v11  ;;  %v1664_v60 = vmul.f32 %v3519_v28, %v1656_v22 }
 0xa06   :  { %v1663_v39 = vmul.f32 %v3519_v28, %v1655_v33  ;;  %v1672_v27 = vadd.f32 %v3520_v18, %v1664_v60 }
 0xa08   :  { %v1671_v10 = vadd.f32 %v3520_v18, %v1663_v39 }
 0xa0a   :  { %4006 = vmatprep.mubr.msk.f32.mxu0 %vm24_vm0, %v1671_v10 }
 0xa0b   :  { %4007 = vmatmul.mubr.msk.f32.vlgmr.msra.gmra.mxu0 %vm24_vm0, %v1672_v27 }
 0xa0d   :  { %v4367_v44 = vpop.eup %4366 }
 0xa0e   :  { %v1658_v31 = vmul.f32 %v4367_v44, %v1646_v6 }
 0xa0f   :  { %v4369_v59 = vpop.eup %4368 }
 0xa10   :  { %v1657_v2 = vmul.f32 %v4369_v59, %v1645_v20  ;;  %v1666_v21 = vmul.f32 %v3519_v28, %v1658_v31 }
 0xa12   :  { %v1665_v23 = vmul.f32 %v3519_v28, %v1657_v2  ;;  %v1674_v50 = vadd.f32 %v3520_v18, %v1666_v21 }
 0xa14   :  { %v1673_v47 = vadd.f32 %v3520_v18, %v1665_v23 }
 0xa16   :  { %4009 = vmatprep.mubr.msk.f32.mxu0 %vm24_vm0, %v1673_v47 }
 0xa17   :  { %4010 = vmatmul.mubr.msk.f32.gmra.mxu0 %vm24_vm0, %v1674_v50 }
 0xacb   :  { %v4008_v51 = vpop.f32.mrf.mxu0 }
 0xacc   :  { %v5328_v49 = vadd.f32 %v4008_v51, %v3521_v29 }
 0xacd   :  { %v1762_v0 = vpop.f32.mrf.mxu0 }
 0xace   :  { %v5317_v54 = vadd.f32 %v3521_v29, %v1762_v0  ;;  %v1810_v32 = vmul.f32 %v5328_v49, %v4774_v40  ;;  %v1806_v4 = vmul.f32 %v5328_v49, %v4791_v48  ;;  %v1802_v12 = vmul.f32 %v5328_v49, %v4805_v53 }
 0xacf   :  { %v1798_v14 = vmul.f32 %v5328_v49, %v4819_v57  ;;  %v1826_v43 = vmul.f32 %v4857_v17, %v5328_v49  ;;  %v1822_v9 = vmul.f32 %v4860_v19, %v5328_v49 }
 0xad0   :  { %v1781_v56 = vmul.f32 %v5317_v54, %v4747_v38  ;;  %v1809_v52 = vmul.f32 %v5317_v54, %v4774_v40  ;;  %v1825_v25 = vmul.f32 %v4857_v17, %v5317_v54 }
 0xad2   :  { %4044 = vmatprep.mubr.msk.f32.mxu0 %vm24_vm0, %v1781_v56 }
 0xad7   :  { %v4011_v34 = vpop.f32.mrf.mxu0 }
 0xad8   :  { %v5322_v58 = vadd.f32 %v4011_v34, %v3521_v29 }
 0xad9   :  { %v1772_v45 = vpop.f32.mrf.mxu0 }
 0xada   :  { %v5324_v42 = vadd.f32 %v3521_v29, %v1772_v45  ;;  %v1812_v61 = vmul.f32 %v5322_v58, %v4774_v40  ;;  %v1808_v1 = vmul.f32 %v5322_v58, %v4791_v48  ;;  %v1804_v55 = vmul.f32 %v5322_v58, %v4805_v53 }
 0xadb   :  { %v1800_v24 = vmul.f32 %v5322_v58, %v4819_v57  ;;  %v1828_v16 = vmul.f32 %v4857_v17, %v5322_v58  ;;  %v1824_v30 = vmul.f32 %v4860_v19, %v5322_v58  ;;  %v1820_v11 = vmul.f32 %v4881_v26, %v5322_v58 }
 0xadc   :  { %1875 = vrot.lane.b32.xlu0 %v1812_v61, %s4504_s23  ;;  %v1811_v63 = vmul.f32 %v5324_v42, %v4774_v40  ;;  %v1807_v8 = vmul.f32 %v5324_v42, %v4791_v48  ;;  %v1805_v40 = vmul.f32 %v5317_v54, %v4791_v48  ;;  %v1803_v13 = vmul.f32 %v5324_v42, %v4805_v53 }
 0xadd   :  { %v1801_v48 = vmul.f32 %v5317_v54, %v4805_v53  ;;  %v1799_v3 = vmul.f32 %v5324_v42, %v4819_v57  ;;  %v1797_v53 = vmul.f32 %v5317_v54, %v4819_v57  ;;  %v1821_v57 = vmul.f32 %v4860_v19, %v5317_v54 }
 0xade   :  { %1873 = vrot.lane.b32.xlu1 %v1811_v63, %s4504_s23  ;;  %v1827_v22 = vmul.f32 %v4857_v17, %v5324_v42  ;;  %v1823_v28 = vmul.f32 %v4860_v19, %v5324_v42  ;;  %v1782_v61 = vmul.f32 %v5328_v49, %v4747_v38  ;;  %v1783_v63 = vmul.f32 %v5324_v42, %v4747_v38 }
 0xae0   :  { %1867 = vrot.lane.b32.xlu0 %v1808_v1, %s4504_s23  ;;  %v1784_v1 = vmul.f32 %v5322_v58, %v4747_v38  ;;  %v1788_v38 = vmul.f32 %v5322_v58, %v4739_v36 }
 0xae2   :  { %1871 = vrot.lane.b32.xlu1 %v1810_v32, %s4504_s23  ;;  %v1785_v32 = vmul.f32 %v5317_v54, %v4739_v36 }
 0xae4   :  { %1863 = vrot.lane.b32.xlu0 %v1806_v4, %s4504_s23  ;;  %v1786_v4 = vmul.f32 %v5328_v49, %v4739_v36 }
 0xae6   :  { %1869 = vrot.lane.b32.xlu1 %v1809_v52, %s4504_s23  ;;  %v1787_v52 = vmul.f32 %v5324_v42, %v4739_v36  ;;  %v1792_v36 = vmul.f32 %v5322_v58, %v4735_v35 }
 0xae8   :  { %1859 = vrot.lane.b32.xlu0 %v1804_v55, %s4504_s23  ;;  %v1789_v55 = vmul.f32 %v5317_v54, %v4735_v35 }
 0xaea   :  { %1865 = vrot.lane.b32.xlu1 %v1807_v8, %s4504_s23  ;;  %v1790_v8 = vmul.f32 %v5328_v49, %v4735_v35 }
 0xaec   :  { %1855 = vrot.lane.b32.xlu0 %v1802_v12, %s4504_s23  ;;  %v1791_v12 = vmul.f32 %v5324_v42, %v4735_v35  ;;  %v1796_v35 = vmul.f32 %v5322_v58, %v4742_v37 }
 0xaee   :  { %1861 = vrot.lane.b32.xlu1 %v1805_v40, %s4504_s23  ;;  %v1793_v40 = vmul.f32 %v5317_v54, %v4742_v37 }
 0xaf0   :  { %1851 = vrot.lane.b32.xlu0 %v1800_v24, %s4504_s23  ;;  %v1794_v24 = vmul.f32 %v5328_v49, %v4742_v37 }
 0xaf2   :  { %1857 = vrot.lane.b32.xlu1 %v1803_v13, %s4504_s23  ;;  %v1795_v13 = vmul.f32 %v5324_v42, %v4742_v37 }
 0xaf4   :  { %1847 = vrot.lane.b32.xlu0 %v1798_v14, %s4504_s23 }
 0xaf6   :  { %1853 = vrot.lane.b32.xlu1 %v1801_v48, %s4504_s23  ;;  %v4486_v48 = vld [vmem:[%s5953_s3 + $0x8] sm:$0xff] }
 0xaf8   :  { %2292 = vrot.lane.b32.xlu0 %v1828_v16, %s4505_s24 }
 0xafa   :  { %1849 = vrot.lane.b32.xlu1 %v1799_v3, %s4504_s23 }
 0xafc   :  { %2288 = vrot.lane.b32.xlu0 %v1826_v43, %s4505_s24  ;;  %v4487_v43 = vld [vmem:[%s5953_s3] sm:$0xff] }
 0xafe   :  { %1845 = vrot.lane.b32.xlu1 %v1797_v53, %s4504_s23 }
 0xb00   :  { %2284 = vrot.lane.b32.xlu0 %v1824_v30, %s4505_s24 }
 0xb02   :  { %2286 = vrot.lane.b32.xlu1 %v1825_v25, %s4505_s24  ;;  %v4488_v25 = vld [vmem:[%s5953_s3 + $0x18] sm:$0xff] }
 0xb04   :  { %2280 = vrot.lane.b32.xlu0 %v1822_v9, %s4505_s24 }
 0xb06   :  { %2278 = vrot.lane.b32.xlu1 %v1821_v57, %s4505_s24 }
 0xb08   :  { %2276 = vrot.lane.b32.xlu0 %v1820_v11, %s4505_s24 }
 0xb0a   :  { %2290 = vrot.lane.b32.xlu1 %v1827_v22, %s4505_s24  ;;  %v4489_v22 = vld [vmem:[%s5953_s3 + $0x10] sm:$0xff] }
 0xb0e   :  { %2282 = vrot.lane.b32.xlu1 %v1823_v28, %s4505_s24 }
 0xb4e   :  { %v1876_v7 = vpop.permute.xlu0 %1875 }
 0xb4f   :  { %4012 = vmatprep.subr.msk.mxu0 %vm24_vm0, %v1876_v7 }
 0xb50   :  { %4013 = vmatpush3.xpose.msk.msra.mxu0 %vm24_vm0, %v1876_v7  ;;  %v1874_v33 = vpop.permute.xlu1 %1873 }
 0xb51   :  { %4014 = vmatprep.subr.msk.mxu0 %vm24_vm0, %v1874_v33 }
 0xb52   :  { %v1868_v60 = vpop.permute.xlu0 %1867 }
 0xb54   :  { %4015 = vmatpush3.xpose.msk.msra.mxu0 %vm24_vm0, %v1874_v33  ;;  %v1872_v18 = vpop.permute.xlu1 %1871 }
 0xb55   :  { %4016 = vmatprep.subr.msk.mxu0 %vm24_vm0, %v1872_v18 }
 0xb56   :  { %v1864_v17 = vpop.permute.xlu0 %1863 }
 0xb58   :  { %4017 = vmatpush3.xpose.msk.msra.mxu0 %vm24_vm0, %v1872_v18  ;;  %v1870_v19 = vpop.permute.xlu1 %1869 }
 0xb59   :  { %4018 = vmatprep.subr.msk.mxu0 %vm24_vm0, %v1870_v19 }
 0xb5a   :  { %v1860_v39 = vpop.permute.xlu0 %1859 }
 0xb5c   :  { %4019 = vmatpush3.xpose.msk.msra.mxu0 %vm24_vm0, %v1870_v19  ;;  %v1866_v10 = vpop.permute.xlu1 %1865 }
 0xb5d   :  { %4020 = vmatprep.subr.msk.mxu0 %vm24_vm0, %v1868_v60 }
 0xb5e   :  { %v1856_v27 = vpop.permute.xlu0 %1855 }
 0xb60   :  { %4021 = vmatpush3.xpose.msk.msra.mxu0 %vm24_vm0, %v1868_v60  ;;  %v1862_v6 = vpop.permute.xlu1 %1861  ;;  %v4490_v60 = vld [vmem:[%s5953_s3 + $0x20] sm:$0xff] }
 0xb61   :  { %4022 = vmatprep.subr.msk.mxu0 %vm24_vm0, %v1866_v10 }
 0xb62   :  { %v1852_v44 = vpop.permute.xlu0 %1851 }
 0xb64   :  { %4023 = vmatpush3.xpose.msk.msra.mxu0 %vm24_vm0, %v1866_v10  ;;  %v1858_v20 = vpop.permute.xlu1 %1857  ;;  %v4491_v10 = vld [vmem:[%s5953_s3 + $0x30] sm:$0xff] }
 0xb65   :  { %4024 = vmatprep.subr.msk.mxu0 %vm24_vm0, %v1864_v17 }
 0xb66   :  { %v1848_v31 = vpop.permute.xlu0 %1847 }
 0xb68   :  { %4025 = vmatpush3.xpose.msk.msra.mxu0 %vm24_vm0, %v1864_v17  ;;  %v1854_v59 = vpop.permute.xlu1 %1853 }
 0xb69   :  { %4026 = vmatprep.subr.msk.mxu0 %vm24_vm0, %v1862_v6 }
 0xb6a   :  { %v2293_v2 = vpop.permute.xlu0 %2292 }
 0xb6b   :  { %4068 = vmatprep.subr.mxu1 %v2293_v2 }
 0xb6c   :  { %4027 = vmatpush3.xpose.msk.msra.mxu0 %vm24_vm0, %v1862_v6  ;;  %4069 = vmatpush3.msra.mxu1 %v2293_v2  ;;  %v1850_v21 = vpop.permute.xlu1 %1849 }
 0xb6d   :  { %4028 = vmatprep.subr.msk.mxu0 %vm24_vm0, %v1860_v39 }
 0xb6e   :  { %v2289_v50 = vpop.permute.xlu0 %2288 }
 0xb70   :  { %4029 = vmatpush3.xpose.msk.msra.mxu0 %vm24_vm0, %v1860_v39  ;;  %v1846_v23 = vpop.permute.xlu1 %1845  ;;  %v1819_v39 = vmul.f32 %v4881_v26, %v5324_v42 }
 0xb71   :  { %4030 = vmatprep.subr.msk.mxu0 %vm24_vm0, %v1858_v20 }
 0xb72   :  { %v2285_v0 = vpop.permute.xlu0 %2284 }
 0xb74   :  { %4031 = vmatpush3.xpose.msk.msra.mxu0 %vm24_vm0, %v1858_v20  ;;  %v2287_v47 = vpop.permute.xlu1 %2286  ;;  %v4492_v20 = vld [vmem:[%s5953_s3 + $0x40] sm:$0xff] }
 0xb75   :  { %4032 = vmatprep.subr.msk.mxu0 %vm24_vm0, %v1856_v27 }
 0xb76   :  { %v2281_v56 = vpop.permute.xlu0 %2280 }
 0xb78   :  { %4033 = vmatpush3.xpose.msk.msra.mxu0 %vm24_vm0, %v1856_v27  ;;  %v2279_v51 = vpop.permute.xlu1 %2278 }
 0xb79   :  { %4034 = vmatprep.subr.msk.mxu0 %vm24_vm0, %v1854_v59 }
 0xb7a   :  { %v2277_v45 = vpop.permute.xlu0 %2276 }
 0xb7c   :  { %4035 = vmatpush3.xpose.msk.msra.mxu0 %vm24_vm0, %v1854_v59  ;;  %v2291_v29 = vpop.permute.xlu1 %2290 }
 0xb7d   :  { %4036 = vmatprep.subr.msk.mxu0 %vm24_vm0, %v1852_v44  ;;  %4070 = vmatprep.subr.mxu1 %v2291_v29 }
 0xb7e   :  { %4071 = vmatpush3.msra.mxu1 %v2291_v29 }
 0xb7f   :  { %4072 = vmatprep.subr.mxu1 %v2289_v50 }
 0xb80   :  { %4037 = vmatpush3.xpose.msk.msra.mxu0 %vm24_vm0, %v1852_v44  ;;  %4073 = vmatpush3.msra.mxu1 %v2289_v50  ;;  %v2283_v34 = vpop.permute.xlu1 %2282  ;;  %v4494_v50 = vld [vmem:[%s5953_s3 + $0x60] sm:$0xff] }
 0xb81   :  { %4038 = vmatprep.subr.msk.mxu0 %vm24_vm0, %v1850_v21  ;;  %4074 = vmatprep.subr.mxu1 %v2287_v47 }
 0xb82   :  { %4075 = vmatpush3.msra.mxu1 %v2287_v47 }
 0xb83   :  { %4076 = vmatprep.subr.mxu1 %v2285_v0 }
 0xb84   :  { %4039 = vmatpush3.xpose.msk.msra.mxu0 %vm24_vm0, %v1850_v21  ;;  %4077 = vmatpush3.msra.mxu1 %v2285_v0  ;;  %v4493_v21 = vld [vmem:[%s5953_s3 + $0x50] sm:$0xff] }
 0xb85   :  { %4040 = vmatprep.subr.msk.mxu0 %vm24_vm0, %v1848_v31  ;;  %4078 = vmatprep.subr.mxu1 %v2283_v34  ;;  %v4495_v0 = vld [vmem:[%s5953_s3 + $0x70] sm:$0xff] }
 0xb86   :  { %4079 = vmatpush3.msra.mxu1 %v2283_v34  ;;  %v4496_v34 = vld [vmem:[%s5953_s3 + $0x28] sm:$0xff] }
 0xb87   :  { %4080 = vmatprep.subr.mxu1 %v2281_v56 }
 0xb88   :  { %4041 = vmatpush3.xpose.msk.msra.mxu0 %vm24_vm0, %v1848_v31  ;;  %4081 = vmatpush3.msra.mxu1 %v2281_v56 }
 0xb89   :  { %4042 = vmatprep.subr.msk.mxu0 %vm24_vm0, %v1846_v23  ;;  %4082 = vmatprep.subr.mxu1 %v2279_v51 }
 0xb8a   :  { %4083 = vmatpush3.msra.mxu1 %v2279_v51 }
 0xb8b   :  { %4084 = vmatprep.subr.mxu1 %v2277_v45 }
 0xb8c   :  { %4043 = vmatpush3.xpose.msk.msra.mxu0 %vm24_vm0, %v1846_v23  ;;  %4085 = vmatpush3.msra.mxu1 %v2277_v45 }
 0xb8f   :  { %4045 = vmatmul.mubr.msk.f32.vlgmr.msra.gmra.mxu0 %vm24_vm0, %v1782_v61  ;;  %v1818_v61 = vmul.f32 %v4881_v26, %v5328_v49 }
 0xb90   :  { %4047 = vmatprep.mubr.msk.f32.mxu0 %vm24_vm0, %v1783_v63  ;;  %v4497_v63 = vld [vmem:[%s5953_s3 + $0x38] sm:$0xff] }
 0xb93   :  { %4048 = vmatmul.mubr.msk.f32.gmra.mxu0 %vm24_vm0, %v1784_v1 }
 0xb94   :  { %4050 = vmatprep.mubr.msk.f32.mxu0 %vm24_vm0, %v1785_v32  ;;  %v1816_v32 = vmul.f32 %v5053_v5, %v5322_v58  ;;  %v4500_v58 = vld [vmem:[%s5953_s3 + $0x68] sm:$0xff] }
 0xb97   :  { %4051 = vmatmul.mubr.msk.f32.gmra.mxu0 %vm24_vm0, %v1786_v4  ;;  %v4498_v4 = vld [vmem:[%s5953_s3 + $0x48] sm:$0xff] }
 0xb98   :  { %4053 = vmatprep.mubr.msk.f32.mxu0 %vm24_vm0, %v1787_v52 }
 0xb9b   :  { %4054 = vmatmul.mubr.msk.f32.gmra.mxu0 %vm24_vm0, %v1788_v38  ;;  %v1814_v38 = vmul.f32 %v5053_v5, %v5328_v49  ;;  %v4501_v49 = vld [vmem:[%s5953_s3 + $0x78] sm:$0xff] }
 0xb9c   :  { %4056 = vmatprep.mubr.msk.f32.mxu0 %vm24_vm0, %v1789_v55  ;;  %v4499_v55 = vld [vmem:[%s5953_s3 + $0x58] sm:$0xff] }
 0xb9f   :  { %4057 = vmatmul.mubr.msk.f32.gmra.mxu0 %vm24_vm0, %v1790_v8 }
 0xba0   :  { %4059 = vmatprep.mubr.msk.f32.mxu0 %vm24_vm0, %v1791_v12 }
 0xba3   :  { %4060 = vmatmul.mubr.msk.f32.gmra.mxu0 %vm24_vm0, %v1792_v36 }
 0xba4   :  { %4062 = vmatprep.mubr.msk.f32.mxu0 %vm24_vm0, %v1793_v40  ;;  %v1817_v40 = vmul.f32 %v4881_v26, %v5317_v54 }
 0xba7   :  { %4063 = vmatmul.mubr.msk.f32.gmra.mxu0 %vm24_vm0, %v1794_v24  ;;  %v1815_v24 = vmul.f32 %v5053_v5, %v5324_v42 }
 0xba8   :  { %4065 = vmatprep.mubr.msk.f32.mxu0 %vm24_vm0, %v1795_v13  ;;  %v1813_v13 = vmul.f32 %v5053_v5, %v5317_v54 }
 0xbab   :  { %4066 = vmatmul.mubr.msk.f32.gmra.mxu0 %vm24_vm0, %v1796_v35 }
 0xc4f   :  { %v4046_v14 = vpop.f32.mrf.mxu0 }
 0xc50   :  { %v5483_v16 = vadd.f32 %v4486_v48, %v4046_v14 }
 0xc51   :  { %v2023_v3 = vpop.f32.mrf.mxu0 }
 0xc52   :  { %v5488_v53 = vadd.f32 %v4487_v43, %v2023_v3  ;;  %2104 = vmax.xlane.f32.xlu1 %v5483_v16 }
 0xc53   :  { %v4049_v30 = vpop.f32.mrf.mxu0 }
 0xc54   :  { %2102 = vmax.xlane.f32.xlu0 %v5488_v53  ;;  %v5495_v9 = vadd.f32 %v4488_v25, %v4049_v30 }
 0xc55   :  { %v2033_v37 = vpop.f32.mrf.mxu0 }
 0xc56   :  { %v5501_v28 = vadd.f32 %v4489_v22, %v2033_v37 }
 0xc57   :  { %v4052_v57 = vpop.f32.mrf.mxu0 }
 0xc58   :  { %2108 = vmax.xlane.f32.xlu0 %v5495_v9  ;;  %v5546_v45 = vadd.f32 %v4496_v34, %v4052_v57 }
 0xc59   :  { %v2043_v11 = vpop.f32.mrf.mxu0 }
 0xc5a   :  { %v5507_v18 = vadd.f32 %v4490_v60, %v2043_v11 }
 0xc5b   :  { %v4055_v7 = vpop.f32.mrf.mxu0 }
 0xc5c   :  { %2106 = vmax.xlane.f32.xlu0 %v5501_v28  ;;  %v5554_v1 = vadd.f32 %v4497_v63, %v4055_v7 }
 0xc5d   :  { %v2053_v33 = vpop.f32.mrf.mxu0 }
 0xc5e   :  { %v5515_v27 = vadd.f32 %v4491_v10, %v2053_v33 }
 0xc5f   :  { %v4058_v17 = vpop.f32.mrf.mxu0 }
 0xc60   :  { %2110 = vmax.xlane.f32.xlu0 %v5507_v18  ;;  %v5563_v52 = vadd.f32 %v4498_v4, %v4058_v17 }
 0xc61   :  { %v2063_v19 = vpop.f32.mrf.mxu0 }
 0xc62   :  { %v5522_v31 = vadd.f32 %v4492_v20, %v2063_v19 }
 0xc63   :  { %2274 = vrot.lane.b32.xlu1 %v1819_v39, %s4505_s24  ;;  %v4061_v6 = vpop.f32.mrf.mxu0 }
 0xc64   :  { %2114 = vmax.xlane.f32.xlu0 %v5515_v27  ;;  %v5572_v8 = vadd.f32 %v4499_v55, %v4061_v6 }
 0xc65   :  { %v2073_v44 = vpop.f32.mrf.mxu0 }
 0xc66   :  { %v5528_v23 = vadd.f32 %v4493_v21, %v2073_v44 }
 0xc67   :  { %v4064_v59 = vpop.f32.mrf.mxu0 }
 0xc68   :  { %2118 = vmax.xlane.f32.xlu0 %v5522_v31  ;;  %v5579_v12 = vadd.f32 %v4500_v58, %v4064_v59 }
 0xc69   :  { %v2083_v2 = vpop.f32.mrf.mxu0 }
 0xc6a   :  { %v5534_v51 = vadd.f32 %v4494_v50, %v2083_v2 }
 0xc6b   :  { %v4067_v47 = vpop.f32.mrf.mxu0 }
 0xc6c   :  { %2122 = vmax.xlane.f32.xlu0 %v5528_v23  ;;  %v5585_v36 = vadd.f32 %v4501_v49, %v4067_v47 }
 0xc6d   :  { %v2093_v29 = vpop.f32.mrf.mxu0 }
 0xc6e   :  { %v5540_v56 = vadd.f32 %v4495_v0, %v2093_v29 }
 0xc70   :  { %2126 = vmax.xlane.f32.xlu0 %v5534_v51 }
 0xc74   :  { %2130 = vmax.xlane.f32.xlu0 %v5540_v56 }
 0xc87   :  { %2112 = vmax.xlane.f32.xlu1 %v5546_v45 }
 0xc8a   :  { %2272 = vrot.lane.b32.xlu0 %v1818_v61, %s4505_s24 }
 0xc8b   :  { %2116 = vmax.xlane.f32.xlu1 %v5554_v1 }
 0xc8e   :  { %2268 = vrot.lane.b32.xlu0 %v1816_v32, %s4505_s24 }
 0xc8f   :  { %2120 = vmax.xlane.f32.xlu1 %v5563_v52 }
 0xc92   :  { %2264 = vrot.lane.b32.xlu0 %v1814_v38, %s4505_s24 }
 0xc93   :  { %2124 = vmax.xlane.f32.xlu1 %v5572_v8 }
 0xc97   :  { %2128 = vmax.xlane.f32.xlu1 %v5579_v12 }
 0xc9b   :  { %2132 = vmax.xlane.f32.xlu1 %v5585_v36 }
 0xcac   :  { %2270 = vrot.lane.b32.xlu1 %v1817_v40, %s4505_s24 }
 0xcb0   :  { %2266 = vrot.lane.b32.xlu1 %v1815_v24, %s4505_s24 }
 0xcb4   :  { %2262 = vrot.lane.b32.xlu1 %v1813_v13, %s4505_s24 }
 0xcdb   :  { %v2105_v35 = vpop.xlane.xlu1 %2104 }
 0xcdc   :  { %v2135_v14 = vsub.f32 %v5483_v16, %v2105_v35 }
 0xcdd   :  { %v2103_v48 = vpop.xlane.xlu0 %2102 }
 0xcde   :  { %v2152_v3 = vmul.f32 1.442695, %v2135_v14  ;;  %v2134_v43 = vsub.f32 %v5488_v53, %v2103_v48 }
 0xcdf   :  { %v2275_v26 = vpop.permute.xlu1 %2274 }
 0xce0   :  { %4370 = vpow2.f32 %v2152_v3  ;;  %v2150_v30 = vmul.f32 1.442695, %v2134_v43  ;;  %4086 = vmatprep.subr.mxu1 %v2275_v26 }
 0xce1   :  { %4087 = vmatpush3.msra.mxu1 %v2275_v26  ;;  %v2109_v42 = vpop.xlane.xlu0 %2108 }
 0xce2   :  { %4372 = vpow2.f32 %v2150_v30  ;;  %v2137_v37 = vsub.f32 %v5495_v9, %v2109_v42 }
 0xce4   :  { %v2156_v25 = vmul.f32 1.442695, %v2137_v37 }
 0xce5   :  { %v2107_v5 = vpop.xlane.xlu0 %2106 }
 0xce6   :  { %4374 = vpow2.f32 %v2156_v25  ;;  %v2136_v54 = vsub.f32 %v5501_v28, %v2107_v5 }
 0xce8   :  { %v2154_v57 = vmul.f32 1.442695, %v2136_v54 }
 0xce9   :  { %v2111_v16 = vpop.xlane.xlu0 %2110 }
 0xcea   :  { %4376 = vpow2.f32 %v2154_v57  ;;  %v2138_v11 = vsub.f32 %v5507_v18, %v2111_v16 }
 0xcec   :  { %v2158_v53 = vmul.f32 1.442695, %v2138_v11 }
 0xced   :  { %v5602_v22 = vpop.eup %4370  ;;  %v2115_v7 = vpop.xlane.xlu0 %2114 }
 0xcee   :  { %4378 = vpow2.f32 %v2158_v53  ;;  %v2140_v33 = vsub.f32 %v5515_v27, %v2115_v7  ;;  %2184 = vadd.xlane.f32.xlu0 %v5602_v22 }
 0xcef   :  { %v5606_v9 = vpop.eup %4372 }
 0xcf0   :  { %v2162_v60 = vmul.f32 1.442695, %v2140_v33  ;;  %2182 = vadd.xlane.f32.xlu1 %v5606_v9 }
 0xcf1   :  { %v2119_v28 = vpop.xlane.xlu0 %2118 }
 0xcf2   :  { %4380 = vpow2.f32 %v2162_v60  ;;  %v2142_v17 = vsub.f32 %v5522_v31, %v2119_v28 }
 0xcf3   :  { %v5610_v19 = vpop.eup %4374 }
 0xcf4   :  { %v2166_v18 = vmul.f32 1.442695, %v2142_v17  ;;  %2188 = vadd.xlane.f32.xlu0 %v5610_v19 }
 0xcf5   :  { %v2123_v39 = vpop.xlane.xlu0 %2122 }
 0xcf6   :  { %4382 = vpow2.f32 %v2166_v18  ;;  %v2144_v10 = vsub.f32 %v5528_v23, %v2123_v39 }
 0xcf7   :  { %v5614_v27 = vpop.eup %4376 }
 0xcf8   :  { %v2170_v6 = vmul.f32 1.442695, %v2144_v10  ;;  %2186 = vadd.xlane.f32.xlu1 %v5614_v27 }
 0xcf9   :  { %v2127_v44 = vpop.xlane.xlu0 %2126 }
 0xcfa   :  { %4384 = vpow2.f32 %v2170_v6  ;;  %v2146_v20 = vsub.f32 %v5534_v51, %v2127_v44 }
 0xcfb   :  { %v5618_v59 = vpop.eup %4378 }
 0xcfc   :  { %v2174_v31 = vmul.f32 1.442695, %v2146_v20  ;;  %2190 = vadd.xlane.f32.xlu1 %v5618_v59 }
 0xcfd   :  { %v2131_v2 = vpop.xlane.xlu0 %2130 }
 0xcfe   :  { %4386 = vpow2.f32 %v2174_v31  ;;  %v2148_v21 = vsub.f32 %v5540_v56, %v2131_v2 }
 0xcff   :  { %v5622_v47 = vpop.eup %4380 }
 0xd00   :  { %v2178_v23 = vmul.f32 1.442695, %v2148_v21  ;;  %2194 = vadd.xlane.f32.xlu1 %v5622_v47 }
 0xd01   :  { %v2273_v50 = vpop.permute.xlu0 %2272 }
 0xd02   :  { %4388 = vpow2.f32 %v2178_v23  ;;  %4088 = vmatprep.subr.mxu1 %v2273_v50 }
 0xd03   :  { %v5625_v29 = vpop.eup %4382  ;;  %4089 = vmatpush3.msra.mxu1 %v2273_v50 }
 0xd04   :  { %2198 = vadd.xlane.f32.xlu1 %v5625_v29 }
 0xd07   :  { %v5628_v51 = vpop.eup %4384 }
 0xd08   :  { %2202 = vadd.xlane.f32.xlu1 %v5628_v51 }
 0xd0b   :  { %v5631_v0 = vpop.eup %4386 }
 0xd0c   :  { %2206 = vadd.xlane.f32.xlu1 %v5631_v0 }
 0xd0f   :  { %v5634_v56 = vpop.eup %4388 }
 0xd10   :  { %v2113_v34 = vpop.xlane.xlu1 %2112  ;;  %2210 = vadd.xlane.f32.xlu1 %v5634_v56 }
 0xd11   :  { %v2139_v61 = vsub.f32 %v5546_v45, %v2113_v34 }
 0xd13   :  { %v2160_v63 = vmul.f32 1.442695, %v2139_v61 }
 0xd14   :  { %v2117_v32 = vpop.xlane.xlu1 %2116 }
 0xd15   :  { %4390 = vpow2.f32 %v2160_v63  ;;  %v2141_v4 = vsub.f32 %v5554_v1, %v2117_v32 }
 0xd17   :  { %v2164_v38 = vmul.f32 1.442695, %v2141_v4 }
 0xd18   :  { %v2121_v55 = vpop.xlane.xlu1 %2120 }
 0xd19   :  { %4392 = vpow2.f32 %v2164_v38  ;;  %v2143_v58 = vsub.f32 %v5563_v52, %v2121_v55 }
 0xd1b   :  { %v2168_v49 = vmul.f32 1.442695, %v2143_v58 }
 0xd1c   :  { %v2125_v40 = vpop.xlane.xlu1 %2124 }
 0xd1d   :  { %4394 = vpow2.f32 %v2168_v49  ;;  %v2145_v24 = vsub.f32 %v5572_v8, %v2125_v40  ;;  %v2269_v8 = vpop.permute.xlu0 %2268 }
 0xd1f   :  { %v2172_v13 = vmul.f32 1.442695, %v2145_v24 }
 0xd20   :  { %v2129_v35 = vpop.xlane.xlu1 %2128 }
 0xd21   :  { %4396 = vpow2.f32 %v2172_v13  ;;  %v2147_v45 = vsub.f32 %v5579_v12, %v2129_v35 }
 0xd22   :  { %v5642_v14 = vpop.eup %4390 }
 0xd23   :  { %v2176_v48 = vmul.f32 1.442695, %v2147_v45  ;;  %2192 = vadd.xlane.f32.xlu0 %v5642_v14 }
 0xd24   :  { %v2133_v1 = vpop.xlane.xlu1 %2132 }
 0xd25   :  { %4398 = vpow2.f32 %v2176_v48  ;;  %v2149_v3 = vsub.f32 %v5585_v36, %v2133_v1  ;;  %v2265_v36 = vpop.permute.xlu0 %2264 }
 0xd26   :  { %v5646_v52 = vpop.eup %4392 }
 0xd27   :  { %v2180_v43 = vmul.f32 1.442695, %v2149_v3  ;;  %2196 = vadd.xlane.f32.xlu0 %v5646_v52 }
 0xd28   :  { %v2271_v26 = vpop.permute.xlu1 %2270 }
 0xd29   :  { %4400 = vpow2.f32 %v2180_v43  ;;  %4090 = vmatprep.subr.mxu1 %v2271_v26  ;;  %v2470_v43 = vld [vmem:[%s5949_s4 + $0x218] sm:$0xff] }
 0xd2a   :  { %v5649_v30 = vpop.eup %4394  ;;  %4091 = vmatpush3.msra.mxu1 %v2271_v26 }
 0xd2b   :  { %2200 = vadd.xlane.f32.xlu0 %v5649_v30  ;;  %4092 = vmatprep.subr.mxu1 %v2269_v8 }
 0xd2c   :  { %v2267_v12 = vpop.permute.xlu1 %2266  ;;  %4093 = vmatpush3.msra.mxu1 %v2269_v8  ;;  %v2467_v8 = vld [vmem:[%s5949_s4 + $0x200] sm:$0xff] }
 0xd2d   :  { %4094 = vmatprep.subr.mxu1 %v2267_v12 }
 0xd2e   :  { %v5652_v42 = vpop.eup %4396  ;;  %4095 = vmatpush3.msra.mxu1 %v2267_v12 }
 0xd2f   :  { %2204 = vadd.xlane.f32.xlu0 %v5652_v42  ;;  %4096 = vmatprep.subr.mxu1 %v2265_v36 }
 0xd30   :  { %v2263_v37 = vpop.permute.xlu1 %2262  ;;  %4097 = vmatpush3.msra.mxu1 %v2265_v36 }
 0xd31   :  { %4098 = vmatprep.subr.mxu1 %v2263_v37 }
 0xd32   :  { %v5655_v25 = vpop.eup %4398  ;;  %4099 = vmatpush3.msra.mxu1 %v2263_v37 }
 0xd33   :  { %2208 = vadd.xlane.f32.xlu0 %v5655_v25  ;;  %4124 = vmatprep.subr.mxu1 %v2470_v43 }
 0xd36   :  { %v5658_v5 = vpop.eup %4400 }
 0xd37   :  { %2212 = vadd.xlane.f32.xlu0 %v5658_v5 }
 0xd77   :  { %v2185_v54 = vpop.xlane.xlu0 %2184 }
 0xd78   :  { %4402 = vrcp.f32 %v2185_v54 }
 0xd79   :  { %v2183_v57 = vpop.xlane.xlu1 %2182 }
 0xd7a   :  { %4404 = vrcp.f32 %v2183_v57 }
 0xd7d   :  { %v2189_v16 = vpop.xlane.xlu0 %2188 }
 0xd7e   :  { %4406 = vrcp.f32 %v2189_v16 }
 0xd81   :  { %v2187_v11 = vpop.xlane.xlu1 %2186 }
 0xd82   :  { %4408 = vrcp.f32 %v2187_v11 }
 0xd85   :  { %v2191_v53 = vpop.xlane.xlu1 %2190  ;;  %v4403_v7 = vpop.eup %4402 }
 0xd86   :  { %4410 = vrcp.f32 %v2191_v53  ;;  %v2231_v28 = vmul.f32 %v4403_v7, %v5602_v22 }
 0xd87   :  { %v4405_v33 = vpop.eup %4404 }
 0xd88   :  { %v2230_v60 = vmul.f32 %v4405_v33, %v5606_v9 }
 0xd89   :  { %v2195_v20 = vpop.xlane.xlu1 %2194 }
 0xd8a   :  { %4100 = vmatprep.mubr.f32.mxu1 %v2230_v60  ;;  %4412 = vrcp.f32 %v2195_v20 }
 0xd8b   :  { %4101 = vmatmul.mubr.f32.vlgmr.msra.gmra.mxu1 %v2231_v28  ;;  %v4407_v17 = vpop.eup %4406 }
 0xd8c   :  { %v2233_v10 = vmul.f32 %v4407_v17, %v5610_v19  ;;  %4125 = vmatpush3.msra.mxu1 %v2470_v43 }
 0xd8d   :  { %v2199_v31 = vpop.xlane.xlu1 %2198 }
 0xd8f   :  { %v4409_v18 = vpop.eup %4408 }
 0xd90   :  { %v2232_v39 = vmul.f32 %v4409_v18, %v5614_v27 }
 0xd91   :  { %v2203_v2 = vpop.xlane.xlu1 %2202 }
 0xd92   :  { %4103 = vmatprep.mubr.f32.mxu1 %v2232_v39 }
 0xd93   :  { %v4411_v6 = vpop.eup %4410  ;;  %4104 = vmatmul.mubr.f32.gmra.mxu1 %v2233_v10 }
 0xd94   :  { %v2234_v44 = vmul.f32 %v4411_v6, %v5618_v59 }
 0xd95   :  { %v2207_v21 = vpop.xlane.xlu1 %2206 }
 0xd96   :  { %4106 = vmatprep.mubr.f32.mxu1 %v2234_v44 }
 0xd97   :  { %v4413_v23 = vpop.eup %4412 }
 0xd98   :  { %v2236_v63 = vmul.f32 %v4413_v23, %v5622_v47 }
 0xd99   :  { %v2211_v50 = vpop.xlane.xlu1 %2210 }
 0xdac   :  { %v2193_v9 = vpop.xlane.xlu0 %2192 }
 0xdad   :  { %4414 = vrcp.f32 %v2193_v9 }
 0xdae   :  { %4416 = vrcp.f32 %v2199_v31 }
 0xdb0   :  { %v2197_v22 = vpop.xlane.xlu0 %2196 }
 0xdb1   :  { %4418 = vrcp.f32 %v2197_v22 }
 0xdb2   :  { %4420 = vrcp.f32 %v2203_v2 }
 0xdb4   :  { %v2201_v27 = vpop.xlane.xlu0 %2200 }
 0xdb5   :  { %4422 = vrcp.f32 %v2201_v27  ;;  %v3562_v27 = vld [vmem:[%s5949_s4 + $0x328] ss:$0 sm:$0xff] }
 0xdb6   :  { %4424 = vrcp.f32 %v2207_v21 }
 0xdb8   :  { %v2205_v19 = vpop.xlane.xlu0 %2204 }
 0xdb9   :  { %4426 = vrcp.f32 %v2205_v19 }
 0xdba   :  { %v4415_v59 = vpop.eup %4414  ;;  %4428 = vrcp.f32 %v2211_v50 }
 0xdbb   :  { %v2235_v34 = vmul.f32 %v4415_v59, %v5642_v14  ;;  %v4417_v32 = vpop.eup %4416 }
 0xdbc   :  { %v2209_v61 = vpop.xlane.xlu0 %2208  ;;  %v2238_v58 = vmul.f32 %v4417_v32, %v5625_v29 }
 0xdbd   :  { %4430 = vrcp.f32 %v2209_v61  ;;  %4107 = vmatmul.mubr.f32.gmra.mxu1 %v2235_v34 }
 0xdbe   :  { %v4419_v4 = vpop.eup %4418  ;;  %4109 = vmatprep.mubr.f32.mxu1 %v2236_v63 }
 0xdbf   :  { %v2237_v38 = vmul.f32 %v4419_v4, %v5646_v52  ;;  %v4421_v49 = vpop.eup %4420 }
 0xdc0   :  { %v2213_v55 = vpop.xlane.xlu0 %2212  ;;  %v2240_v13 = vmul.f32 %v4421_v49, %v5628_v51 }
 0xdc1   :  { %4432 = vrcp.f32 %v2213_v55  ;;  %4110 = vmatmul.mubr.f32.gmra.mxu1 %v2237_v38 }
 0xdc2   :  { %v4423_v40 = vpop.eup %4422  ;;  %4112 = vmatprep.mubr.f32.mxu1 %v2238_v58 }
 0xdc3   :  { %v2239_v24 = vmul.f32 %v4423_v40, %v5649_v30  ;;  %v4425_v47 = vpop.eup %4424 }
 0xdc4   :  { %v2242_v14 = vmul.f32 %v4425_v47, %v5631_v0  ;;  %v2469_v0 = vld [vmem:[%s5949_s4 + $0x210] sm:$0xff] }
 0xdc5   :  { %4113 = vmatmul.mubr.f32.gmra.mxu1 %v2239_v24  ;;  %4126 = vmatprep.subr.mxu1 %v2469_v0 }
 0xdc6   :  { %v4427_v35 = vpop.eup %4426  ;;  %4115 = vmatprep.mubr.f32.mxu1 %v2240_v13  ;;  %4127 = vmatpush3.msra.mxu1 %v2469_v0 }
 0xdc7   :  { %v2241_v45 = vmul.f32 %v4427_v35, %v5652_v42  ;;  %v4429_v48 = vpop.eup %4428 }
 0xdc8   :  { %v2244_v3 = vmul.f32 %v4429_v48, %v5634_v56  ;;  %v2468_v56 = vld [vmem:[%s5949_s4 + $0x208] sm:$0xff]  ;;  %v2665_v48 = vld [vmem:[%s5949_s4 + $0x230] sm:$0xff] }
 0xdc9   :  { %4116 = vmatmul.mubr.f32.gmra.mxu1 %v2241_v45  ;;  %4128 = vmatprep.subr.mxu1 %v2468_v56 }
 0xdca   :  { %v4431_v29 = vpop.eup %4430  ;;  %4118 = vmatprep.mubr.f32.mxu1 %v2242_v14  ;;  %4129 = vmatpush3.msra.mxu1 %v2468_v56  ;;  %v2666_v14 = vld [vmem:[%s5949_s4 + $0x238] sm:$0xff] }
 0xdcb   :  { %v2243_v1 = vmul.f32 %v4431_v29, %v5655_v25  ;;  %4130 = vmatprep.subr.mxu1 %v2467_v8  ;;  %v2664_v29 = vld [vmem:[%s5949_s4 + $0x228] sm:$0xff] }
 0xdcc   :  { %4131 = vmatpush3.msra.mxu1 %v2467_v8 }
 0xdcd   :  { %4119 = vmatmul.mubr.f32.gmra.mxu1 %v2243_v1  ;;  %4138 = vmatprep.subr.mxu1 %v2666_v14  ;;  %v2663_v1 = vld [vmem:[%s5949_s4 + $0x220] sm:$0xff] }
 0xdce   :  { %v4433_v52 = vpop.eup %4432  ;;  %4121 = vmatprep.mubr.f32.mxu1 %v2244_v3 }
 0xdcf   :  { %v2245_v51 = vmul.f32 %v4433_v52, %v5658_v5 }
 0xdd1   :  { %4122 = vmatmul.mubr.f32.gmra.mxu1 %v2245_v51 }
 0xe4b   :  { %v4102_v26 = vpop.f32.mrf.mxu1 }
 0xe4d   :  { %v2376_v30 = vpop.f32.mrf.mxu1 }
 0xe53   :  { %v4105_v12 = vpop.f32.mrf.mxu1 }
 0xe55   :  { %v2386_v42 = vpop.f32.mrf.mxu1 }
 0xe7d   :  { %v4108_v36 = vpop.f32.mrf.mxu1 }
 0xe7e   :  { %v2456_v7 = vadd.f32 %v4108_v36, %v4102_v26 }
 0xe7f   :  { %v2396_v37 = vpop.f32.mrf.mxu1 }
 0xe80   :  { %v2455_v53 = vadd.f32 %v2396_v37, %v2376_v30 }
 0xe81   :  { %v4111_v25 = vpop.f32.mrf.mxu1 }
 0xe82   :  { %v2458_v10 = vadd.f32 %v4111_v25, %v4105_v12 }
 0xe83   :  { %v2406_v5 = vpop.f32.mrf.mxu1 }
 0xe84   :  { %v2457_v18 = vadd.f32 %v2406_v5, %v2386_v42 }
 0xe85   :  { %v4114_v54 = vpop.f32.mrf.mxu1 }
 0xe86   :  { %v2460_v28 = vadd.f32 %v4114_v54, %v2456_v7 }
 0xe87   :  { %v2416_v57 = vpop.f32.mrf.mxu1 }
 0xe88   :  { %v2459_v60 = vadd.f32 %v2455_v53, %v2416_v57 }
 0xe89   :  { %v4117_v16 = vpop.f32.mrf.mxu1 }
 0xe8a   :  { %v2462_v31 = vadd.f32 %v4117_v16, %v2458_v10 }
 0xe8b   :  { %v2426_v11 = vpop.f32.mrf.mxu1 }
 0xe8c   :  { %v2461_v20 = vadd.f32 %v2457_v18, %v2426_v11 }
 0xe8d   :  { %v4120_v33 = vpop.f32.mrf.mxu1 }
 0xe8e   :  { %v2464_v6 = vadd.f32 %v4120_v33, %v2460_v28 }
 0xe8f   :  { %v2436_v17 = vpop.f32.mrf.mxu1 }
 0xe90   :  { %v2463_v39 = vadd.f32 %v2459_v60, %v2436_v17 }
 0xe91   :  { %v4123_v44 = vpop.f32.mrf.mxu1 }
 0xe92   :  { %4132 = vmatprep.mubr.msk.f32.mxu1 %vm24_vm0, %v2463_v39  ;;  %v2466_v22 = vadd.f32 %v4123_v44, %v2462_v31 }
 0xe93   :  { %v2446_v9 = vpop.f32.mrf.mxu1  ;;  %4133 = vmatmul.mubr.msk.f32.vlgmr.msra.gmra.mxu1 %vm24_vm0, %v2464_v6 }
 0xe94   :  { %v2465_v2 = vadd.f32 %v2461_v20, %v2446_v9  ;;  %4139 = vmatpush3.msra.mxu1 %v2666_v14  ;;  %v2810_v14 = vld [vmem:[%s5949_s4 + $0x268] sm:$0xff] }
 0xe95   :  { %4140 = vmatprep.subr.mxu1 %v2665_v48 }
 0xe96   :  { %4135 = vmatprep.mubr.msk.f32.mxu1 %vm24_vm0, %v2465_v2  ;;  %4141 = vmatpush3.msra.mxu1 %v2665_v48  ;;  %v2809_v48 = vld [vmem:[%s5949_s4 + $0x260] sm:$0xff] }
 0xe97   :  { %4136 = vmatmul.mubr.msk.f32.gmra.mxu1 %vm24_vm0, %v2466_v22  ;;  %4142 = vmatprep.subr.mxu1 %v2664_v29 }
 0xe98   :  { %4143 = vmatpush3.msra.mxu1 %v2664_v29  ;;  %v2808_v29 = vld [vmem:[%s5949_s4 + $0x258] sm:$0xff] }
 0xe99   :  { %4144 = vmatprep.subr.mxu1 %v2663_v1 }
 0xe9a   :  { %4145 = vmatpush3.msra.mxu1 %v2663_v1  ;;  %v2807_v1 = vld [vmem:[%s5949_s4 + $0x250] sm:$0xff] }
 0xf53   :  { %v4134_v21 = vpop.f32.mrf.mxu1 }
 0xf54   :  { %v2569_v19 = vadd.f32 %v4134_v21, %v5257_v62 }
 0xf55   :  { %v2549_v23 = vpop.f32.mrf.mxu1 }
 0xf56   :  { %v5697_v50 = vadd.f32 %v3562_v27, %v2569_v19  ;;  %v2568_v59 = vadd.f32 %v2549_v23, %v5260_v15 }
 0xf57   :  { %v4137_v34 = vpop.f32.mrf.mxu1 }
 0xf58   :  { %v5700_v61 = vadd.f32 %v3562_v27, %v2568_v59  ;;  %v2571_v63 = vadd.f32 %v4137_v34, %v5273_v41  ;;  %v2586_v32 = vsel %vm24_vm0, %v5697_v50, 0.0  ;;  %v2596_v4 = vmul.f32 %v5697_v50, %v5697_v50  ;;  %v3564_v34 = vld [vmem:[%s5949_s4 + $0x338] ss:$0 sm:$0xff] }
 0xf59   :  { %2587 = vadd.xlane.f32.xlu1 %v2586_v32  ;;  %v2559_v38 = vpop.f32.mrf.mxu1 }
 0xf5a   :  { %v2570_v62 = vadd.f32 %v2559_v38, %v5276_v46  ;;  %v2583_v55 = vsel %vm24_vm0, %v5700_v61, 0.0  ;;  %v2595_v15 = vmul.f32 %v5700_v61, %v5700_v61  ;;  %v5712_v58 = vadd.f32 %v3562_v27, %v2571_v63 }
 0xf5b   :  { %2584 = vadd.xlane.f32.xlu0 %v2583_v55  ;;  %v2602_v41 = vsel %vm24_vm0, %v2596_v4, 0.0 }
 0xf5c   :  { %v5715_v49 = vadd.f32 %v3562_v27, %v2570_v62  ;;  %v2599_v40 = vsel %vm24_vm0, %v2595_v15, 0.0  ;;  %v2592_v46 = vsel %vm24_vm0, %v5712_v58, 0.0  ;;  %v2598_v24 = vmul.f32 %v5712_v58, %v5712_v58  ;;  %v3563_v27 = vld [vmem:[%s5949_s4 + $0x330] ss:$0 sm:$0xff] }
 0xf5d   :  { %2603 = vadd.xlane.f32.xlu1 %v2602_v41 }
 0xf5e   :  { %v2589_v13 = vsel %vm24_vm0, %v5715_v49, 0.0  ;;  %v2597_v47 = vmul.f32 %v5715_v49, %v5715_v49  ;;  %v2608_v35 = vsel %vm24_vm0, %v2598_v24, 0.0 }
 0xf5f   :  { %2600 = vadd.xlane.f32.xlu0 %v2599_v40 }
 0xf60   :  { %v2605_v45 = vsel %vm24_vm0, %v2597_v47, 0.0 }
 0xf61   :  { %2593 = vadd.xlane.f32.xlu1 %v2592_v46 }
 0xf63   :  { %2590 = vadd.xlane.f32.xlu0 %v2589_v13 }
 0xf65   :  { %2609 = vadd.xlane.f32.xlu1 %v2608_v35  ;;  %v2812_v35 = vld [vmem:[%s5949_s4 + $0x278] sm:$0xff] }
 0xf66   :  { %4152 = vmatprep.subr.mxu1 %v2812_v35 }
 0xf67   :  { %2606 = vadd.xlane.f32.xlu0 %v2605_v45  ;;  %v2811_v45 = vld [vmem:[%s5949_s4 + $0x270] sm:$0xff] }
 0xfe2   :  { %v2588_v3 = vpop.xlane.xlu1 %2587 }
 0xfe3   :  { %v2612_v52 = vmul.f32 0.03125, %v2588_v3  ;;  %v2806_v3 = vld [vmem:[%s5949_s4 + $0x248] sm:$0xff] }
 0xfe4   :  { %v2585_v51 = vpop.xlane.xlu0 %2584 }
 0xfe5   :  { %v2611_v43 = vmul.f32 0.03125, %v2585_v51  ;;  %v2620_v56 = vmul.f32 %v2612_v52, %v2612_v52  ;;  %v2632_v9 = vsub.f32 %v5697_v50, %v2612_v52  ;;  %v2805_v52 = vld [vmem:[%s5949_s4 + $0x240] sm:$0xff] }
 0xfe6   :  { %v2604_v0 = vpop.xlane.xlu1 %2603  ;;  %v3565_v51 = vld [vmem:[%s5949_s4 + $0x340] ss:$0 sm:$0xff] }
 0xfe7   :  { %v2616_v8 = vmul.f32 0.03125, %v2604_v0  ;;  %v2619_v30 = vmul.f32 %v2611_v43, %v2611_v43  ;;  %v2631_v22 = vsub.f32 %v5700_v61, %v2611_v43 }
 0xfe8   :  { %v2601_v26 = vpop.xlane.xlu0 %2600 }
 0xfe9   :  { %v2624_v12 = vsub.f32 %v2616_v8, %v2620_v56  ;;  %v2615_v42 = vmul.f32 0.03125, %v2601_v26 }
 0xfea   :  { %v2594_v36 = vpop.xlane.xlu1 %2593 }
 0xfeb   :  { %v2628_v37 = vmax.f32 %v2624_v12, 0.0  ;;  %v2623_v25 = vsub.f32 %v2615_v42, %v2619_v30  ;;  %v2614_v5 = vmul.f32 0.03125, %v2594_v36 }
 0xfec   :  { %v2591_v54 = vpop.xlane.xlu0 %2590 }
 0xfed   :  { %v2636_v57 = vadd.f32 1e-12, %v2628_v37  ;;  %v2627_v16 = vmax.f32 %v2623_v25, 0.0  ;;  %v2613_v11 = vmul.f32 0.03125, %v2591_v54  ;;  %v2622_v33 = vmul.f32 %v2614_v5, %v2614_v5 }
 0xfee   :  { %v2610_v53 = vpop.xlane.xlu1 %2609  ;;  %v2634_v32 = vsub.f32 %v5712_v58, %v2614_v5 }
 0xfef   :  { %4434 = vrsqrt.f32 %v2636_v57  ;;  %v2635_v7 = vadd.f32 1e-12, %v2627_v16  ;;  %v2618_v60 = vmul.f32 0.03125, %v2610_v53  ;;  %v2621_v17 = vmul.f32 %v2613_v11, %v2613_v11 }
 0xff0   :  { %v2607_v28 = vpop.xlane.xlu0 %2606  ;;  %v2633_v55 = vsub.f32 %v5715_v49, %v2613_v11 }
 0xff1   :  { %4436 = vrsqrt.f32 %v2635_v7  ;;  %v2626_v18 = vsub.f32 %v2618_v60, %v2622_v33  ;;  %v2617_v39 = vmul.f32 0.03125, %v2607_v28 }
 0xff3   :  { %v2630_v10 = vmax.f32 %v2626_v18, 0.0  ;;  %v2625_v6 = vsub.f32 %v2617_v39, %v2621_v17 }
 0xff5   :  { %v2638_v44 = vadd.f32 1e-12, %v2630_v10  ;;  %v2629_v20 = vmax.f32 %v2625_v6, 0.0 }
 0xff7   :  { %4438 = vrsqrt.f32 %v2638_v44  ;;  %v2637_v31 = vadd.f32 1e-12, %v2629_v20 }
 0xff9   :  { %4440 = vrsqrt.f32 %v2637_v31 }
 0xffc   :  { %v4435_v2 = vpop.eup %4434 }
 0xffd   :  { %v2644_v21 = vmul.f32 %v4435_v2, %v2632_v9 }
 0xffe   :  { %v4437_v19 = vpop.eup %4436 }
 0xfff   :  { %v2643_v23 = vmul.f32 %v4437_v19, %v2631_v22  ;;  %v2652_v59 = vmul.f32 %v3563_v27, %v2644_v21 }
0x1001   :  { %v2651_v63 = vmul.f32 %v3563_v27, %v2643_v23  ;;  %v2660_v62 = vadd.f32 %v3564_v34, %v2652_v59 }
0x1003   :  { %v2659_v4 = vadd.f32 %v3564_v34, %v2651_v63 }
0x1004   :  { %v4439_v38 = vpop.eup %4438 }
0x1005   :  { %4146 = vmatprep.mubr.msk.f32.mxu1 %vm24_vm0, %v2659_v4  ;;  %v2646_v15 = vmul.f32 %v4439_v38, %v2634_v32 }
0x1006   :  { %v4441_v41 = vpop.eup %4440  ;;  %4147 = vmatmul.mubr.msk.f32.vlgmr.msra.gmra.mxu1 %vm24_vm0, %v2660_v62 }
0x1007   :  { %v2645_v40 = vmul.f32 %v4441_v41, %v2633_v55  ;;  %v2654_v46 = vmul.f32 %v3563_v27, %v2646_v15  ;;  %4153 = vmatpush3.msra.mxu1 %v2812_v35  ;;  %v3574_v41 = vld [vmem:[%s5949_s4 + $0x348] ss:$0 sm:$0xff] }
0x1008   :  { %4154 = vmatprep.subr.mxu1 %v2811_v45 }
0x1009   :  { %v2653_v24 = vmul.f32 %v3563_v27, %v2645_v40  ;;  %v2662_v47 = vadd.f32 %v3564_v34, %v2654_v46  ;;  %4155 = vmatpush3.msra.mxu1 %v2811_v45 }
0x100a   :  { %4156 = vmatprep.subr.mxu1 %v2810_v14 }
0x100b   :  { %v2661_v13 = vadd.f32 %v3564_v34, %v2653_v24  ;;  %4157 = vmatpush3.msra.mxu1 %v2810_v14 }
0x100c   :  { %4158 = vmatprep.subr.mxu1 %v2809_v48 }
0x100d   :  { %4149 = vmatprep.mubr.msk.f32.mxu1 %vm24_vm0, %v2661_v13  ;;  %4159 = vmatpush3.msra.mxu1 %v2809_v48 }
0x100e   :  { %4150 = vmatmul.mubr.msk.f32.gmra.mxu1 %vm24_vm0, %v2662_v47  ;;  %4160 = vmatprep.subr.mxu1 %v2808_v29 }
0x100f   :  { %4161 = vmatpush3.msra.mxu1 %v2808_v29 }
0x1010   :  { %4162 = vmatprep.subr.mxu1 %v2807_v1 }
0x1011   :  { %4163 = vmatpush3.msra.mxu1 %v2807_v1 }
0x1012   :  { %4164 = vmatprep.subr.mxu1 %v2806_v3 }
0x1013   :  { %4165 = vmatpush3.msra.mxu1 %v2806_v3 }
0x1014   :  { %4166 = vmatprep.subr.mxu1 %v2805_v52 }
0x1015   :  { %4167 = vmatpush3.msra.mxu1 %v2805_v52 }
0x10c6   :  { %v4148_v43 = vpop.f32.mrf.mxu1 }
0x10c7   :  { %v2756_v0 = vadd.f32 %v4148_v43, %v3565_v51 }
0x10c8   :  { %v2750_v56 = vpop.f32.mrf.mxu1 }
0x10c9   :  { %v2774_v8 = vmul.f32 0.044715, %v2756_v0  ;;  %v2751_v26 = vadd.f32 %v3565_v51, %v2750_v56  ;;  %v2770_v27 = vmul.f32 0.5, %v2756_v0 }
0x10cb   :  { %v2778_v30 = vmul.f32 %v2774_v8, %v2756_v0  ;;  %v2773_v12 = vmul.f32 0.044715, %v2751_v26  ;;  %v2769_v22 = vmul.f32 0.5, %v2751_v26 }
0x10cd   :  { %v2782_v42 = vmul.f32 %v2778_v30, %v2756_v0  ;;  %v2777_v36 = vmul.f32 %v2773_v12, %v2751_v26  ;;  %v3008_v30 = vld [vmem:[%s5949_s4 + $0xd8] sm:$0xff]  ;;  %v3007_v12 = vld [vmem:[%s5949_s4 + $0xd0] sm:$0xff] }
0x10ce   :  { %v4151_v37 = vpop.f32.mrf.mxu1  ;;  %4174 = vmatprep.subr.mxu0 %v3008_v30 }
0x10cf   :  { %v2786_v25 = vadd.f32 %v2782_v42, %v2756_v0  ;;  %v2781_v5 = vmul.f32 %v2777_v36, %v2751_v26  ;;  %v2766_v54 = vadd.f32 %v4151_v37, %v3565_v51  ;;  %4175 = vmatpush3.msra.mxu0 %v3008_v30  ;;  %v3006_v42 = vld [vmem:[%s5949_s4 + $0xc8] sm:$0xff]  ;;  %v3005_v36 = vld [vmem:[%s5949_s4 + $0xc0] sm:$0xff] }
0x10d0   :  { %v2760_v57 = vpop.f32.mrf.mxu1  ;;  %4176 = vmatprep.subr.mxu0 %v3007_v12 }
0x10d1   :  { %v2790_v16 = vmul.f32 0.7978846, %v2786_v25  ;;  %v2785_v11 = vadd.f32 %v2781_v5, %v2751_v26  ;;  %v2776_v53 = vmul.f32 0.044715, %v2766_v54  ;;  %v2761_v7 = vadd.f32 %v3565_v51, %v2760_v57  ;;  %4177 = vmatpush3.msra.mxu0 %v3007_v12 }
0x10d2   :  { %v2772_v38 = vmul.f32 0.5, %v2766_v54  ;;  %4178 = vmatprep.subr.mxu0 %v3006_v42 }
0x10d3   :  { %4442 = vtanh.f32 %v2790_v16  ;;  %v2780_v33 = vmul.f32 %v2776_v53, %v2766_v54  ;;  %v2775_v60 = vmul.f32 0.044715, %v2761_v7  ;;  %v2789_v28 = vmul.f32 0.7978846, %v2785_v11  ;;  %4179 = vmatpush3.msra.mxu0 %v3006_v42 }
0x10d4   :  { %v2771_v32 = vmul.f32 0.5, %v2761_v7  ;;  %4180 = vmatprep.subr.mxu0 %v3005_v36 }
0x10d5   :  { %v2784_v17 = vmul.f32 %v2780_v33, %v2766_v54  ;;  %v2779_v18 = vmul.f32 %v2775_v60, %v2761_v7  ;;  %4444 = vtanh.f32 %v2789_v28  ;;  %4181 = vmatpush3.msra.mxu0 %v3005_v36 }
0x10d7   :  { %v2788_v39 = vadd.f32 %v2784_v17, %v2766_v54  ;;  %v2783_v10 = vmul.f32 %v2779_v18, %v2761_v7 }
0x10d9   :  { %v2787_v6 = vadd.f32 %v2783_v10, %v2761_v7  ;;  %v2792_v44 = vmul.f32 0.7978846, %v2788_v39 }
0x10db   :  { %v2791_v20 = vmul.f32 0.7978846, %v2787_v6  ;;  %4446 = vtanh.f32 %v2792_v44 }
0x10dd   :  { %4448 = vtanh.f32 %v2791_v20 }
0x10e0   :  { %v4443_v31 = vpop.eup %4442 }
0x10e1   :  { %v2798_v2 = vadd.f32 1.0, %v4443_v31 }
0x10e2   :  { %v4445_v9 = vpop.eup %4444 }
0x10e3   :  { %v2797_v21 = vadd.f32 1.0, %v4445_v9  ;;  %v2802_v23 = vmul.f32 %v2798_v2, %v2770_v27 }
0x10e5   :  { %v2801_v19 = vmul.f32 %v2797_v21, %v2769_v22 }
0x10e7   :  { %4168 = vmatprep.mubr.msk.f32.mxu1 %vm106_vm1, %v2801_v19 }
0x10e8   :  { %v4447_v59 = vpop.eup %4446  ;;  %4169 = vmatmul.mubr.msk.f32.vlgmr.msra.gmra.mxu1 %vm106_vm1, %v2802_v23 }
0x10e9   :  { %v2800_v63 = vadd.f32 1.0, %v4447_v59 }
0x10ea   :  { %v4449_v34 = vpop.eup %4448 }
0x10eb   :  { %v2799_v4 = vadd.f32 1.0, %v4449_v34  ;;  %v2804_v55 = vmul.f32 %v2800_v63, %v2772_v38 }
0x10ed   :  { %v2803_v62 = vmul.f32 %v2799_v4, %v2771_v32 }
0x10ef   :  { %4171 = vmatprep.mubr.msk.f32.mxu1 %vm106_vm1, %v2803_v62 }
0x10f0   :  { %4172 = vmatmul.mubr.msk.f32.gmra.mxu1 %vm106_vm1, %v2804_v55 }
0x11a8   :  { %v4170_v15 = vpop.f32.mrf.mxu1 }
0x11a9   :  { %v2911_v40 = vadd.f32 %v4170_v15, %v5697_v50 }
0x11aa   :  { %v2891_v46 = vpop.f32.mrf.mxu1 }
0x11ab   :  { %v5789_v24 = vadd.f32 %v3574_v41, %v2911_v40  ;;  %v2910_v13 = vadd.f32 %v2891_v46, %v5700_v61 }
0x11ad   :  { %v5792_v47 = vadd.f32 %v3574_v41, %v2910_v13  ;;  %v2928_v35 = vsel %vm24_vm0, %v5789_v24, 0.0  ;;  %v2938_v45 = vmul.f32 %v5789_v24, %v5789_v24 }
0x11ae   :  { %2929 = vadd.xlane.f32.xlu1 %v2928_v35  ;;  %v3576_v35 = vld [vmem:[%s5949_s4 + $0x2a0] ss:$0 sm:$0xff] }
0x11af   :  { %v2925_v14 = vsel %vm24_vm0, %v5792_v47, 0.0  ;;  %v2937_v50 = vmul.f32 %v5792_v47, %v5792_v47  ;;  %v2944_v61 = vsel %vm24_vm0, %v2938_v45, 0.0 }
0x11b0   :  { %2926 = vadd.xlane.f32.xlu0 %v2925_v14  ;;  %v4173_v48 = vpop.f32.mrf.mxu1 }
0x11b1   :  { %v2913_v29 = vadd.f32 %v4173_v48, %v5712_v58  ;;  %v2941_v51 = vsel %vm24_vm0, %v2937_v50, 0.0 }
0x11b2   :  { %2945 = vadd.xlane.f32.xlu1 %v2944_v61  ;;  %v2901_v1 = vpop.f32.mrf.mxu1 }
0x11b3   :  { %v5804_v3 = vadd.f32 %v3574_v41, %v2913_v29  ;;  %v2912_v52 = vadd.f32 %v2901_v1, %v5715_v49 }
0x11b4   :  { %2942 = vadd.xlane.f32.xlu0 %v2941_v51 }
0x11b5   :  { %v5808_v43 = vadd.f32 %v3574_v41, %v2912_v52  ;;  %v2934_v0 = vsel %vm24_vm0, %v5804_v3, 0.0  ;;  %v2940_v56 = vmul.f32 %v5804_v3, %v5804_v3  ;;  %v3575_v41 = vld [vmem:[%s5949_s4 + $0x298] ss:$0 sm:$0xff] }
0x11b6   :  { %2935 = vadd.xlane.f32.xlu1 %v2934_v0 }
0x11b7   :  { %v2931_v58 = vsel %vm24_vm0, %v5808_v43, 0.0  ;;  %v2939_v8 = vmul.f32 %v5808_v43, %v5808_v43  ;;  %v2950_v49 = vsel %vm24_vm0, %v2940_v56, 0.0 }
0x11b8   :  { %2932 = vadd.xlane.f32.xlu0 %v2931_v58  ;;  %v3116_v58 = vld [vmem:[%s5949_s4 + $0xe8] sm:$0xff] }
0x11b9   :  { %v2947_v26 = vsel %vm24_vm0, %v2939_v8, 0.0  ;;  %v3115_v8 = vld [vmem:[%s5949_s4 + $0xe0] sm:$0xff] }
0x11ba   :  { %2951 = vadd.xlane.f32.xlu1 %v2950_v49  ;;  %v3577_v49 = vld [vmem:[%s5949_s4 + $0x2a8] ss:$0 sm:$0xff] }
0x11bc   :  { %2948 = vadd.xlane.f32.xlu0 %v2947_v26 }
0x1237   :  { %v2930_v37 = vpop.xlane.xlu1 %2929 }
0x1238   :  { %v2954_v25 = vmul.f32 0.03125, %v2930_v37 }
0x1239   :  { %v2927_v5 = vpop.xlane.xlu0 %2926 }
0x123a   :  { %v2953_v54 = vmul.f32 0.03125, %v2927_v5  ;;  %v2962_v16 = vmul.f32 %v2954_v25, %v2954_v25  ;;  %v2974_v38 = vsub.f32 %v5789_v24, %v2954_v25 }
0x123b   :  { %v2946_v57 = vpop.xlane.xlu1 %2945 }
0x123c   :  { %v2958_v11 = vmul.f32 0.03125, %v2946_v57  ;;  %v2961_v7 = vmul.f32 %v2953_v54, %v2953_v54  ;;  %v2973_v55 = vsub.f32 %v5792_v47, %v2953_v54 }
0x123d   :  { %v2943_v53 = vpop.xlane.xlu0 %2942 }
0x123e   :  { %v2966_v33 = vsub.f32 %v2958_v11, %v2962_v16  ;;  %v2957_v60 = vmul.f32 0.03125, %v2943_v53  ;;  %v3582_v53 = vld [vmem:[%s5949_s4 + $0x2b0] ss:$0 sm:$0xff] }
0x123f   :  { %v2936_v28 = vpop.xlane.xlu1 %2935 }
0x1240   :  { %v2970_v17 = vmax.f32 %v2966_v33, 0.0  ;;  %v2965_v18 = vsub.f32 %v2957_v60, %v2961_v7  ;;  %v2956_v39 = vmul.f32 0.03125, %v2936_v28 }
0x1241   :  { %v2933_v10 = vpop.xlane.xlu0 %2932 }
0x1242   :  { %v2978_v6 = vadd.f32 1e-12, %v2970_v17  ;;  %v2969_v44 = vmax.f32 %v2965_v18, 0.0  ;;  %v2955_v20 = vmul.f32 0.03125, %v2933_v10  ;;  %v2964_v2 = vmul.f32 %v2956_v39, %v2956_v39 }
0x1243   :  { %v2952_v31 = vpop.xlane.xlu1 %2951  ;;  %v2976_v14 = vsub.f32 %v5804_v3, %v2956_v39  ;;  %v3118_v3 = vld [vmem:[%s5949_s4 + $0xf8] sm:$0xff] }
0x1244   :  { %4450 = vrsqrt.f32 %v2978_v6  ;;  %v2977_v9 = vadd.f32 1e-12, %v2969_v44  ;;  %v2960_v22 = vmul.f32 0.03125, %v2952_v31  ;;  %v2963_v27 = vmul.f32 %v2955_v20, %v2955_v20  ;;  %4188 = vmatprep.subr.mxu1 %v3118_v3 }
0x1245   :  { %v2949_v21 = vpop.xlane.xlu0 %2948  ;;  %v2975_v47 = vsub.f32 %v5808_v43, %v2955_v20  ;;  %v3117_v43 = vld [vmem:[%s5949_s4 + $0xf0] sm:$0xff]  ;;  %4189 = vmatpush3.msra.mxu1 %v3118_v3 }
0x1246   :  { %4452 = vrsqrt.f32 %v2977_v9  ;;  %v2968_v19 = vsub.f32 %v2960_v22, %v2964_v2  ;;  %v2959_v23 = vmul.f32 0.03125, %v2949_v21  ;;  %4190 = vmatprep.subr.mxu1 %v3117_v43 }
0x1247   :  { %4191 = vmatpush3.msra.mxu1 %v3117_v43 }
0x1248   :  { %v2972_v59 = vmax.f32 %v2968_v19, 0.0  ;;  %v2967_v34 = vsub.f32 %v2959_v23, %v2963_v27  ;;  %4192 = vmatprep.subr.mxu1 %v3116_v58 }
0x1249   :  { %4193 = vmatpush3.msra.mxu1 %v3116_v58 }
0x124a   :  { %v2980_v63 = vadd.f32 1e-12, %v2972_v59  ;;  %v2971_v32 = vmax.f32 %v2967_v34, 0.0  ;;  %4194 = vmatprep.subr.mxu1 %v3115_v8  ;;  %v3346_v34 = vld [vmem:[%s5949_s4 + $0x138] sm:$0xff] }
0x124b   :  { %4195 = vmatpush3.msra.mxu1 %v3115_v8  ;;  %4202 = vmatprep.subr.mxu0 %v3346_v34 }
0x124c   :  { %4454 = vrsqrt.f32 %v2980_v63  ;;  %v2979_v4 = vadd.f32 1e-12, %v2971_v32  ;;  %v3345_v63 = vld [vmem:[%s5949_s4 + $0x130] sm:$0xff]  ;;  %v3344_v32 = vld [vmem:[%s5949_s4 + $0x128] sm:$0xff] }
0x124e   :  { %4456 = vrsqrt.f32 %v2979_v4  ;;  %v3343_v4 = vld [vmem:[%s5949_s4 + $0x120] sm:$0xff] }
0x1251   :  { %v4451_v62 = vpop.eup %4450 }
0x1252   :  { %v2986_v15 = vmul.f32 %v4451_v62, %v2974_v38  ;;  %v3342_v38 = vld [vmem:[%s5949_s4 + $0x118] sm:$0xff]  ;;  %v3341_v62 = vld [vmem:[%s5949_s4 + $0x110] sm:$0xff] }
0x1253   :  { %v4453_v40 = vpop.eup %4452 }
0x1254   :  { %v2985_v46 = vmul.f32 %v4453_v40, %v2973_v55  ;;  %v2994_v13 = vmul.f32 %v3575_v41, %v2986_v15  ;;  %v3340_v55 = vld [vmem:[%s5949_s4 + $0x108] sm:$0xff]  ;;  %v3339_v15 = vld [vmem:[%s5949_s4 + $0x100] sm:$0xff] }
0x1256   :  { %v2993_v45 = vmul.f32 %v3575_v41, %v2985_v46  ;;  %v3002_v48 = vadd.f32 %v3576_v35, %v2994_v13 }
0x1258   :  { %v3001_v50 = vadd.f32 %v3576_v35, %v2993_v45 }
0x1259   :  { %v4455_v24 = vpop.eup %4454 }
0x125a   :  { %4182 = vmatprep.mubr.msk.f32.mxu0 %vm24_vm0, %v3001_v50  ;;  %v2988_v29 = vmul.f32 %v4455_v24, %v2976_v14 }
0x125b   :  { %v4457_v61 = vpop.eup %4456  ;;  %4183 = vmatmul.mubr.msk.f32.vlgmr.msra.gmra.mxu0 %vm24_vm0, %v3002_v48 }
0x125c   :  { %v2987_v1 = vmul.f32 %v4457_v61, %v2975_v47  ;;  %v2996_v52 = vmul.f32 %v3575_v41, %v2988_v29  ;;  %4203 = vmatpush3.msra.mxu0 %v3346_v34 }
0x125d   :  { %4204 = vmatprep.subr.mxu0 %v3345_v63 }
0x125e   :  { %v2995_v51 = vmul.f32 %v3575_v41, %v2987_v1  ;;  %v3004_v56 = vadd.f32 %v3576_v35, %v2996_v52  ;;  %4205 = vmatpush3.msra.mxu0 %v3345_v63 }
0x125f   :  { %4206 = vmatprep.subr.mxu0 %v3344_v32 }
0x1260   :  { %v3003_v0 = vadd.f32 %v3576_v35, %v2995_v51  ;;  %4207 = vmatpush3.msra.mxu0 %v3344_v32 }
0x1261   :  { %4208 = vmatprep.subr.mxu0 %v3343_v4 }
0x1262   :  { %4185 = vmatprep.mubr.msk.f32.mxu0 %vm24_vm0, %v3003_v0  ;;  %4209 = vmatpush3.msra.mxu0 %v3343_v4 }
0x1263   :  { %4186 = vmatmul.mubr.msk.f32.gmra.mxu0 %vm24_vm0, %v3004_v56  ;;  %4210 = vmatprep.subr.mxu0 %v3342_v38 }
0x1264   :  { %4211 = vmatpush3.msra.mxu0 %v3342_v38 }
0x1265   :  { %4212 = vmatprep.subr.mxu0 %v3341_v62 }
0x1266   :  { %4213 = vmatpush3.msra.mxu0 %v3341_v62 }
0x1267   :  { %4214 = vmatprep.subr.mxu0 %v3340_v55 }
0x1268   :  { %4215 = vmatpush3.msra.mxu0 %v3340_v55 }
0x1269   :  { %4216 = vmatprep.subr.mxu0 %v3339_v15 }
0x126a   :  { %4217 = vmatpush3.msra.mxu0 %v3339_v15 }
0x131b   :  { %v4184_v26 = vpop.f32.mrf.mxu0 }
0x131c   :  { %v3098_v30 = vadd.f32 %v4184_v26, %v3577_v49 }
0x131d   :  { %v3092_v12 = vpop.f32.mrf.mxu0 }
0x131e   :  { %v3093_v42 = vadd.f32 %v3577_v49, %v3092_v12 }
0x1320   :  { %4458 = vtanh.f32 %v3093_v42 }
0x1321   :  { %4460 = vtanh.f32 %v3098_v30 }
0x1323   :  { %v4187_v36 = vpop.f32.mrf.mxu0 }
0x1324   :  { %v3108_v37 = vadd.f32 %v4187_v36, %v3577_v49 }
0x1325   :  { %v3102_v25 = vpop.f32.mrf.mxu0 }
0x1326   :  { %v3103_v5 = vadd.f32 %v3577_v49, %v3102_v25 }
0x1328   :  { %4462 = vtanh.f32 %v3103_v5 }
0x1329   :  { %4464 = vtanh.f32 %v3108_v37 }
0x132d   :  { %v4459_v54 = vpop.eup %4458 }
0x132e   :  { %v4461_v57 = vpop.eup %4460  ;;  %4196 = vmatprep.mubr.msk.f32.mxu1 %vm24_vm0, %v4459_v54 }
0x132f   :  { %4197 = vmatmul.mubr.msk.f32.vlgmr.msra.gmra.mxu1 %vm24_vm0, %v4461_v57 }
0x1335   :  { %v4463_v16 = vpop.eup %4462 }
0x1336   :  { %v4465_v11 = vpop.eup %4464  ;;  %4199 = vmatprep.mubr.msk.f32.mxu1 %vm24_vm0, %v4463_v16 }
0x1337   :  { %4200 = vmatmul.mubr.msk.f32.gmra.mxu1 %vm24_vm0, %v4465_v11  ;;  %v3587_v11 = vld [vmem:[%s5949_s4 + $0x2b8] ss:$0 sm:$0xff] }
0x13ef   :  { %v4198_v7 = vpop.f32.mrf.mxu1 }
0x13f0   :  { %v5868_v33 = vadd.f32 %v4198_v7, %v3582_v53 }
0x13f1   :  { %v3202_v60 = vpop.f32.mrf.mxu1 }
0x13f2   :  { %v5870_v28 = vadd.f32 %v3582_v53, %v3202_v60  ;;  %v3226_v17 = vsel %vm106_vm1, %v5868_v33, 0.0  ;;  %v3236_v18 = vmul.f32 %v5868_v33, %v5868_v33 }
0x13f3   :  { %3227 = vadd.xlane.f32.xlu1 %v3226_v17  ;;  %v3588_v17 = vld [vmem:[%s5949_s4 + $0x2c0] ss:$0 sm:$0xff] }
0x13f4   :  { %v3223_v39 = vsel %vm106_vm1, %v5870_v28, 0.0  ;;  %v3235_v10 = vmul.f32 %v5870_v28, %v5870_v28  ;;  %v3242_v6 = vsel %vm106_vm1, %v3236_v18, 0.0 }
0x13f5   :  { %3224 = vadd.xlane.f32.xlu0 %v3223_v39 }
0x13f6   :  { %v3239_v31 = vsel %vm106_vm1, %v3235_v10, 0.0 }
0x13f7   :  { %3243 = vadd.xlane.f32.xlu1 %v3242_v6  ;;  %v4201_v44 = vpop.f32.mrf.mxu1 }
0x13f8   :  { %v5881_v20 = vadd.f32 %v4201_v44, %v3582_v53 }
0x13f9   :  { %3240 = vadd.xlane.f32.xlu0 %v3239_v31  ;;  %v3212_v9 = vpop.f32.mrf.mxu1 }
0x13fa   :  { %v5884_v2 = vadd.f32 %v3582_v53, %v3212_v9  ;;  %v3232_v22 = vsel %vm106_vm1, %v5881_v20, 0.0  ;;  %v3238_v21 = vmul.f32 %v5881_v20, %v5881_v20 }
0x13fb   :  { %3233 = vadd.xlane.f32.xlu1 %v3232_v22 }
0x13fc   :  { %v3229_v27 = vsel %vm106_vm1, %v5884_v2, 0.0  ;;  %v3237_v19 = vmul.f32 %v5884_v2, %v5884_v2  ;;  %v3248_v23 = vsel %vm106_vm1, %v3238_v21, 0.0 }
0x13fd   :  { %3230 = vadd.xlane.f32.xlu0 %v3229_v27 }
0x13fe   :  { %v3245_v59 = vsel %vm106_vm1, %v3237_v19, 0.0 }
0x13ff   :  { %3249 = vadd.xlane.f32.xlu1 %v3248_v23 }
0x1401   :  { %3246 = vadd.xlane.f32.xlu0 %v3245_v59 }
0x147c   :  { %v3228_v41 = vpop.xlane.xlu1 %3227 }
0x147d   :  { %v3252_v40 = vmul.f32 0.015625, %v3228_v41 }
0x147e   :  { %v3225_v46 = vpop.xlane.xlu0 %3224 }
0x147f   :  { %v3251_v13 = vmul.f32 0.015625, %v3225_v46  ;;  %v3260_v45 = vmul.f32 %v3252_v40, %v3252_v40  ;;  %v3272_v57 = vsub.f32 %v5868_v33, %v3252_v40 }
0x1480   :  { %v3244_v35 = vpop.xlane.xlu1 %3243 }
0x1481   :  { %v3256_v14 = vmul.f32 0.015625, %v3244_v35  ;;  %v3259_v24 = vmul.f32 %v3251_v13, %v3251_v13  ;;  %v3271_v53 = vsub.f32 %v5870_v28, %v3251_v13 }
0x1482   :  { %v3241_v50 = vpop.xlane.xlu0 %3240 }
0x1483   :  { %v3264_v48 = vsub.f32 %v3256_v14, %v3260_v45  ;;  %v3255_v47 = vmul.f32 0.015625, %v3241_v50 }
0x1484   :  { %v3234_v29 = vpop.xlane.xlu1 %3233 }
0x1485   :  { %v3268_v61 = vmax.f32 %v3264_v48, 0.0  ;;  %v3263_v1 = vsub.f32 %v3255_v47, %v3259_v24  ;;  %v3254_v52 = vmul.f32 0.015625, %v3234_v29 }
0x1486   :  { %v3231_v51 = vpop.xlane.xlu0 %3230 }
0x1487   :  { %v3276_v0 = vadd.f32 1e-12, %v3268_v61  ;;  %v3267_v56 = vmax.f32 %v3263_v1, 0.0  ;;  %v3253_v3 = vmul.f32 0.015625, %v3231_v51  ;;  %v3262_v8 = vmul.f32 %v3254_v52, %v3254_v52 }
0x1488   :  { %v3250_v43 = vpop.xlane.xlu1 %3249  ;;  %v3274_v44 = vsub.f32 %v5881_v20, %v3254_v52 }
0x1489   :  { %4466 = vrsqrt.f32 %v3276_v0  ;;  %v3275_v58 = vadd.f32 1e-12, %v3267_v56  ;;  %v3258_v49 = vmul.f32 0.015625, %v3250_v43  ;;  %v3261_v30 = vmul.f32 %v3253_v3, %v3253_v3 }
0x148a   :  { %v3247_v26 = vpop.xlane.xlu0 %3246  ;;  %v3273_v22 = vsub.f32 %v5884_v2, %v3253_v3 }
0x148b   :  { %4468 = vrsqrt.f32 %v3275_v58  ;;  %v3266_v12 = vsub.f32 %v3258_v49, %v3262_v8  ;;  %v3257_v42 = vmul.f32 0.015625, %v3247_v26 }
0x148d   :  { %v3270_v36 = vmax.f32 %v3266_v12, 0.0  ;;  %v3265_v37 = vsub.f32 %v3257_v42, %v3261_v30  ;;  %v3589_v42 = vld [vmem:[%s5949_s4 + $0x2c8] ss:$0 sm:$0xff] }
0x148f   :  { %v3278_v25 = vadd.f32 1e-12, %v3270_v36  ;;  %v3269_v5 = vmax.f32 %v3265_v37, 0.0 }
0x1491   :  { %4470 = vrsqrt.f32 %v3278_v25  ;;  %v3277_v54 = vadd.f32 1e-12, %v3269_v5 }
0x1493   :  { %4472 = vrsqrt.f32 %v3277_v54 }
0x1496   :  { %v4467_v16 = vpop.eup %4466 }
0x1497   :  { %v3284_v7 = vmul.f32 %v4467_v16, %v3272_v57 }
0x1498   :  { %v4469_v60 = vpop.eup %4468 }
0x1499   :  { %v3292_v18 = vmul.f32 %v3587_v11, %v3284_v7  ;;  %v3283_v39 = vmul.f32 %v4469_v60, %v3271_v53 }
0x149b   :  { %v3300_v10 = vadd.f32 %v3588_v17, %v3292_v18  ;;  %v3291_v6 = vmul.f32 %v3587_v11, %v3283_v39 }
0x149d   :  { %v3299_v33 = vadd.f32 %v3588_v17, %v3291_v6  ;;  %v3308_v31 = vmul.f32 0.044715, %v3300_v10  ;;  %v3304_v51 = vmul.f32 0.5, %v3300_v10 }
0x149e   :  { %v4471_v9 = vpop.eup %4470 }
0x149f   :  { %v3286_v21 = vmul.f32 %v4471_v9, %v3274_v44  ;;  %v3307_v27 = vmul.f32 0.044715, %v3299_v33  ;;  %v3312_v28 = vmul.f32 %v3308_v31, %v3300_v10  ;;  %v3303_v1 = vmul.f32 0.5, %v3299_v33 }
0x14a0   :  { %v4473_v19 = vpop.eup %4472 }
0x14a1   :  { %v3294_v23 = vmul.f32 %v3587_v11, %v3286_v21  ;;  %v3285_v59 = vmul.f32 %v4473_v19, %v3273_v22  ;;  %v3311_v34 = vmul.f32 %v3307_v27, %v3299_v33  ;;  %v3316_v63 = vmul.f32 %v3312_v28, %v3300_v10 }
0x14a3   :  { %v3302_v32 = vadd.f32 %v3588_v17, %v3294_v23  ;;  %v3293_v4 = vmul.f32 %v3587_v11, %v3285_v59  ;;  %v3315_v38 = vmul.f32 %v3311_v34, %v3299_v33  ;;  %v3320_v62 = vadd.f32 %v3316_v63, %v3300_v10 }
0x14a5   :  { %v3301_v55 = vadd.f32 %v3588_v17, %v3293_v4  ;;  %v3319_v15 = vadd.f32 %v3315_v38, %v3299_v33  ;;  %v3324_v20 = vmul.f32 0.7978846, %v3320_v62  ;;  %v3310_v41 = vmul.f32 0.044715, %v3302_v32 }
0x14a6   :  { %v3306_v26 = vmul.f32 0.5, %v3302_v32 }
0x14a7   :  { %v3323_v40 = vmul.f32 0.7978846, %v3319_v15  ;;  %4474 = vtanh.f32 %v3324_v20  ;;  %v3309_v46 = vmul.f32 0.044715, %v3301_v55  ;;  %v3314_v2 = vmul.f32 %v3310_v41, %v3302_v32 }
0x14a8   :  { %v3305_v8 = vmul.f32 0.5, %v3301_v55 }
0x14a9   :  { %4476 = vtanh.f32 %v3323_v40  ;;  %v3313_v13 = vmul.f32 %v3309_v46, %v3301_v55  ;;  %v3318_v35 = vmul.f32 %v3314_v2, %v3302_v32 }
0x14ab   :  { %v3317_v45 = vmul.f32 %v3313_v13, %v3301_v55  ;;  %v3322_v14 = vadd.f32 %v3318_v35, %v3302_v32 }
0x14ad   :  { %v3321_v50 = vadd.f32 %v3317_v45, %v3301_v55  ;;  %v3326_v24 = vmul.f32 0.7978846, %v3322_v14 }
0x14af   :  { %v3325_v48 = vmul.f32 0.7978846, %v3321_v50  ;;  %4478 = vtanh.f32 %v3326_v24 }
0x14b1   :  { %4480 = vtanh.f32 %v3325_v48 }
0x14b4   :  { %v4475_v47 = vpop.eup %4474 }
0x14b5   :  { %v3332_v61 = vadd.f32 1.0, %v4475_v47 }
0x14b6   :  { %v4477_v29 = vpop.eup %4476 }
0x14b7   :  { %v3331_v52 = vadd.f32 1.0, %v4477_v29  ;;  %v3336_v56 = vmul.f32 %v3332_v61, %v3304_v51 }
0x14b9   :  { %v3335_v0 = vmul.f32 %v3331_v52, %v3303_v1 }
0x14bb   :  { %4218 = vmatprep.mubr.msk.f32.mxu0 %vm106_vm1, %v3335_v0 }
0x14bc   :  { %4219 = vmatmul.mubr.msk.f32.vlgmr.msra.gmra.mxu0 %vm106_vm1, %v3336_v56  ;;  %v4479_v3 = vpop.eup %4478 }
0x14bd   :  { %v3334_v58 = vadd.f32 1.0, %v4479_v3 }
0x14be   :  { %v4481_v43 = vpop.eup %4480 }
0x14bf   :  { %v3333_v49 = vadd.f32 1.0, %v4481_v43  ;;  %v3338_v12 = vmul.f32 %v3334_v58, %v3306_v26 }
0x14c1   :  { %v3337_v30 = vmul.f32 %v3333_v49, %v3305_v8 }
0x14c3   :  { %4221 = vmatprep.mubr.msk.f32.mxu0 %vm106_vm1, %v3337_v30 }
0x14c4   :  { %4222 = vmatmul.mubr.msk.f32.gmra.mxu0 %vm106_vm1, %v3338_v12 }
0x157c   :  { %v4220_v36 = vpop.f32.mrf.mxu0 }
0x157d   :  { %v3436_v37 = vadd.f32 %v4220_v36, %v3589_v42 }
0x157e   :  { %v3430_v25 = vpop.f32.mrf.mxu0 }
0x157f   :  { %3451 = vst.msk [vmem:[%s5954_s5 + $0x8] sm:$0xff] %vm3449_vm13, %v3436_v37  ;;  %v3431_v5 = vadd.f32 %v3589_v42, %v3430_v25 }
0x1581   :  { %3450 = vst.msk [vmem:[%s5954_s5] sm:$0xff] %vm3449_vm13, %v3431_v5 }
0x1584   :  { %v4223_v54 = vpop.f32.mrf.mxu0 }
0x1585   :  { %v3446_v57 = vadd.f32 %v4223_v54, %v3589_v42 }
0x1586   :  { %v3440_v16 = vpop.f32.mrf.mxu0 }
0x1587   :  { %3453 = vst.msk [vmem:[%s5954_s5 + $0x18] sm:$0xff] %vm3449_vm13, %v3446_v57  ;;  %v3441_v11 = vadd.f32 %v3589_v42, %v3440_v16 }
0x1589   :  { %3452 = vst.msk [vmem:[%s5954_s5 + $0x10] sm:$0xff] %vm3449_vm13, %v3441_v11 }

</bundles_post_ra>
